<compile_context>
chip_gen: v7x
topology: tpu7x:2x2x1
jax: 0.10.0
libtpu: 0.0.40
codegen_flags: <defaults>
</compile_context>

<pallas_src>
import functools

import jax
import jax.numpy as jnp
from jax.experimental import pallas as pl
from jax.experimental.pallas import tpu as pltpu


# ----------------------------- kernel -----------------------------

def _rmsnorm(x, w, eps, out_dtype):
    # variance in float32, like the PyTorch module
    xf = x.astype(jnp.float32)
    var = jnp.mean(xf * xf, axis=-1, keepdims=True)
    return (w * (xf * jax.lax.rsqrt(var + eps))).astype(out_dtype)


def transformer_block_kernel(
    x_ref,
    wn1_ref,
    wq_ref, wk_ref, wv_ref,        # (H, H) bf16 each
    bq_ref, bk_ref, bv_ref,        # (1, H) f32 each
    wproj_ref, bproj_ref,          # (H, H)  bf16, (1, H)  f32
    wn2_ref,
    wgate_ref, bgate_ref,          # (H, ffn) bf16, (1, ffn) f32
    wup_ref, bup_ref,              # (H, ffn) bf16, (1, ffn) f32
    wff2_ref, bff2_ref,            # (ffn, H) bf16, (1, H) f32
    *rest,                         # out refs..., attn_scr, out1_scr
    n_heads, head_size, heads_per_group, kv_tile, row_tile,
    eps, compute_dtype, emit_attn_out,
):
    out_ref = rest[0]
    attn_out_ref = rest[1] if emit_attn_out else None
    attn_scr = rest[-2]            # (S, H) bf16 VMEM: per-head-group attention outputs
    out1_scr = rest[-1]            # (S, H) f32 VMEM: residual-1, reread by row-tiled MLP

    x = x_ref[...]                 # (S, H)
    S, H = x.shape
    scale = 1.0 / (head_size ** 0.5)

    # ---- input RMSNorm (f32 stats) -> bf16 for the MXU ----
    xn = _rmsnorm(x, wn1_ref[...], eps, compute_dtype)

    # ---- Q / K / V projections one at a time (no (S, 3H) f32 intermediate) ----
    # 1/sqrt(head_size) folded into q once (single (S,H) multiply).
    q_all = ((jnp.dot(xn, wq_ref[...], preferred_element_type=jnp.float32)
              + bq_ref[...]) * scale).astype(compute_dtype)
    k_all = (jnp.dot(xn, wk_ref[...], preferred_element_type=jnp.float32)
             + bk_ref[...]).astype(compute_dtype)
    v_all = (jnp.dot(xn, wv_ref[...], preferred_element_type=jnp.float32)
             + bv_ref[...]).astype(compute_dtype)

    # ---- causal attention: online softmax over KV tiles, heads grouped so stores
    # ---- into attn_scr are lane-dense slabs of width heads_per_group*head_size ----
    num_kv_tiles = S // kv_tile
    n_groups = n_heads // heads_per_group
    group_w = heads_per_group * head_size

    row_idx = jax.lax.broadcasted_iota(jnp.int32, (S, kv_tile), 0)
    col_idx = jax.lax.broadcasted_iota(jnp.int32, (S, kv_tile), 1)

    for g in range(n_groups):
        group_outs = []
        for hh in range(heads_per_group):
            h = g * heads_per_group + hh
            sl = slice(h * head_size, (h + 1) * head_size)
            q_h = q_all[:, sl]
            m_i = jnp.full((S, 1), -1e30, jnp.float32)
            l_i = jnp.zeros((S, 1), jnp.float32)
            acc = jnp.zeros((S, head_size), jnp.float32)
            # TODO(synk): for very long S also tile the query rows (extra grid axis)
            # and convert this static KV loop to pl.loop over K/V held in VMEM scratch.
            for t in range(num_kv_tiles):
                kv_sl = slice(t * kv_tile, (t + 1) * kv_tile)
                s = jax.lax.dot_general(           # q @ k^T without materializing k.T
                    q_h, k_all[kv_sl, sl],
                    (((1,), (1,)), ((), ())),
                    preferred_element_type=jnp.float32)
                causal = row_idx >= (col_idx + t * kv_tile)
                s = jnp.where(causal, s, -jnp.inf)
                m_new = jnp.maximum(m_i, jnp.max(s, axis=-1, keepdims=True))
                alpha = jnp.exp(m_i - m_new)
                p = jnp.exp(s - m_new)
                l_i = alpha * l_i + jnp.sum(p, axis=-1, keepdims=True)
                acc = alpha * acc + jnp.dot(p.astype(compute_dtype), v_all[kv_sl, sl],
                                            preferred_element_type=jnp.float32)
                m_i = m_new
            o = acc * pl.reciprocal(l_i, approx=True)
            group_outs.append(o.astype(compute_dtype))
        slab = group_outs[0] if heads_per_group == 1 else jnp.concatenate(group_outs, axis=-1)
        attn_scr[:, g * group_w:(g + 1) * group_w] = slab    # lane-dense slab store

    # ---- attention output projection ----
    attn_out = (jnp.dot(attn_scr[...], wproj_ref[...],
                        preferred_element_type=jnp.float32) + bproj_ref[...])
    if emit_attn_out:
        attn_out_ref[...] = attn_out.astype(attn_out_ref.dtype)

    # ---- residual 1 (layer_residual_conn=True, dropout=0 in eval) ----
    out1_scr[...] = x.astype(jnp.float32) + attn_out

    # ---- post-attn RMSNorm + SwiGLU MLP + residual 2, tiled over sequence rows so
    # ---- only (row_tile, ffn) gate/up activations are live at once ----
    @pl.loop(0, S // row_tile)
    def _(r):
        r0 = pl.multiple_of(r * row_tile, row_tile)
        x1 = out1_scr[pl.ds(r0, row_tile), :]
        xn2 = _rmsnorm(x1, wn2_ref[...], eps, compute_dtype)
        a = jnp.dot(xn2, wgate_ref[...], preferred_element_type=jnp.float32) + bgate_ref[...]
        b = jnp.dot(xn2, wup_ref[...], preferred_element_type=jnp.float32) + bup_ref[...]
        gz = ((a * jax.nn.sigmoid(a)) * b).astype(compute_dtype)   # SwiGLU: silu(a) * b
        h2 = jnp.dot(gz, wff2_ref[...], preferred_element_type=jnp.float32) + bff2_ref[...]
        out_ref[pl.ds(r0, row_tile), :] = (x1 + h2).astype(out_ref.dtype)


# ----------------------------- wrapper -----------------------------

def _largest_divisor_tile(n, pref):
    if n <= pref:
        return n
    for t in range(pref, 0, -1):
        if n % t == 0:
            return t
    return n


def transformer_block(x, params, *, n_heads, eps=1e-5,
                      compute_dtype=jnp.bfloat16, return_attn_output=True):
    B, S, H = x.shape
    head_size = H // n_heads
    ffn = params["wff1"].shape[0] // 2
    f32 = jnp.float32

    wqkv = params["wqkv"]                       # (3H, H) PyTorch layout
    wff1 = params["wff1"]                       # (2*ffn, H) PyTorch layout
    bqkv = params["bqkv"].astype(f32)
    bff1 = params["bff1"].astype(f32)

    # Pre-transposed (in_features, out_features) bf16 weights; biases / norm weights f32.
    weight_args = [
        params["wn1"].astype(f32).reshape(1, H),
        wqkv[:H].T.astype(compute_dtype),            # wq (H, H)
        wqkv[H:2 * H].T.astype(compute_dtype),       # wk (H, H)
        wqkv[2 * H:].T.astype(compute_dtype),        # wv (H, H)
        bqkv[:H].reshape(1, H),
        bqkv[H:2 * H].reshape(1, H),
        bqkv[2 * H:].reshape(1, H),
        params["wproj"].T.astype(compute_dtype),     # (H, H)
        params["bproj"].astype(f32).reshape(1, H),
        params["wn2"].astype(f32).reshape(1, H),
        wff1[:ffn].T.astype(compute_dtype),          # gate (H, ffn)
        bff1[:ffn].reshape(1, ffn),
        wff1[ffn:].T.astype(compute_dtype),          # up   (H, ffn)
        bff1[ffn:].reshape(1, ffn),
        params["wff2"].T.astype(compute_dtype),      # (ffn, H)
        params["bff2"].astype(f32).reshape(1, H),
    ]

    # tiling choices
    kv_tile = _largest_divisor_tile(S, 512)      # online-softmax KV tile
    row_tile = _largest_divisor_tile(S, 256)     # MLP / residual-2 row tile
    max_hpg = max(1, 128 // head_size)
    heads_per_group = 1
    for c in range(min(max_hpg, n_heads), 0, -1):
        if n_heads % c == 0:
            heads_per_group = c
            break

    act_spec = pl.BlockSpec((None, S, H), lambda b: (b, 0, 0))

    n_out = 2 if return_attn_output else 1
    out_shape = tuple(jax.ShapeDtypeStruct((B, S, H), x.dtype) for _ in range(n_out))
    out_specs = [act_spec] * n_out

    # scoped VMEM budget: default 16/32 MiB is too small for resident weights
    try:
        vmem_cap = int(pltpu.get_tpu_info().vmem_capacity_bytes)
    except Exception:
        vmem_cap = 64 * 1024 * 1024
    vmem_limit = min(100 * 1024 * 1024, int(vmem_cap * 0.8))

    flops = int(2 * B * S * H * (3 * H + H + 3 * ffn) + 4 * B * S * S * H)
    transcendentals = int(B * n_heads * S * S + B * S * ffn)
    bytes_accessed = int(
        x.size * x.dtype.itemsize
        + sum(int(w.size) * w.dtype.itemsize for w in weight_args)
        + n_out * B * S * H * x.dtype.itemsize)

    kernel = functools.partial(
        transformer_block_kernel,
        n_heads=n_heads, head_size=head_size, heads_per_group=heads_per_group,
        kv_tile=kv_tile, row_tile=row_tile,
        eps=eps, compute_dtype=compute_dtype, emit_attn_out=return_attn_output)

    def _weight_spec(arr, single_buffer):
        nd = arr.ndim
        idx_map = lambda b, _nd=nd: (0,) * _nd
        if single_buffer:
            # grid-invariant: one VMEM buffer instead of the default two
            return pl.BlockSpec(arr.shape, idx_map, pipeline_mode=pl.Buffered(1))
        return pl.BlockSpec(arr.shape, idx_map)

    def _build(single_buffer_weights):
        # TODO(synk): on v7x add a second "parallel" grid axis (seq/head-group tiles) so
        # both TensorCores are busy even at B=1, and stream or fp8-quantize the MLP weights.
        return pl.pallas_call(
            kernel,
            out_shape=out_shape,
            grid_spec=pltpu.PrefetchScalarGridSpec(
                num_scalar_prefetch=0,
                grid=(B,),
                in_specs=[act_spec] + [_weight_spec(w, single_buffer_weights)
                                       for w in weight_args],
                out_specs=out_specs,
                scratch_shapes=[
                    pltpu.VMEM((S, H), compute_dtype),   # attention head-group outputs
                    pltpu.VMEM((S, H), jnp.float32),     # residual-1 for row-tiled MLP
                ]),
            compiler_params=pltpu.CompilerParams(
                dimension_semantics=("parallel",),
                vmem_limit_bytes=vmem_limit),
            cost_estimate=pl.CostEstimate(
                flops=flops, transcendentals=transcendentals,
                bytes_accessed=bytes_accessed))

    try:
        outs = _build(True)(x, *weight_args)
    except Exception:
        # Fallback for JAX builds where pipeline_mode on top-level pallas_call BlockSpecs
        # is unsupported; weights are then default (double) buffered.
        outs = _build(False)(x, *weight_args)

    if return_attn_output:
        out2, attn_out = outs
    else:
        out2 = outs[0] if isinstance(outs, (tuple, list)) else outs
        attn_out = None
    # cache is None when use_cache=False
    # TODO(synk): KV-cache (use_cache=True) path not implemented in the kernel.
    return out2, attn_out, None


# ----------------------------- pure-JAX reference -----------------------------

def reference_block(x, params, *, n_heads, eps=1e-5):
    B, S, H = x.shape
    hd = H // n_heads

    def rms(t, w):
        var = jnp.mean(t.astype(jnp.float32) ** 2, axis=-1, keepdims=True)
        return w * (t * jax.lax.rsqrt(var + eps))

    xn = rms(x, params["wn1"])
    qkv = xn @ params["wqkv"].T + params["bqkv"]
    q, k, v = jnp.split(qkv, 3, axis=-1)

    def heads(t):
        return t.reshape(B, S, n_heads, hd).transpose(0, 2, 1, 3)

    q, k, v = heads(q), heads(k), heads(v)
    s = jnp.einsum("bhqd,bhkd->bhqk", q, k) / (hd ** 0.5)
    causal = jnp.tril(jnp.ones((S, S), bool))
    s = jnp.where(causal, s, -jnp.inf)
    p = jax.nn.softmax(s, axis=-1)
    o = jnp.einsum("bhqk,bhkd->bhqd", p, v).transpose(0, 2, 1, 3).reshape(B, S, H)
    attn_out = o @ params["wproj"].T + params["bproj"]

    out1 = x + attn_out
    xn2 = rms(out1, params["wn2"])
    h1 = xn2 @ params["wff1"].T + params["bff1"]
    a, b = jnp.split(h1, 2, axis=-1)
    g = jax.nn.silu(a) * b
    h2 = g @ params["wff2"].T + params["bff2"]
    return out1 + h2, attn_out


# ----------------------------- main -----------------------------

if __name__ == "__main__":
    B, S, H = 2, 8, 32
    n_heads = 4
    ffn = 64
    eps = 1e-5
    dtype = jnp.float32

    key = jax.random.PRNGKey(0)
    ks = jax.random.split(key, 12)

    def init(k, shape, scale=0.05):
        return (scale * jax.random.normal(k, shape)).astype(dtype)

    params = {
        "wn1":   jnp.ones((H,), dtype),                      # RMSNorm weight
        "wqkv":  init(ks[0], (3 * H, H)),
        "bqkv":  init(ks[1], (3 * H,)),
        "wproj": init(ks[2], (H, H)),
        "bproj": init(ks[3], (H,)),
        "wn2":   jnp.ones((H,), dtype) + init(ks[4], (H,)),
        "wff1":  init(ks[5], (2 * ffn, H)),
        "bff1":  init(ks[6], (2 * ffn,)),
        "wff2":  init(ks[7], (H, ffn)),
        "bff2":  init(ks[8], (H,)),
    }

    x = jax.random.normal(ks[9], (B, S, H), dtype)

    out2, attn_out, cache = transformer_block(
        x, params, n_heads=n_heads, eps=eps,
        compute_dtype=jnp.bfloat16, return_attn_output=True)
    out2 = jax.block_until_ready(out2)
    attn_out = jax.block_until_ready(attn_out)

    ref_out2, ref_attn = reference_block(x, params, n_heads=n_heads, eps=eps)
    # bf16 MXU inputs (f32 accumulation) -> compare against f32 reference with bf16-level tolerance
    assert jnp.allclose(out2, ref_out2, atol=3e-2, rtol=3e-2), "output2 mismatch"
    assert jnp.allclose(attn_out, ref_attn, atol=3e-2, rtol=3e-2), "attn_output mismatch"

    print("KERNEL_OK")
</pallas_src>

<mosaic_0001>
module attributes {stable_mosaic.version = 11 : i64} {
  func.func @transformer_block_kernel(%arg0: i32, %arg1: memref<1x8x32xf32, #tpu.memory_space<vmem>>, %arg2: memref<1x32xf32, #tpu.memory_space<vmem>>, %arg3: memref<32x32xbf16, #tpu.memory_space<vmem>>, %arg4: memref<32x32xbf16, #tpu.memory_space<vmem>>, %arg5: memref<32x32xbf16, #tpu.memory_space<vmem>>, %arg6: memref<1x32xf32, #tpu.memory_space<vmem>>, %arg7: memref<1x32xf32, #tpu.memory_space<vmem>>, %arg8: memref<1x32xf32, #tpu.memory_space<vmem>>, %arg9: memref<32x32xbf16, #tpu.memory_space<vmem>>, %arg10: memref<1x32xf32, #tpu.memory_space<vmem>>, %arg11: memref<1x32xf32, #tpu.memory_space<vmem>>, %arg12: memref<32x64xbf16, #tpu.memory_space<vmem>>, %arg13: memref<1x64xf32, #tpu.memory_space<vmem>>, %arg14: memref<32x64xbf16, #tpu.memory_space<vmem>>, %arg15: memref<1x64xf32, #tpu.memory_space<vmem>>, %arg16: memref<64x32xbf16, #tpu.memory_space<vmem>>, %arg17: memref<1x32xf32, #tpu.memory_space<vmem>>, %arg18: memref<1x8x32xf32, #tpu.memory_space<vmem>>, %arg19: memref<1x8x32xf32, #tpu.memory_space<vmem>>, %arg20: memref<8x32xbf16, #tpu.memory_space<vmem>>, %arg21: memref<8x32xf32, #tpu.memory_space<vmem>>) attributes {dimension_semantics = [#tpu.dimension_semantics<parallel>], iteration_bounds = array<i64: 2>, scalar_prefetch = 0 : i64, scratch_operands = 2 : i64, tpu.core_type = #tpu.core_type<tc>, window_params = [{transform_indices = @transform_0, window_bounds = array<i64: 1, 8, 32>}, {pipeline_mode = #tpu.pipeline_mode<synchronous>, transform_indices = @transform_1, window_bounds = array<i64: 1, 32>}, {pipeline_mode = #tpu.pipeline_mode<synchronous>, transform_indices = @transform_2, window_bounds = array<i64: 32, 32>}, {pipeline_mode = #tpu.pipeline_mode<synchronous>, transform_indices = @transform_3, window_bounds = array<i64: 32, 32>}, {pipeline_mode = #tpu.pipeline_mode<synchronous>, transform_indices = @transform_4, window_bounds = array<i64: 32, 32>}, {pipeline_mode = #tpu.pipeline_mode<synchronous>, transform_indices = @transform_5, window_bounds = array<i64: 1, 32>}, {pipeline_mode = #tpu.pipeline_mode<synchronous>, transform_indices = @transform_6, window_bounds = array<i64: 1, 32>}, {pipeline_mode = #tpu.pipeline_mode<synchronous>, transform_indices = @transform_7, window_bounds = array<i64: 1, 32>}, {pipeline_mode = #tpu.pipeline_mode<synchronous>, transform_indices = @transform_8, window_bounds = array<i64: 32, 32>}, {pipeline_mode = #tpu.pipeline_mode<synchronous>, transform_indices = @transform_9, window_bounds = array<i64: 1, 32>}, {pipeline_mode = #tpu.pipeline_mode<synchronous>, transform_indices = @transform_10, window_bounds = array<i64: 1, 32>}, {pipeline_mode = #tpu.pipeline_mode<synchronous>, transform_indices = @transform_11, window_bounds = array<i64: 32, 64>}, {pipeline_mode = #tpu.pipeline_mode<synchronous>, transform_indices = @transform_12, window_bounds = array<i64: 1, 64>}, {pipeline_mode = #tpu.pipeline_mode<synchronous>, transform_indices = @transform_13, window_bounds = array<i64: 32, 64>}, {pipeline_mode = #tpu.pipeline_mode<synchronous>, transform_indices = @transform_14, window_bounds = array<i64: 1, 64>}, {pipeline_mode = #tpu.pipeline_mode<synchronous>, transform_indices = @transform_15, window_bounds = array<i64: 64, 32>}, {pipeline_mode = #tpu.pipeline_mode<synchronous>, transform_indices = @transform_16, window_bounds = array<i64: 1, 32>}, {transform_indices = @transform_17, window_bounds = array<i64: 1, 8, 32>}, {transform_indices = @transform_18, window_bounds = array<i64: 1, 8, 32>}]} {
    %c0 = arith.constant 0 : index
    %c0_0 = arith.constant 0 : index
    %c0_1 = arith.constant 0 : index
    %0 = vector.load %arg1[%c0, %c0_0, %c0_1] : memref<1x8x32xf32, #tpu.memory_space<vmem>>, vector<1x8x32xf32>
    %1 = vector.shape_cast %0 : vector<1x8x32xf32> to vector<8x32xf32>
    %c0_2 = arith.constant 0 : index
    %c0_3 = arith.constant 0 : index
    %2 = vector.load %arg2[%c0_2, %c0_3] : memref<1x32xf32, #tpu.memory_space<vmem>>, vector<1x32xf32>
    %3 = arith.mulf %1, %1 : vector<8x32xf32>
    %cst = arith.constant dense<0.000000e+00> : vector<8xf32>
    %4 = vector.multi_reduction <add>, %3, %cst [1] : vector<8x32xf32> to vector<8xf32>
    %5 = vector.shape_cast %4 : vector<8xf32> to vector<8x1xf32>
    %cst_4 = arith.constant 3.200000e+01 : f32
    %6 = vector.broadcast %cst_4 : f32 to vector<8x1xf32>
    %7 = arith.divf %5, %6 : vector<8x1xf32>
    %cst_5 = arith.constant 9.99999974E-6 : f32
    %8 = vector.broadcast %cst_5 : f32 to vector<8x1xf32>
    %9 = arith.addf %7, %8 : vector<8x1xf32>
    %10 = math.rsqrt %9 : vector<8x1xf32>
    %11 = vector.broadcast %10 : vector<8x1xf32> to vector<8x32xf32>
    %12 = arith.mulf %1, %11 : vector<8x32xf32>
    %13 = vector.broadcast %2 : vector<1x32xf32> to vector<8x32xf32>
    %14 = arith.mulf %13, %12 : vector<8x32xf32>
    %15 = arith.truncf %14 : vector<8x32xf32> to vector<8x32xbf16>
    %c0_6 = arith.constant 0 : index
    %c0_7 = arith.constant 0 : index
    %16 = vector.load %arg3[%c0_6, %c0_7] : memref<32x32xbf16, #tpu.memory_space<vmem>>, vector<32x32xbf16>
    %cst_8 = arith.constant dense<0.000000e+00> : vector<8x32xf32>
    %17 = tpu.matmul %15, %16, %cst_8 {dimension_numbers = #tpu.dot_dimension_numbers<[1], [0], [0], [1], [0, 0, 1, 1], [], []>} : vector<8x32xbf16>, vector<32x32xbf16>, vector<8x32xf32> -> vector<8x32xf32>
    %c0_9 = arith.constant 0 : index
    %c0_10 = arith.constant 0 : index
    %18 = vector.load %arg6[%c0_9, %c0_10] : memref<1x32xf32, #tpu.memory_space<vmem>>, vector<1x32xf32>
    %19 = vector.broadcast %18 : vector<1x32xf32> to vector<8x32xf32>
    %20 = arith.addf %17, %19 : vector<8x32xf32>
    %cst_11 = arith.constant 0.353553385 : f32
    %21 = vector.broadcast %cst_11 : f32 to vector<8x32xf32>
    %22 = arith.mulf %20, %21 : vector<8x32xf32>
    %23 = arith.truncf %22 : vector<8x32xf32> to vector<8x32xbf16>
    %c0_12 = arith.constant 0 : index
    %c0_13 = arith.constant 0 : index
    %24 = vector.load %arg4[%c0_12, %c0_13] : memref<32x32xbf16, #tpu.memory_space<vmem>>, vector<32x32xbf16>
    %cst_14 = arith.constant dense<0.000000e+00> : vector<8x32xf32>
    %25 = tpu.matmul %15, %24, %cst_14 {dimension_numbers = #tpu.dot_dimension_numbers<[1], [0], [0], [1], [0, 0, 1, 1], [], []>} : vector<8x32xbf16>, vector<32x32xbf16>, vector<8x32xf32> -> vector<8x32xf32>
    %c0_15 = arith.constant 0 : index
    %c0_16 = arith.constant 0 : index
    %26 = vector.load %arg7[%c0_15, %c0_16] : memref<1x32xf32, #tpu.memory_space<vmem>>, vector<1x32xf32>
    %27 = vector.broadcast %26 : vector<1x32xf32> to vector<8x32xf32>
    %28 = arith.addf %25, %27 : vector<8x32xf32>
    %29 = arith.truncf %28 : vector<8x32xf32> to vector<8x32xbf16>
    %c0_17 = arith.constant 0 : index
    %c0_18 = arith.constant 0 : index
    %30 = vector.load %arg5[%c0_17, %c0_18] : memref<32x32xbf16, #tpu.memory_space<vmem>>, vector<32x32xbf16>
    %cst_19 = arith.constant dense<0.000000e+00> : vector<8x32xf32>
    %31 = tpu.matmul %15, %30, %cst_19 {dimension_numbers = #tpu.dot_dimension_numbers<[1], [0], [0], [1], [0, 0, 1, 1], [], []>} : vector<8x32xbf16>, vector<32x32xbf16>, vector<8x32xf32> -> vector<8x32xf32>
    %c0_20 = arith.constant 0 : index
    %c0_21 = arith.constant 0 : index
    %32 = vector.load %arg8[%c0_20, %c0_21] : memref<1x32xf32, #tpu.memory_space<vmem>>, vector<1x32xf32>
    %33 = vector.broadcast %32 : vector<1x32xf32> to vector<8x32xf32>
    %34 = arith.addf %31, %33 : vector<8x32xf32>
    %35 = arith.truncf %34 : vector<8x32xf32> to vector<8x32xbf16>
    %36 = tpu.iota {dimensions = array<i32: 0>} : vector<8x8xi32>
    %37 = tpu.iota {dimensions = array<i32: 1>} : vector<8x8xi32>
    %38 = vector.extract_strided_slice %23 {offsets = [0, 0], sizes = [8, 8], strides = [1, 1]} : vector<8x32xbf16> to vector<8x8xbf16>
    %cst_22 = arith.constant -1.000000e+30 : f32
    %39 = vector.broadcast %cst_22 : f32 to vector<8x1xf32>
    %cst_23 = arith.constant 0.000000e+00 : f32
    %40 = vector.broadcast %cst_23 : f32 to vector<8x1xf32>
    %cst_24 = arith.constant 0.000000e+00 : f32
    %41 = vector.broadcast %cst_24 : f32 to vector<8x8xf32>
    %42 = vector.extract_strided_slice %29 {offsets = [0, 0], sizes = [8, 8], strides = [1, 1]} : vector<8x32xbf16> to vector<8x8xbf16>
    %cst_25 = arith.constant dense<0.000000e+00> : vector<8x8xf32>
    %43 = tpu.matmul %38, %42, %cst_25 {dimension_numbers = #tpu.dot_dimension_numbers<[1], [1], [0], [0], [0, 0, 1, 0], [], []>} : vector<8x8xbf16>, vector<8x8xbf16>, vector<8x8xf32> -> vector<8x8xf32>
    %c0_i32 = arith.constant 0 : i32
    %44 = vector.broadcast %c0_i32 : i32 to vector<8x8xi32>
    %45 = arith.addi %37, %44 : vector<8x8xi32>
    %46 = arith.cmpi sge, %36, %45 : vector<8x8xi32>
    %cst_26 = arith.constant 0xFF800000 : f32
    %47 = vector.broadcast %cst_26 : f32 to vector<8x8xf32>
    %48 = arith.select %46, %43, %47 : vector<8x8xi1>, vector<8x8xf32>
    %cst_27 = arith.constant dense<0xFF800000> : vector<8xf32>
    %49 = vector.multi_reduction <maximumf>, %48, %cst_27 [1] : vector<8x8xf32> to vector<8xf32>
    %50 = vector.shape_cast %49 : vector<8xf32> to vector<8x1xf32>
    %51 = arith.maximumf %39, %50 : vector<8x1xf32>
    %52 = arith.subf %39, %51 : vector<8x1xf32>
    %53 = math.exp %52 : vector<8x1xf32>
    %54 = vector.broadcast %51 : vector<8x1xf32> to vector<8x8xf32>
    %55 = arith.subf %48, %54 : vector<8x8xf32>
    %56 = math.exp %55 : vector<8x8xf32>
    %57 = arith.mulf %53, %40 : vector<8x1xf32>
    %cst_28 = arith.constant dense<0.000000e+00> : vector<8xf32>
    %58 = vector.multi_reduction <add>, %56, %cst_28 [1] : vector<8x8xf32> to vector<8xf32>
    %59 = vector.shape_cast %58 : vector<8xf32> to vector<8x1xf32>
    %60 = arith.addf %57, %59 : vector<8x1xf32>
    %61 = vector.broadcast %53 : vector<8x1xf32> to vector<8x8xf32>
    %62 = arith.mulf %61, %41 : vector<8x8xf32>
    %63 = arith.truncf %56 : vector<8x8xf32> to vector<8x8xbf16>
    %64 = vector.extract_strided_slice %35 {offsets = [0, 0], sizes = [8, 8], strides = [1, 1]} : vector<8x32xbf16> to vector<8x8xbf16>
    %cst_29 = arith.constant dense<0.000000e+00> : vector<8x8xf32>
    %65 = tpu.matmul %63, %64, %cst_29 {dimension_numbers = #tpu.dot_dimension_numbers<[1], [0], [0], [1], [0, 0, 1, 1], [], []>} : vector<8x8xbf16>, vector<8x8xbf16>, vector<8x8xf32> -> vector<8x8xf32>
    %66 = arith.addf %62, %65 : vector<8x8xf32>
    %67 = tpu.reciprocal %60 {approx = true} : vector<8x1xf32> -> vector<8x1xf32>
    %68 = vector.broadcast %67 : vector<8x1xf32> to vector<8x8xf32>
    %69 = arith.mulf %66, %68 : vector<8x8xf32>
    %70 = arith.truncf %69 : vector<8x8xf32> to vector<8x8xbf16>
    %71 = vector.extract_strided_slice %23 {offsets = [0, 8], sizes = [8, 8], strides = [1, 1]} : vector<8x32xbf16> to vector<8x8xbf16>
    %cst_30 = arith.constant -1.000000e+30 : f32
    %72 = vector.broadcast %cst_30 : f32 to vector<8x1xf32>
    %cst_31 = arith.constant 0.000000e+00 : f32
    %73 = vector.broadcast %cst_31 : f32 to vector<8x1xf32>
    %cst_32 = arith.constant 0.000000e+00 : f32
    %74 = vector.broadcast %cst_32 : f32 to vector<8x8xf32>
    %75 = vector.extract_strided_slice %29 {offsets = [0, 8], sizes = [8, 8], strides = [1, 1]} : vector<8x32xbf16> to vector<8x8xbf16>
    %cst_33 = arith.constant dense<0.000000e+00> : vector<8x8xf32>
    %76 = tpu.matmul %71, %75, %cst_33 {dimension_numbers = #tpu.dot_dimension_numbers<[1], [1], [0], [0], [0, 0, 1, 0], [], []>} : vector<8x8xbf16>, vector<8x8xbf16>, vector<8x8xf32> -> vector<8x8xf32>
    %c0_i32_34 = arith.constant 0 : i32
    %77 = vector.broadcast %c0_i32_34 : i32 to vector<8x8xi32>
    %78 = arith.addi %37, %77 : vector<8x8xi32>
    %79 = arith.cmpi sge, %36, %78 : vector<8x8xi32>
    %cst_35 = arith.constant 0xFF800000 : f32
    %80 = vector.broadcast %cst_35 : f32 to vector<8x8xf32>
    %81 = arith.select %79, %76, %80 : vector<8x8xi1>, vector<8x8xf32>
    %cst_36 = arith.constant dense<0xFF800000> : vector<8xf32>
    %82 = vector.multi_reduction <maximumf>, %81, %cst_36 [1] : vector<8x8xf32> to vector<8xf32>
    %83 = vector.shape_cast %82 : vector<8xf32> to vector<8x1xf32>
    %84 = arith.maximumf %72, %83 : vector<8x1xf32>
    %85 = arith.subf %72, %84 : vector<8x1xf32>
    %86 = math.exp %85 : vector<8x1xf32>
    %87 = vector.broadcast %84 : vector<8x1xf32> to vector<8x8xf32>
    %88 = arith.subf %81, %87 : vector<8x8xf32>
    %89 = math.exp %88 : vector<8x8xf32>
    %90 = arith.mulf %86, %73 : vector<8x1xf32>
    %cst_37 = arith.constant dense<0.000000e+00> : vector<8xf32>
    %91 = vector.multi_reduction <add>, %89, %cst_37 [1] : vector<8x8xf32> to vector<8xf32>
    %92 = vector.shape_cast %91 : vector<8xf32> to vector<8x1xf32>
    %93 = arith.addf %90, %92 : vector<8x1xf32>
    %94 = vector.broadcast %86 : vector<8x1xf32> to vector<8x8xf32>
    %95 = arith.mulf %94, %74 : vector<8x8xf32>
    %96 = arith.truncf %89 : vector<8x8xf32> to vector<8x8xbf16>
    %97 = vector.extract_strided_slice %35 {offsets = [0, 8], sizes = [8, 8], strides = [1, 1]} : vector<8x32xbf16> to vector<8x8xbf16>
    %cst_38 = arith.constant dense<0.000000e+00> : vector<8x8xf32>
    %98 = tpu.matmul %96, %97, %cst_38 {dimension_numbers = #tpu.dot_dimension_numbers<[1], [0], [0], [1], [0, 0, 1, 1], [], []>} : vector<8x8xbf16>, vector<8x8xbf16>, vector<8x8xf32> -> vector<8x8xf32>
    %99 = arith.addf %95, %98 : vector<8x8xf32>
    %100 = tpu.reciprocal %93 {approx = true} : vector<8x1xf32> -> vector<8x1xf32>
    %101 = vector.broadcast %100 : vector<8x1xf32> to vector<8x8xf32>
    %102 = arith.mulf %99, %101 : vector<8x8xf32>
    %103 = arith.truncf %102 : vector<8x8xf32> to vector<8x8xbf16>
    %104 = vector.extract_strided_slice %23 {offsets = [0, 16], sizes = [8, 8], strides = [1, 1]} : vector<8x32xbf16> to vector<8x8xbf16>
    %cst_39 = arith.constant -1.000000e+30 : f32
    %105 = vector.broadcast %cst_39 : f32 to vector<8x1xf32>
    %cst_40 = arith.constant 0.000000e+00 : f32
    %106 = vector.broadcast %cst_40 : f32 to vector<8x1xf32>
    %cst_41 = arith.constant 0.000000e+00 : f32
    %107 = vector.broadcast %cst_41 : f32 to vector<8x8xf32>
    %108 = vector.extract_strided_slice %29 {offsets = [0, 16], sizes = [8, 8], strides = [1, 1]} : vector<8x32xbf16> to vector<8x8xbf16>
    %cst_42 = arith.constant dense<0.000000e+00> : vector<8x8xf32>
    %109 = tpu.matmul %104, %108, %cst_42 {dimension_numbers = #tpu.dot_dimension_numbers<[1], [1], [0], [0], [0, 0, 1, 0], [], []>} : vector<8x8xbf16>, vector<8x8xbf16>, vector<8x8xf32> -> vector<8x8xf32>
    %c0_i32_43 = arith.constant 0 : i32
    %110 = vector.broadcast %c0_i32_43 : i32 to vector<8x8xi32>
    %111 = arith.addi %37, %110 : vector<8x8xi32>
    %112 = arith.cmpi sge, %36, %111 : vector<8x8xi32>
    %cst_44 = arith.constant 0xFF800000 : f32
    %113 = vector.broadcast %cst_44 : f32 to vector<8x8xf32>
    %114 = arith.select %112, %109, %113 : vector<8x8xi1>, vector<8x8xf32>
    %cst_45 = arith.constant dense<0xFF800000> : vector<8xf32>
    %115 = vector.multi_reduction <maximumf>, %114, %cst_45 [1] : vector<8x8xf32> to vector<8xf32>
    %116 = vector.shape_cast %115 : vector<8xf32> to vector<8x1xf32>
    %117 = arith.maximumf %105, %116 : vector<8x1xf32>
    %118 = arith.subf %105, %117 : vector<8x1xf32>
    %119 = math.exp %118 : vector<8x1xf32>
    %120 = vector.broadcast %117 : vector<8x1xf32> to vector<8x8xf32>
    %121 = arith.subf %114, %120 : vector<8x8xf32>
    %122 = math.exp %121 : vector<8x8xf32>
    %123 = arith.mulf %119, %106 : vector<8x1xf32>
    %cst_46 = arith.constant dense<0.000000e+00> : vector<8xf32>
    %124 = vector.multi_reduction <add>, %122, %cst_46 [1] : vector<8x8xf32> to vector<8xf32>
    %125 = vector.shape_cast %124 : vector<8xf32> to vector<8x1xf32>
    %126 = arith.addf %123, %125 : vector<8x1xf32>
    %127 = vector.broadcast %119 : vector<8x1xf32> to vector<8x8xf32>
    %128 = arith.mulf %127, %107 : vector<8x8xf32>
    %129 = arith.truncf %122 : vector<8x8xf32> to vector<8x8xbf16>
    %130 = vector.extract_strided_slice %35 {offsets = [0, 16], sizes = [8, 8], strides = [1, 1]} : vector<8x32xbf16> to vector<8x8xbf16>
    %cst_47 = arith.constant dense<0.000000e+00> : vector<8x8xf32>
    %131 = tpu.matmul %129, %130, %cst_47 {dimension_numbers = #tpu.dot_dimension_numbers<[1], [0], [0], [1], [0, 0, 1, 1], [], []>} : vector<8x8xbf16>, vector<8x8xbf16>, vector<8x8xf32> -> vector<8x8xf32>
    %132 = arith.addf %128, %131 : vector<8x8xf32>
    %133 = tpu.reciprocal %126 {approx = true} : vector<8x1xf32> -> vector<8x1xf32>
    %134 = vector.broadcast %133 : vector<8x1xf32> to vector<8x8xf32>
    %135 = arith.mulf %132, %134 : vector<8x8xf32>
    %136 = arith.truncf %135 : vector<8x8xf32> to vector<8x8xbf16>
    %137 = vector.extract_strided_slice %23 {offsets = [0, 24], sizes = [8, 8], strides = [1, 1]} : vector<8x32xbf16> to vector<8x8xbf16>
    %cst_48 = arith.constant -1.000000e+30 : f32
    %138 = vector.broadcast %cst_48 : f32 to vector<8x1xf32>
    %cst_49 = arith.constant 0.000000e+00 : f32
    %139 = vector.broadcast %cst_49 : f32 to vector<8x1xf32>
    %cst_50 = arith.constant 0.000000e+00 : f32
    %140 = vector.broadcast %cst_50 : f32 to vector<8x8xf32>
    %141 = vector.extract_strided_slice %29 {offsets = [0, 24], sizes = [8, 8], strides = [1, 1]} : vector<8x32xbf16> to vector<8x8xbf16>
    %cst_51 = arith.constant dense<0.000000e+00> : vector<8x8xf32>
    %142 = tpu.matmul %137, %141, %cst_51 {dimension_numbers = #tpu.dot_dimension_numbers<[1], [1], [0], [0], [0, 0, 1, 0], [], []>} : vector<8x8xbf16>, vector<8x8xbf16>, vector<8x8xf32> -> vector<8x8xf32>
    %c0_i32_52 = arith.constant 0 : i32
    %143 = vector.broadcast %c0_i32_52 : i32 to vector<8x8xi32>
    %144 = arith.addi %37, %143 : vector<8x8xi32>
    %145 = arith.cmpi sge, %36, %144 : vector<8x8xi32>
    %cst_53 = arith.constant 0xFF800000 : f32
    %146 = vector.broadcast %cst_53 : f32 to vector<8x8xf32>
    %147 = arith.select %145, %142, %146 : vector<8x8xi1>, vector<8x8xf32>
    %cst_54 = arith.constant dense<0xFF800000> : vector<8xf32>
    %148 = vector.multi_reduction <maximumf>, %147, %cst_54 [1] : vector<8x8xf32> to vector<8xf32>
    %149 = vector.shape_cast %148 : vector<8xf32> to vector<8x1xf32>
    %150 = arith.maximumf %138, %149 : vector<8x1xf32>
    %151 = arith.subf %138, %150 : vector<8x1xf32>
    %152 = math.exp %151 : vector<8x1xf32>
    %153 = vector.broadcast %150 : vector<8x1xf32> to vector<8x8xf32>
    %154 = arith.subf %147, %153 : vector<8x8xf32>
    %155 = math.exp %154 : vector<8x8xf32>
    %156 = arith.mulf %152, %139 : vector<8x1xf32>
    %cst_55 = arith.constant dense<0.000000e+00> : vector<8xf32>
    %157 = vector.multi_reduction <add>, %155, %cst_55 [1] : vector<8x8xf32> to vector<8xf32>
    %158 = vector.shape_cast %157 : vector<8xf32> to vector<8x1xf32>
    %159 = arith.addf %156, %158 : vector<8x1xf32>
    %160 = vector.broadcast %152 : vector<8x1xf32> to vector<8x8xf32>
    %161 = arith.mulf %160, %140 : vector<8x8xf32>
    %162 = arith.truncf %155 : vector<8x8xf32> to vector<8x8xbf16>
    %163 = vector.extract_strided_slice %35 {offsets = [0, 24], sizes = [8, 8], strides = [1, 1]} : vector<8x32xbf16> to vector<8x8xbf16>
    %cst_56 = arith.constant dense<0.000000e+00> : vector<8x8xf32>
    %164 = tpu.matmul %162, %163, %cst_56 {dimension_numbers = #tpu.dot_dimension_numbers<[1], [0], [0], [1], [0, 0, 1, 1], [], []>} : vector<8x8xbf16>, vector<8x8xbf16>, vector<8x8xf32> -> vector<8x8xf32>
    %165 = arith.addf %161, %164 : vector<8x8xf32>
    %166 = tpu.reciprocal %159 {approx = true} : vector<8x1xf32> -> vector<8x1xf32>
    %167 = vector.broadcast %166 : vector<8x1xf32> to vector<8x8xf32>
    %168 = arith.mulf %165, %167 : vector<8x8xf32>
    %169 = arith.truncf %168 : vector<8x8xf32> to vector<8x8xbf16>
    %170 = tpu.concatenate %70, %103, %136, %169 in 1 : vector<8x8xbf16>, vector<8x8xbf16>, vector<8x8xbf16>, vector<8x8xbf16> -> vector<8x32xbf16>
    %c0_57 = arith.constant 0 : index
    %c0_58 = arith.constant 0 : index
    %171 = vector.load %arg20[%c0_57, %c0_58] : memref<8x32xbf16, #tpu.memory_space<vmem>>, vector<8x32xbf16>
    tpu.vector_store %arg20[%c0_57, %c0_58], %170 {strides = array<i32>} : memref<8x32xbf16, #tpu.memory_space<vmem>>, vector<8x32xbf16>,
    %c0_59 = arith.constant 0 : index
    %c0_60 = arith.constant 0 : index
    %172 = vector.load %arg20[%c0_59, %c0_60] : memref<8x32xbf16, #tpu.memory_space<vmem>>, vector<8x32xbf16>
    %c0_61 = arith.constant 0 : index
    %c0_62 = arith.constant 0 : index
    %173 = vector.load %arg9[%c0_61, %c0_62] : memref<32x32xbf16, #tpu.memory_space<vmem>>, vector<32x32xbf16>
    %cst_63 = arith.constant dense<0.000000e+00> : vector<8x32xf32>
    %174 = tpu.matmul %172, %173, %cst_63 {dimension_numbers = #tpu.dot_dimension_numbers<[1], [0], [0], [1], [0, 0, 1, 1], [], []>} : vector<8x32xbf16>, vector<32x32xbf16>, vector<8x32xf32> -> vector<8x32xf32>
    %c0_64 = arith.constant 0 : index
    %c0_65 = arith.constant 0 : index
    %175 = vector.load %arg10[%c0_64, %c0_65] : memref<1x32xf32, #tpu.memory_space<vmem>>, vector<1x32xf32>
    %176 = vector.broadcast %175 : vector<1x32xf32> to vector<8x32xf32>
    %177 = arith.addf %174, %176 : vector<8x32xf32>
    %c0_66 = arith.constant 0 : index
    %c0_67 = arith.constant 0 : index
    %c0_68 = arith.constant 0 : index
    %178 = vector.load %arg19[%c0_66, %c0_67, %c0_68] : memref<1x8x32xf32, #tpu.memory_space<vmem>>, vector<1x8x32xf32>
    %179 = vector.shape_cast %178 : vector<1x8x32xf32> to vector<8x32xf32>
    %180 = vector.shape_cast %177 : vector<8x32xf32> to vector<1x8x32xf32>
    tpu.vector_store %arg19[%c0_66, %c0_67, %c0_68], %180 {strides = array<i32>} : memref<1x8x32xf32, #tpu.memory_space<vmem>>, vector<1x8x32xf32>,
    %181 = arith.addf %1, %177 : vector<8x32xf32>
    %c0_69 = arith.constant 0 : index
    %c0_70 = arith.constant 0 : index
    %182 = vector.load %arg21[%c0_69, %c0_70] : memref<8x32xf32, #tpu.memory_space<vmem>>, vector<8x32xf32>
    tpu.vector_store %arg21[%c0_69, %c0_70], %181 {strides = array<i32>} : memref<8x32xf32, #tpu.memory_space<vmem>>, vector<8x32xf32>,
    %c0_i32_71 = arith.constant 0 : i32
    %c1_i32 = arith.constant 1 : i32
    %183 = arith.muli %c0_i32_71, %c1_i32 : i32
    %c0_i32_72 = arith.constant 0 : i32
    %184 = arith.addi %c0_i32_72, %183 : i32
    %c8_i32 = arith.constant 8 : i32
    %185 = arith.muli %184, %c8_i32 : i32
    %186 = tpu.assume_multiple %185, 8 : i32
    %187 = arith.index_cast %186 : i32 to index
    %c0_73 = arith.constant 0 : index
    %188 = vector.load %arg21[%187, %c0_73] : memref<8x32xf32, #tpu.memory_space<vmem>>, vector<8x32xf32>
    %c0_74 = arith.constant 0 : index
    %c0_75 = arith.constant 0 : index
    %189 = vector.load %arg11[%c0_74, %c0_75] : memref<1x32xf32, #tpu.memory_space<vmem>>, vector<1x32xf32>
    %190 = arith.mulf %188, %188 : vector<8x32xf32>
    %cst_76 = arith.constant dense<0.000000e+00> : vector<8xf32>
    %191 = vector.multi_reduction <add>, %190, %cst_76 [1] : vector<8x32xf32> to vector<8xf32>
    %192 = vector.shape_cast %191 : vector<8xf32> to vector<8x1xf32>
    %cst_77 = arith.constant 3.200000e+01 : f32
    %193 = vector.broadcast %cst_77 : f32 to vector<8x1xf32>
    %194 = arith.divf %192, %193 : vector<8x1xf32>
    %cst_78 = arith.constant 9.99999974E-6 : f32
    %195 = vector.broadcast %cst_78 : f32 to vector<8x1xf32>
    %196 = arith.addf %194, %195 : vector<8x1xf32>
    %197 = math.rsqrt %196 : vector<8x1xf32>
    %198 = vector.broadcast %197 : vector<8x1xf32> to vector<8x32xf32>
    %199 = arith.mulf %188, %198 : vector<8x32xf32>
    %200 = vector.broadcast %189 : vector<1x32xf32> to vector<8x32xf32>
    %201 = arith.mulf %200, %199 : vector<8x32xf32>
    %202 = arith.truncf %201 : vector<8x32xf32> to vector<8x32xbf16>
    %c0_79 = arith.constant 0 : index
    %c0_80 = arith.constant 0 : index
    %203 = vector.load %arg12[%c0_79, %c0_80] : memref<32x64xbf16, #tpu.memory_space<vmem>>, vector<32x64xbf16>
    %cst_81 = arith.constant dense<0.000000e+00> : vector<8x64xf32>
    %204 = tpu.matmul %202, %203, %cst_81 {dimension_numbers = #tpu.dot_dimension_numbers<[1], [0], [0], [1], [0, 0, 1, 1], [], []>} : vector<8x32xbf16>, vector<32x64xbf16>, vector<8x64xf32> -> vector<8x64xf32>
    %c0_82 = arith.constant 0 : index
    %c0_83 = arith.constant 0 : index
    %205 = vector.load %arg13[%c0_82, %c0_83] : memref<1x64xf32, #tpu.memory_space<vmem>>, vector<1x64xf32>
    %206 = vector.broadcast %205 : vector<1x64xf32> to vector<8x64xf32>
    %207 = arith.addf %204, %206 : vector<8x64xf32>
    %c0_84 = arith.constant 0 : index
    %c0_85 = arith.constant 0 : index
    %208 = vector.load %arg14[%c0_84, %c0_85] : memref<32x64xbf16, #tpu.memory_space<vmem>>, vector<32x64xbf16>
    %cst_86 = arith.constant dense<0.000000e+00> : vector<8x64xf32>
    %209 = tpu.matmul %202, %208, %cst_86 {dimension_numbers = #tpu.dot_dimension_numbers<[1], [0], [0], [1], [0, 0, 1, 1], [], []>} : vector<8x32xbf16>, vector<32x64xbf16>, vector<8x64xf32> -> vector<8x64xf32>
    %c0_87 = arith.constant 0 : index
    %c0_88 = arith.constant 0 : index
    %210 = vector.load %arg15[%c0_87, %c0_88] : memref<1x64xf32, #tpu.memory_space<vmem>>, vector<1x64xf32>
    %211 = vector.broadcast %210 : vector<1x64xf32> to vector<8x64xf32>
    %212 = arith.addf %209, %211 : vector<8x64xf32>
    %213 = arith.negf %207 : vector<8x64xf32>
    %214 = math.exp %213 : vector<8x64xf32>
    %cst_89 = arith.constant 1.000000e+00 : f32
    %215 = vector.broadcast %cst_89 : f32 to vector<8x64xf32>
    %216 = arith.addf %215, %214 : vector<8x64xf32>
    %217 = arith.divf %215, %216 : vector<8x64xf32>
    %218 = arith.mulf %207, %217 : vector<8x64xf32>
    %219 = arith.mulf %218, %212 : vector<8x64xf32>
    %220 = arith.truncf %219 : vector<8x64xf32> to vector<8x64xbf16>
    %c0_90 = arith.constant 0 : index
    %c0_91 = arith.constant 0 : index
    %221 = vector.load %arg16[%c0_90, %c0_91] : memref<64x32xbf16, #tpu.memory_space<vmem>>, vector<64x32xbf16>
    %cst_92 = arith.constant dense<0.000000e+00> : vector<8x32xf32>
    %222 = tpu.matmul %220, %221, %cst_92 {dimension_numbers = #tpu.dot_dimension_numbers<[1], [0], [0], [1], [0, 0, 1, 1], [], []>} : vector<8x64xbf16>, vector<64x32xbf16>, vector<8x32xf32> -> vector<8x32xf32>
    %c0_93 = arith.constant 0 : index
    %c0_94 = arith.constant 0 : index
    %223 = vector.load %arg17[%c0_93, %c0_94] : memref<1x32xf32, #tpu.memory_space<vmem>>, vector<1x32xf32>
    %224 = vector.broadcast %223 : vector<1x32xf32> to vector<8x32xf32>
    %225 = arith.addf %222, %224 : vector<8x32xf32>
    %226 = arith.addf %188, %225 : vector<8x32xf32>
    %c0_95 = arith.constant 0 : index
    %227 = arith.index_cast %186 : i32 to index
    %c0_96 = arith.constant 0 : index
    %228 = vector.load %arg18[%c0_95, %227, %c0_96] : memref<1x8x32xf32, #tpu.memory_space<vmem>>, vector<1x8x32xf32>
    %229 = vector.shape_cast %228 : vector<1x8x32xf32> to vector<8x32xf32>
    %230 = vector.shape_cast %226 : vector<8x32xf32> to vector<1x8x32xf32>
    tpu.vector_store %arg18[%c0_95, %227, %c0_96], %230 {strides = array<i32>} : memref<1x8x32xf32, #tpu.memory_space<vmem>>, vector<1x8x32xf32>,
    %c1_i32_97 = arith.constant 1 : i32
    return
  }
  func.func @transform_0(%arg0: i32) -> (i32, i32, i32) {
    %c0_i32 = arith.constant 0 : i32
    %c0_i32_0 = arith.constant 0 : i32
    %c0_i32_1 = arith.constant 0 : i32
    return %arg0, %c0_i32, %c0_i32_0 : i32, i32, i32
  }
  func.func @transform_1(%arg0: i32) -> (i32, i32) {
    %c0_i32 = arith.constant 0 : i32
    %c0_i32_0 = arith.constant 0 : i32
    %c0_i32_1 = arith.constant 0 : i32
    return %c0_i32, %c0_i32_0 : i32, i32
  }
  func.func @transform_2(%arg0: i32) -> (i32, i32) {
    %c0_i32 = arith.constant 0 : i32
    %c0_i32_0 = arith.constant 0 : i32
    %c0_i32_1 = arith.constant 0 : i32
    return %c0_i32, %c0_i32_0 : i32, i32
  }
  func.func @transform_3(%arg0: i32) -> (i32, i32) {
    %c0_i32 = arith.constant 0 : i32
    %c0_i32_0 = arith.constant 0 : i32
    %c0_i32_1 = arith.constant 0 : i32
    return %c0_i32, %c0_i32_0 : i32, i32
  }
  func.func @transform_4(%arg0: i32) -> (i32, i32) {
    %c0_i32 = arith.constant 0 : i32
    %c0_i32_0 = arith.constant 0 : i32
    %c0_i32_1 = arith.constant 0 : i32
    return %c0_i32, %c0_i32_0 : i32, i32
  }
  func.func @transform_5(%arg0: i32) -> (i32, i32) {
    %c0_i32 = arith.constant 0 : i32
    %c0_i32_0 = arith.constant 0 : i32
    %c0_i32_1 = arith.constant 0 : i32
    return %c0_i32, %c0_i32_0 : i32, i32
  }
  func.func @transform_6(%arg0: i32) -> (i32, i32) {
    %c0_i32 = arith.constant 0 : i32
    %c0_i32_0 = arith.constant 0 : i32
    %c0_i32_1 = arith.constant 0 : i32
    return %c0_i32, %c0_i32_0 : i32, i32
  }
  func.func @transform_7(%arg0: i32) -> (i32, i32) {
    %c0_i32 = arith.constant 0 : i32
    %c0_i32_0 = arith.constant 0 : i32
    %c0_i32_1 = arith.constant 0 : i32
    return %c0_i32, %c0_i32_0 : i32, i32
  }
  func.func @transform_8(%arg0: i32) -> (i32, i32) {
    %c0_i32 = arith.constant 0 : i32
    %c0_i32_0 = arith.constant 0 : i32
    %c0_i32_1 = arith.constant 0 : i32
    return %c0_i32, %c0_i32_0 : i32, i32
  }
  func.func @transform_9(%arg0: i32) -> (i32, i32) {
    %c0_i32 = arith.constant 0 : i32
    %c0_i32_0 = arith.constant 0 : i32
    %c0_i32_1 = arith.constant 0 : i32
    return %c0_i32, %c0_i32_0 : i32, i32
  }
  func.func @transform_10(%arg0: i32) -> (i32, i32) {
    %c0_i32 = arith.constant 0 : i32
    %c0_i32_0 = arith.constant 0 : i32
    %c0_i32_1 = arith.constant 0 : i32
    return %c0_i32, %c0_i32_0 : i32, i32
  }
  func.func @transform_11(%arg0: i32) -> (i32, i32) {
    %c0_i32 = arith.constant 0 : i32
    %c0_i32_0 = arith.constant 0 : i32
    %c0_i32_1 = arith.constant 0 : i32
    return %c0_i32, %c0_i32_0 : i32, i32
  }
  func.func @transform_12(%arg0: i32) -> (i32, i32) {
    %c0_i32 = arith.constant 0 : i32
    %c0_i32_0 = arith.constant 0 : i32
    %c0_i32_1 = arith.constant 0 : i32
    return %c0_i32, %c0_i32_0 : i32, i32
  }
  func.func @transform_13(%arg0: i32) -> (i32, i32) {
    %c0_i32 = arith.constant 0 : i32
    %c0_i32_0 = arith.constant 0 : i32
    %c0_i32_1 = arith.constant 0 : i32
    return %c0_i32, %c0_i32_0 : i32, i32
  }
  func.func @transform_14(%arg0: i32) -> (i32, i32) {
    %c0_i32 = arith.constant 0 : i32
    %c0_i32_0 = arith.constant 0 : i32
    %c0_i32_1 = arith.constant 0 : i32
    return %c0_i32, %c0_i32_0 : i32, i32
  }
  func.func @transform_15(%arg0: i32) -> (i32, i32) {
    %c0_i32 = arith.constant 0 : i32
    %c0_i32_0 = arith.constant 0 : i32
    %c0_i32_1 = arith.constant 0 : i32
    return %c0_i32, %c0_i32_0 : i32, i32
  }
  func.func @transform_16(%arg0: i32) -> (i32, i32) {
    %c0_i32 = arith.constant 0 : i32
    %c0_i32_0 = arith.constant 0 : i32
    %c0_i32_1 = arith.constant 0 : i32
    return %c0_i32, %c0_i32_0 : i32, i32
  }
  func.func @transform_17(%arg0: i32) -> (i32, i32, i32) {
    %c0_i32 = arith.constant 0 : i32
    %c0_i32_0 = arith.constant 0 : i32
    %c0_i32_1 = arith.constant 0 : i32
    return %arg0, %c0_i32, %c0_i32_0 : i32, i32, i32
  }
  func.func @transform_18(%arg0: i32) -> (i32, i32, i32) {
    %c0_i32 = arith.constant 0 : i32
    %c0_i32_0 = arith.constant 0 : i32
    %c0_i32_1 = arith.constant 0 : i32
    return %arg0, %c0_i32, %c0_i32_0 : i32, i32, i32
  }
}

module attributes {stable_mosaic.version = 11 : i64} {
  func.func @transformer_block_kernel(%arg0: i32, %arg1: memref<1x8x32xf32, #tpu.memory_space<vmem>>, %arg2: memref<1x32xf32, #tpu.memory_space<vmem>>, %arg3: memref<32x32xbf16, #tpu.memory_space<vmem>>, %arg4: memref<32x32xbf16, #tpu.memory_space<vmem>>, %arg5: memref<32x32xbf16, #tpu.memory_space<vmem>>, %arg6: memref<1x32xf32, #tpu.memory_space<vmem>>, %arg7: memref<1x32xf32, #tpu.memory_space<vmem>>, %arg8: memref<1x32xf32, #tpu.memory_space<vmem>>, %arg9: memref<32x32xbf16, #tpu.memory_space<vmem>>, %arg10: memref<1x32xf32, #tpu.memory_space<vmem>>, %arg11: memref<1x32xf32, #tpu.memory_space<vmem>>, %arg12: memref<32x64xbf16, #tpu.memory_space<vmem>>, %arg13: memref<1x64xf32, #tpu.memory_space<vmem>>, %arg14: memref<32x64xbf16, #tpu.memory_space<vmem>>, %arg15: memref<1x64xf32, #tpu.memory_space<vmem>>, %arg16: memref<64x32xbf16, #tpu.memory_space<vmem>>, %arg17: memref<1x32xf32, #tpu.memory_space<vmem>>, %arg18: memref<1x8x32xf32, #tpu.memory_space<vmem>>, %arg19: memref<1x8x32xf32, #tpu.memory_space<vmem>>, %arg20: memref<8x32xbf16, #tpu.memory_space<vmem>>, %arg21: memref<8x32xf32, #tpu.memory_space<vmem>>) attributes {dimension_semantics = [#tpu.dimension_semantics<parallel>], iteration_bounds = array<i64: 2>, scalar_prefetch = 0 : i64, scratch_operands = 2 : i64, tpu.core_type = #tpu.core_type<tc>, window_params = [{transform_indices = @transform_0, window_bounds = array<i64: 1, 8, 32>}, {pipeline_mode = #tpu.pipeline_mode<synchronous>, transform_indices = @transform_1, window_bounds = array<i64: 1, 32>}, {pipeline_mode = #tpu.pipeline_mode<synchronous>, transform_indices = @transform_2, window_bounds = array<i64: 32, 32>}, {pipeline_mode = #tpu.pipeline_mode<synchronous>, transform_indices = @transform_3, window_bounds = array<i64: 32, 32>}, {pipeline_mode = #tpu.pipeline_mode<synchronous>, transform_indices = @transform_4, window_bounds = array<i64: 32, 32>}, {pipeline_mode = #tpu.pipeline_mode<synchronous>, transform_indices = @transform_5, window_bounds = array<i64: 1, 32>}, {pipeline_mode = #tpu.pipeline_mode<synchronous>, transform_indices = @transform_6, window_bounds = array<i64: 1, 32>}, {pipeline_mode = #tpu.pipeline_mode<synchronous>, transform_indices = @transform_7, window_bounds = array<i64: 1, 32>}, {pipeline_mode = #tpu.pipeline_mode<synchronous>, transform_indices = @transform_8, window_bounds = array<i64: 32, 32>}, {pipeline_mode = #tpu.pipeline_mode<synchronous>, transform_indices = @transform_9, window_bounds = array<i64: 1, 32>}, {pipeline_mode = #tpu.pipeline_mode<synchronous>, transform_indices = @transform_10, window_bounds = array<i64: 1, 32>}, {pipeline_mode = #tpu.pipeline_mode<synchronous>, transform_indices = @transform_11, window_bounds = array<i64: 32, 64>}, {pipeline_mode = #tpu.pipeline_mode<synchronous>, transform_indices = @transform_12, window_bounds = array<i64: 1, 64>}, {pipeline_mode = #tpu.pipeline_mode<synchronous>, transform_indices = @transform_13, window_bounds = array<i64: 32, 64>}, {pipeline_mode = #tpu.pipeline_mode<synchronous>, transform_indices = @transform_14, window_bounds = array<i64: 1, 64>}, {pipeline_mode = #tpu.pipeline_mode<synchronous>, transform_indices = @transform_15, window_bounds = array<i64: 64, 32>}, {pipeline_mode = #tpu.pipeline_mode<synchronous>, transform_indices = @transform_16, window_bounds = array<i64: 1, 32>}, {transform_indices = @transform_17, window_bounds = array<i64: 1, 8, 32>}, {transform_indices = @transform_18, window_bounds = array<i64: 1, 8, 32>}]} {
    %c0 = arith.constant 0 : index
    %c0_0 = arith.constant 0 : index
    %c0_1 = arith.constant 0 : index
    %0 = vector.load %arg1[%c0, %c0_0, %c0_1] : memref<1x8x32xf32, #tpu.memory_space<vmem>>, vector<1x8x32xf32>
    %1 = vector.shape_cast %0 : vector<1x8x32xf32> to vector<8x32xf32>
    %c0_2 = arith.constant 0 : index
    %c0_3 = arith.constant 0 : index
    %2 = vector.load %arg2[%c0_2, %c0_3] : memref<1x32xf32, #tpu.memory_space<vmem>>, vector<1x32xf32>
    %3 = arith.mulf %1, %1 : vector<8x32xf32>
    %cst = arith.constant dense<0.000000e+00> : vector<8xf32>
    %4 = vector.multi_reduction <add>, %3, %cst [1] : vector<8x32xf32> to vector<8xf32>
    %5 = vector.shape_cast %4 : vector<8xf32> to vector<8x1xf32>
    %cst_4 = arith.constant 3.200000e+01 : f32
    %6 = vector.broadcast %cst_4 : f32 to vector<8x1xf32>
    %7 = arith.divf %5, %6 : vector<8x1xf32>
    %cst_5 = arith.constant 9.99999974E-6 : f32
    %8 = vector.broadcast %cst_5 : f32 to vector<8x1xf32>
    %9 = arith.addf %7, %8 : vector<8x1xf32>
    %10 = math.rsqrt %9 : vector<8x1xf32>
    %11 = vector.broadcast %10 : vector<8x1xf32> to vector<8x32xf32>
    %12 = arith.mulf %1, %11 : vector<8x32xf32>
    %13 = vector.broadcast %2 : vector<1x32xf32> to vector<8x32xf32>
    %14 = arith.mulf %13, %12 : vector<8x32xf32>
    %15 = arith.truncf %14 : vector<8x32xf32> to vector<8x32xbf16>
    %c0_6 = arith.constant 0 : index
    %c0_7 = arith.constant 0 : index
    %16 = vector.load %arg3[%c0_6, %c0_7] : memref<32x32xbf16, #tpu.memory_space<vmem>>, vector<32x32xbf16>
    %cst_8 = arith.constant dense<0.000000e+00> : vector<8x32xf32>
    %17 = tpu.matmul %15, %16, %cst_8 {dimension_numbers = #tpu.dot_dimension_numbers<[1], [0], [0], [1], [0, 0, 1, 1], [], []>} : vector<8x32xbf16>, vector<32x32xbf16>, vector<8x32xf32> -> vector<8x32xf32>
    %c0_9 = arith.constant 0 : index
    %c0_10 = arith.constant 0 : index
    %18 = vector.load %arg6[%c0_9, %c0_10] : memref<1x32xf32, #tpu.memory_space<vmem>>, vector<1x32xf32>
    %19 = vector.broadcast %18 : vector<1x32xf32> to vector<8x32xf32>
    %20 = arith.addf %17, %19 : vector<8x32xf32>
    %cst_11 = arith.constant 0.353553385 : f32
    %21 = vector.broadcast %cst_11 : f32 to vector<8x32xf32>
    %22 = arith.mulf %20, %21 : vector<8x32xf32>
    %23 = arith.truncf %22 : vector<8x32xf32> to vector<8x32xbf16>
    %c0_12 = arith.constant 0 : index
    %c0_13 = arith.constant 0 : index
    %24 = vector.load %arg4[%c0_12, %c0_13] : memref<32x32xbf16, #tpu.memory_space<vmem>>, vector<32x32xbf16>
    %cst_14 = arith.constant dense<0.000000e+00> : vector<8x32xf32>
    %25 = tpu.matmul %15, %24, %cst_14 {dimension_numbers = #tpu.dot_dimension_numbers<[1], [0], [0], [1], [0, 0, 1, 1], [], []>} : vector<8x32xbf16>, vector<32x32xbf16>, vector<8x32xf32> -> vector<8x32xf32>
    %c0_15 = arith.constant 0 : index
    %c0_16 = arith.constant 0 : index
    %26 = vector.load %arg7[%c0_15, %c0_16] : memref<1x32xf32, #tpu.memory_space<vmem>>, vector<1x32xf32>
    %27 = vector.broadcast %26 : vector<1x32xf32> to vector<8x32xf32>
    %28 = arith.addf %25, %27 : vector<8x32xf32>
    %29 = arith.truncf %28 : vector<8x32xf32> to vector<8x32xbf16>
    %c0_17 = arith.constant 0 : index
    %c0_18 = arith.constant 0 : index
    %30 = vector.load %arg5[%c0_17, %c0_18] : memref<32x32xbf16, #tpu.memory_space<vmem>>, vector<32x32xbf16>
    %cst_19 = arith.constant dense<0.000000e+00> : vector<8x32xf32>
    %31 = tpu.matmul %15, %30, %cst_19 {dimension_numbers = #tpu.dot_dimension_numbers<[1], [0], [0], [1], [0, 0, 1, 1], [], []>} : vector<8x32xbf16>, vector<32x32xbf16>, vector<8x32xf32> -> vector<8x32xf32>
    %c0_20 = arith.constant 0 : index
    %c0_21 = arith.constant 0 : index
    %32 = vector.load %arg8[%c0_20, %c0_21] : memref<1x32xf32, #tpu.memory_space<vmem>>, vector<1x32xf32>
    %33 = vector.broadcast %32 : vector<1x32xf32> to vector<8x32xf32>
    %34 = arith.addf %31, %33 : vector<8x32xf32>
    %35 = arith.truncf %34 : vector<8x32xf32> to vector<8x32xbf16>
    %36 = tpu.iota {dimensions = array<i32: 0>} : vector<8x8xi32>
    %37 = tpu.iota {dimensions = array<i32: 1>} : vector<8x8xi32>
    %38 = vector.extract_strided_slice %23 {offsets = [0, 0], sizes = [8, 8], strides = [1, 1]} : vector<8x32xbf16> to vector<8x8xbf16>
    %cst_22 = arith.constant -1.000000e+30 : f32
    %39 = vector.broadcast %cst_22 : f32 to vector<8x1xf32>
    %cst_23 = arith.constant 0.000000e+00 : f32
    %40 = vector.broadcast %cst_23 : f32 to vector<8x1xf32>
    %cst_24 = arith.constant 0.000000e+00 : f32
    %41 = vector.broadcast %cst_24 : f32 to vector<8x8xf32>
    %42 = vector.extract_strided_slice %29 {offsets = [0, 0], sizes = [8, 8], strides = [1, 1]} : vector<8x32xbf16> to vector<8x8xbf16>
    %cst_25 = arith.constant dense<0.000000e+00> : vector<8x8xf32>
    %43 = tpu.matmul %38, %42, %cst_25 {dimension_numbers = #tpu.dot_dimension_numbers<[1], [1], [0], [0], [0, 0, 1, 0], [], []>} : vector<8x8xbf16>, vector<8x8xbf16>, vector<8x8xf32> -> vector<8x8xf32>
    %c0_i32 = arith.constant 0 : i32
    %44 = vector.broadcast %c0_i32 : i32 to vector<8x8xi32>
    %45 = arith.addi %37, %44 : vector<8x8xi32>
    %46 = arith.cmpi sge, %36, %45 : vector<8x8xi32>
    %cst_26 = arith.constant 0xFF800000 : f32
    %47 = vector.broadcast %cst_26 : f32 to vector<8x8xf32>
    %48 = arith.select %46, %43, %47 : vector<8x8xi1>, vector<8x8xf32>
    %cst_27 = arith.constant dense<0xFF800000> : vector<8xf32>
    %49 = vector.multi_reduction <maximumf>, %48, %cst_27 [1] : vector<8x8xf32> to vector<8xf32>
    %50 = vector.shape_cast %49 : vector<8xf32> to vector<8x1xf32>
    %51 = arith.maximumf %39, %50 : vector<8x1xf32>
    %52 = arith.subf %39, %51 : vector<8x1xf32>
    %53 = math.exp %52 : vector<8x1xf32>
    %54 = vector.broadcast %51 : vector<8x1xf32> to vector<8x8xf32>
    %55 = arith.subf %48, %54 : vector<8x8xf32>
    %56 = math.exp %55 : vector<8x8xf32>
    %57 = arith.mulf %53, %40 : vector<8x1xf32>
    %cst_28 = arith.constant dense<0.000000e+00> : vector<8xf32>
    %58 = vector.multi_reduction <add>, %56, %cst_28 [1] : vector<8x8xf32> to vector<8xf32>
    %59 = vector.shape_cast %58 : vector<8xf32> to vector<8x1xf32>
    %60 = arith.addf %57, %59 : vector<8x1xf32>
    %61 = vector.broadcast %53 : vector<8x1xf32> to vector<8x8xf32>
    %62 = arith.mulf %61, %41 : vector<8x8xf32>
    %63 = arith.truncf %56 : vector<8x8xf32> to vector<8x8xbf16>
    %64 = vector.extract_strided_slice %35 {offsets = [0, 0], sizes = [8, 8], strides = [1, 1]} : vector<8x32xbf16> to vector<8x8xbf16>
    %cst_29 = arith.constant dense<0.000000e+00> : vector<8x8xf32>
    %65 = tpu.matmul %63, %64, %cst_29 {dimension_numbers = #tpu.dot_dimension_numbers<[1], [0], [0], [1], [0, 0, 1, 1], [], []>} : vector<8x8xbf16>, vector<8x8xbf16>, vector<8x8xf32> -> vector<8x8xf32>
    %66 = arith.addf %62, %65 : vector<8x8xf32>
    %67 = tpu.reciprocal %60 {approx = true} : vector<8x1xf32> -> vector<8x1xf32>
    %68 = vector.broadcast %67 : vector<8x1xf32> to vector<8x8xf32>
    %69 = arith.mulf %66, %68 : vector<8x8xf32>
    %70 = arith.truncf %69 : vector<8x8xf32> to vector<8x8xbf16>
    %71 = vector.extract_strided_slice %23 {offsets = [0, 8], sizes = [8, 8], strides = [1, 1]} : vector<8x32xbf16> to vector<8x8xbf16>
    %cst_30 = arith.constant -1.000000e+30 : f32
    %72 = vector.broadcast %cst_30 : f32 to vector<8x1xf32>
    %cst_31 = arith.constant 0.000000e+00 : f32
    %73 = vector.broadcast %cst_31 : f32 to vector<8x1xf32>
    %cst_32 = arith.constant 0.000000e+00 : f32
    %74 = vector.broadcast %cst_32 : f32 to vector<8x8xf32>
    %75 = vector.extract_strided_slice %29 {offsets = [0, 8], sizes = [8, 8], strides = [1, 1]} : vector<8x32xbf16> to vector<8x8xbf16>
    %cst_33 = arith.constant dense<0.000000e+00> : vector<8x8xf32>
    %76 = tpu.matmul %71, %75, %cst_33 {dimension_numbers = #tpu.dot_dimension_numbers<[1], [1], [0], [0], [0, 0, 1, 0], [], []>} : vector<8x8xbf16>, vector<8x8xbf16>, vector<8x8xf32> -> vector<8x8xf32>
    %c0_i32_34 = arith.constant 0 : i32
    %77 = vector.broadcast %c0_i32_34 : i32 to vector<8x8xi32>
    %78 = arith.addi %37, %77 : vector<8x8xi32>
    %79 = arith.cmpi sge, %36, %78 : vector<8x8xi32>
    %cst_35 = arith.constant 0xFF800000 : f32
    %80 = vector.broadcast %cst_35 : f32 to vector<8x8xf32>
    %81 = arith.select %79, %76, %80 : vector<8x8xi1>, vector<8x8xf32>
    %cst_36 = arith.constant dense<0xFF800000> : vector<8xf32>
    %82 = vector.multi_reduction <maximumf>, %81, %cst_36 [1] : vector<8x8xf32> to vector<8xf32>
    %83 = vector.shape_cast %82 : vector<8xf32> to vector<8x1xf32>
    %84 = arith.maximumf %72, %83 : vector<8x1xf32>
    %85 = arith.subf %72, %84 : vector<8x1xf32>
    %86 = math.exp %85 : vector<8x1xf32>
    %87 = vector.broadcast %84 : vector<8x1xf32> to vector<8x8xf32>
    %88 = arith.subf %81, %87 : vector<8x8xf32>
    %89 = math.exp %88 : vector<8x8xf32>
    %90 = arith.mulf %86, %73 : vector<8x1xf32>
    %cst_37 = arith.constant dense<0.000000e+00> : vector<8xf32>
    %91 = vector.multi_reduction <add>, %89, %cst_37 [1] : vector<8x8xf32> to vector<8xf32>
    %92 = vector.shape_cast %91 : vector<8xf32> to vector<8x1xf32>
    %93 = arith.addf %90, %92 : vector<8x1xf32>
    %94 = vector.broadcast %86 : vector<8x1xf32> to vector<8x8xf32>
    %95 = arith.mulf %94, %74 : vector<8x8xf32>
    %96 = arith.truncf %89 : vector<8x8xf32> to vector<8x8xbf16>
    %97 = vector.extract_strided_slice %35 {offsets = [0, 8], sizes = [8, 8], strides = [1, 1]} : vector<8x32xbf16> to vector<8x8xbf16>
    %cst_38 = arith.constant dense<0.000000e+00> : vector<8x8xf32>
    %98 = tpu.matmul %96, %97, %cst_38 {dimension_numbers = #tpu.dot_dimension_numbers<[1], [0], [0], [1], [0, 0, 1, 1], [], []>} : vector<8x8xbf16>, vector<8x8xbf16>, vector<8x8xf32> -> vector<8x8xf32>
    %99 = arith.addf %95, %98 : vector<8x8xf32>
    %100 = tpu.reciprocal %93 {approx = true} : vector<8x1xf32> -> vector<8x1xf32>
    %101 = vector.broadcast %100 : vector<8x1xf32> to vector<8x8xf32>
    %102 = arith.mulf %99, %101 : vector<8x8xf32>
    %103 = arith.truncf %102 : vector<8x8xf32> to vector<8x8xbf16>
    %104 = vector.extract_strided_slice %23 {offsets = [0, 16], sizes = [8, 8], strides = [1, 1]} : vector<8x32xbf16> to vector<8x8xbf16>
    %cst_39 = arith.constant -1.000000e+30 : f32
    %105 = vector.broadcast %cst_39 : f32 to vector<8x1xf32>
    %cst_40 = arith.constant 0.000000e+00 : f32
    %106 = vector.broadcast %cst_40 : f32 to vector<8x1xf32>
    %cst_41 = arith.constant 0.000000e+00 : f32
    %107 = vector.broadcast %cst_41 : f32 to vector<8x8xf32>
    %108 = vector.extract_strided_slice %29 {offsets = [0, 16], sizes = [8, 8], strides = [1, 1]} : vector<8x32xbf16> to vector<8x8xbf16>
    %cst_42 = arith.constant dense<0.000000e+00> : vector<8x8xf32>
    %109 = tpu.matmul %104, %108, %cst_42 {dimension_numbers = #tpu.dot_dimension_numbers<[1], [1], [0], [0], [0, 0, 1, 0], [], []>} : vector<8x8xbf16>, vector<8x8xbf16>, vector<8x8xf32> -> vector<8x8xf32>
    %c0_i32_43 = arith.constant 0 : i32
    %110 = vector.broadcast %c0_i32_43 : i32 to vector<8x8xi32>
    %111 = arith.addi %37, %110 : vector<8x8xi32>
    %112 = arith.cmpi sge, %36, %111 : vector<8x8xi32>
    %cst_44 = arith.constant 0xFF800000 : f32
    %113 = vector.broadcast %cst_44 : f32 to vector<8x8xf32>
    %114 = arith.select %112, %109, %113 : vector<8x8xi1>, vector<8x8xf32>
    %cst_45 = arith.constant dense<0xFF800000> : vector<8xf32>
    %115 = vector.multi_reduction <maximumf>, %114, %cst_45 [1] : vector<8x8xf32> to vector<8xf32>
    %116 = vector.shape_cast %115 : vector<8xf32> to vector<8x1xf32>
    %117 = arith.maximumf %105, %116 : vector<8x1xf32>
    %118 = arith.subf %105, %117 : vector<8x1xf32>
    %119 = math.exp %118 : vector<8x1xf32>
    %120 = vector.broadcast %117 : vector<8x1xf32> to vector<8x8xf32>
    %121 = arith.subf %114, %120 : vector<8x8xf32>
    %122 = math.exp %121 : vector<8x8xf32>
    %123 = arith.mulf %119, %106 : vector<8x1xf32>
    %cst_46 = arith.constant dense<0.000000e+00> : vector<8xf32>
    %124 = vector.multi_reduction <add>, %122, %cst_46 [1] : vector<8x8xf32> to vector<8xf32>
    %125 = vector.shape_cast %124 : vector<8xf32> to vector<8x1xf32>
    %126 = arith.addf %123, %125 : vector<8x1xf32>
    %127 = vector.broadcast %119 : vector<8x1xf32> to vector<8x8xf32>
    %128 = arith.mulf %127, %107 : vector<8x8xf32>
    %129 = arith.truncf %122 : vector<8x8xf32> to vector<8x8xbf16>
    %130 = vector.extract_strided_slice %35 {offsets = [0, 16], sizes = [8, 8], strides = [1, 1]} : vector<8x32xbf16> to vector<8x8xbf16>
    %cst_47 = arith.constant dense<0.000000e+00> : vector<8x8xf32>
    %131 = tpu.matmul %129, %130, %cst_47 {dimension_numbers = #tpu.dot_dimension_numbers<[1], [0], [0], [1], [0, 0, 1, 1], [], []>} : vector<8x8xbf16>, vector<8x8xbf16>, vector<8x8xf32> -> vector<8x8xf32>
    %132 = arith.addf %128, %131 : vector<8x8xf32>
    %133 = tpu.reciprocal %126 {approx = true} : vector<8x1xf32> -> vector<8x1xf32>
    %134 = vector.broadcast %133 : vector<8x1xf32> to vector<8x8xf32>
    %135 = arith.mulf %132, %134 : vector<8x8xf32>
    %136 = arith.truncf %135 : vector<8x8xf32> to vector<8x8xbf16>
    %137 = vector.extract_strided_slice %23 {offsets = [0, 24], sizes = [8, 8], strides = [1, 1]} : vector<8x32xbf16> to vector<8x8xbf16>
    %cst_48 = arith.constant -1.000000e+30 : f32
    %138 = vector.broadcast %cst_48 : f32 to vector<8x1xf32>
    %cst_49 = arith.constant 0.000000e+00 : f32
    %139 = vector.broadcast %cst_49 : f32 to vector<8x1xf32>
    %cst_50 = arith.constant 0.000000e+00 : f32
    %140 = vector.broadcast %cst_50 : f32 to vector<8x8xf32>
    %141 = vector.extract_strided_slice %29 {offsets = [0, 24], sizes = [8, 8], strides = [1, 1]} : vector<8x32xbf16> to vector<8x8xbf16>
    %cst_51 = arith.constant dense<0.000000e+00> : vector<8x8xf32>
    %142 = tpu.matmul %137, %141, %cst_51 {dimension_numbers = #tpu.dot_dimension_numbers<[1], [1], [0], [0], [0, 0, 1, 0], [], []>} : vector<8x8xbf16>, vector<8x8xbf16>, vector<8x8xf32> -> vector<8x8xf32>
    %c0_i32_52 = arith.constant 0 : i32
    %143 = vector.broadcast %c0_i32_52 : i32 to vector<8x8xi32>
    %144 = arith.addi %37, %143 : vector<8x8xi32>
    %145 = arith.cmpi sge, %36, %144 : vector<8x8xi32>
    %cst_53 = arith.constant 0xFF800000 : f32
    %146 = vector.broadcast %cst_53 : f32 to vector<8x8xf32>
    %147 = arith.select %145, %142, %146 : vector<8x8xi1>, vector<8x8xf32>
    %cst_54 = arith.constant dense<0xFF800000> : vector<8xf32>
    %148 = vector.multi_reduction <maximumf>, %147, %cst_54 [1] : vector<8x8xf32> to vector<8xf32>
    %149 = vector.shape_cast %148 : vector<8xf32> to vector<8x1xf32>
    %150 = arith.maximumf %138, %149 : vector<8x1xf32>
    %151 = arith.subf %138, %150 : vector<8x1xf32>
    %152 = math.exp %151 : vector<8x1xf32>
    %153 = vector.broadcast %150 : vector<8x1xf32> to vector<8x8xf32>
    %154 = arith.subf %147, %153 : vector<8x8xf32>
    %155 = math.exp %154 : vector<8x8xf32>
    %156 = arith.mulf %152, %139 : vector<8x1xf32>
    %cst_55 = arith.constant dense<0.000000e+00> : vector<8xf32>
    %157 = vector.multi_reduction <add>, %155, %cst_55 [1] : vector<8x8xf32> to vector<8xf32>
    %158 = vector.shape_cast %157 : vector<8xf32> to vector<8x1xf32>
    %159 = arith.addf %156, %158 : vector<8x1xf32>
    %160 = vector.broadcast %152 : vector<8x1xf32> to vector<8x8xf32>
    %161 = arith.mulf %160, %140 : vector<8x8xf32>
    %162 = arith.truncf %155 : vector<8x8xf32> to vector<8x8xbf16>
    %163 = vector.extract_strided_slice %35 {offsets = [0, 24], sizes = [8, 8], strides = [1, 1]} : vector<8x32xbf16> to vector<8x8xbf16>
    %cst_56 = arith.constant dense<0.000000e+00> : vector<8x8xf32>
    %164 = tpu.matmul %162, %163, %cst_56 {dimension_numbers = #tpu.dot_dimension_numbers<[1], [0], [0], [1], [0, 0, 1, 1], [], []>} : vector<8x8xbf16>, vector<8x8xbf16>, vector<8x8xf32> -> vector<8x8xf32>
    %165 = arith.addf %161, %164 : vector<8x8xf32>
    %166 = tpu.reciprocal %159 {approx = true} : vector<8x1xf32> -> vector<8x1xf32>
    %167 = vector.broadcast %166 : vector<8x1xf32> to vector<8x8xf32>
    %168 = arith.mulf %165, %167 : vector<8x8xf32>
    %169 = arith.truncf %168 : vector<8x8xf32> to vector<8x8xbf16>
    %170 = tpu.concatenate %70, %103, %136, %169 in 1 : vector<8x8xbf16>, vector<8x8xbf16>, vector<8x8xbf16>, vector<8x8xbf16> -> vector<8x32xbf16>
    %c0_57 = arith.constant 0 : index
    %c0_58 = arith.constant 0 : index
    %171 = vector.load %arg20[%c0_57, %c0_58] : memref<8x32xbf16, #tpu.memory_space<vmem>>, vector<8x32xbf16>
    tpu.vector_store %arg20[%c0_57, %c0_58], %170 {strides = array<i32>} : memref<8x32xbf16, #tpu.memory_space<vmem>>, vector<8x32xbf16>,
    %c0_59 = arith.constant 0 : index
    %c0_60 = arith.constant 0 : index
    %172 = vector.load %arg20[%c0_59, %c0_60] : memref<8x32xbf16, #tpu.memory_space<vmem>>, vector<8x32xbf16>
    %c0_61 = arith.constant 0 : index
    %c0_62 = arith.constant 0 : index
    %173 = vector.load %arg9[%c0_61, %c0_62] : memref<32x32xbf16, #tpu.memory_space<vmem>>, vector<32x32xbf16>
    %cst_63 = arith.constant dense<0.000000e+00> : vector<8x32xf32>
    %174 = tpu.matmul %172, %173, %cst_63 {dimension_numbers = #tpu.dot_dimension_numbers<[1], [0], [0], [1], [0, 0, 1, 1], [], []>} : vector<8x32xbf16>, vector<32x32xbf16>, vector<8x32xf32> -> vector<8x32xf32>
    %c0_64 = arith.constant 0 : index
    %c0_65 = arith.constant 0 : index
    %175 = vector.load %arg10[%c0_64, %c0_65] : memref<1x32xf32, #tpu.memory_space<vmem>>, vector<1x32xf32>
    %176 = vector.broadcast %175 : vector<1x32xf32> to vector<8x32xf32>
    %177 = arith.addf %174, %176 : vector<8x32xf32>
    %c0_66 = arith.constant 0 : index
    %c0_67 = arith.constant 0 : index
    %c0_68 = arith.constant 0 : index
    %178 = vector.load %arg19[%c0_66, %c0_67, %c0_68] : memref<1x8x32xf32, #tpu.memory_space<vmem>>, vector<1x8x32xf32>
    %179 = vector.shape_cast %178 : vector<1x8x32xf32> to vector<8x32xf32>
    %180 = vector.shape_cast %177 : vector<8x32xf32> to vector<1x8x32xf32>
    tpu.vector_store %arg19[%c0_66, %c0_67, %c0_68], %180 {strides = array<i32>} : memref<1x8x32xf32, #tpu.memory_space<vmem>>, vector<1x8x32xf32>,
    %181 = arith.addf %1, %177 : vector<8x32xf32>
    %c0_69 = arith.constant 0 : index
    %c0_70 = arith.constant 0 : index
    %182 = vector.load %arg21[%c0_69, %c0_70] : memref<8x32xf32, #tpu.memory_space<vmem>>, vector<8x32xf32>
    tpu.vector_store %arg21[%c0_69, %c0_70], %181 {strides = array<i32>} : memref<8x32xf32, #tpu.memory_space<vmem>>, vector<8x32xf32>,
    %c0_i32_71 = arith.constant 0 : i32
    %c1_i32 = arith.constant 1 : i32
    %183 = arith.muli %c0_i32_71, %c1_i32 : i32
    %c0_i32_72 = arith.constant 0 : i32
    %184 = arith.addi %c0_i32_72, %183 : i32
    %c8_i32 = arith.constant 8 : i32
    %185 = arith.muli %184, %c8_i32 : i32
    %186 = tpu.assume_multiple %185, 8 : i32
    %187 = arith.index_cast %186 : i32 to index
    %c0_73 = arith.constant 0 : index
    %188 = vector.load %arg21[%187, %c0_73] : memref<8x32xf32, #tpu.memory_space<vmem>>, vector<8x32xf32>
    %c0_74 = arith.constant 0 : index
    %c0_75 = arith.constant 0 : index
    %189 = vector.load %arg11[%c0_74, %c0_75] : memref<1x32xf32, #tpu.memory_space<vmem>>, vector<1x32xf32>
    %190 = arith.mulf %188, %188 : vector<8x32xf32>
    %cst_76 = arith.constant dense<0.000000e+00> : vector<8xf32>
    %191 = vector.multi_reduction <add>, %190, %cst_76 [1] : vector<8x32xf32> to vector<8xf32>
    %192 = vector.shape_cast %191 : vector<8xf32> to vector<8x1xf32>
    %cst_77 = arith.constant 3.200000e+01 : f32
    %193 = vector.broadcast %cst_77 : f32 to vector<8x1xf32>
    %194 = arith.divf %192, %193 : vector<8x1xf32>
    %cst_78 = arith.constant 9.99999974E-6 : f32
    %195 = vector.broadcast %cst_78 : f32 to vector<8x1xf32>
    %196 = arith.addf %194, %195 : vector<8x1xf32>
    %197 = math.rsqrt %196 : vector<8x1xf32>
    %198 = vector.broadcast %197 : vector<8x1xf32> to vector<8x32xf32>
    %199 = arith.mulf %188, %198 : vector<8x32xf32>
    %200 = vector.broadcast %189 : vector<1x32xf32> to vector<8x32xf32>
    %201 = arith.mulf %200, %199 : vector<8x32xf32>
    %202 = arith.truncf %201 : vector<8x32xf32> to vector<8x32xbf16>
    %c0_79 = arith.constant 0 : index
    %c0_80 = arith.constant 0 : index
    %203 = vector.load %arg12[%c0_79, %c0_80] : memref<32x64xbf16, #tpu.memory_space<vmem>>, vector<32x64xbf16>
    %cst_81 = arith.constant dense<0.000000e+00> : vector<8x64xf32>
    %204 = tpu.matmul %202, %203, %cst_81 {dimension_numbers = #tpu.dot_dimension_numbers<[1], [0], [0], [1], [0, 0, 1, 1], [], []>} : vector<8x32xbf16>, vector<32x64xbf16>, vector<8x64xf32> -> vector<8x64xf32>
    %c0_82 = arith.constant 0 : index
    %c0_83 = arith.constant 0 : index
    %205 = vector.load %arg13[%c0_82, %c0_83] : memref<1x64xf32, #tpu.memory_space<vmem>>, vector<1x64xf32>
    %206 = vector.broadcast %205 : vector<1x64xf32> to vector<8x64xf32>
    %207 = arith.addf %204, %206 : vector<8x64xf32>
    %c0_84 = arith.constant 0 : index
    %c0_85 = arith.constant 0 : index
    %208 = vector.load %arg14[%c0_84, %c0_85] : memref<32x64xbf16, #tpu.memory_space<vmem>>, vector<32x64xbf16>
    %cst_86 = arith.constant dense<0.000000e+00> : vector<8x64xf32>
    %209 = tpu.matmul %202, %208, %cst_86 {dimension_numbers = #tpu.dot_dimension_numbers<[1], [0], [0], [1], [0, 0, 1, 1], [], []>} : vector<8x32xbf16>, vector<32x64xbf16>, vector<8x64xf32> -> vector<8x64xf32>
    %c0_87 = arith.constant 0 : index
    %c0_88 = arith.constant 0 : index
    %210 = vector.load %arg15[%c0_87, %c0_88] : memref<1x64xf32, #tpu.memory_space<vmem>>, vector<1x64xf32>
    %211 = vector.broadcast %210 : vector<1x64xf32> to vector<8x64xf32>
    %212 = arith.addf %209, %211 : vector<8x64xf32>
    %213 = arith.negf %207 : vector<8x64xf32>
    %214 = math.exp %213 : vector<8x64xf32>
    %cst_89 = arith.constant 1.000000e+00 : f32
    %215 = vector.broadcast %cst_89 : f32 to vector<8x64xf32>
    %216 = arith.addf %215, %214 : vector<8x64xf32>
    %217 = arith.divf %215, %216 : vector<8x64xf32>
    %218 = arith.mulf %207, %217 : vector<8x64xf32>
    %219 = arith.mulf %218, %212 : vector<8x64xf32>
    %220 = arith.truncf %219 : vector<8x64xf32> to vector<8x64xbf16>
    %c0_90 = arith.constant 0 : index
    %c0_91 = arith.constant 0 : index
    %221 = vector.load %arg16[%c0_90, %c0_91] : memref<64x32xbf16, #tpu.memory_space<vmem>>, vector<64x32xbf16>
    %cst_92 = arith.constant dense<0.000000e+00> : vector<8x32xf32>
    %222 = tpu.matmul %220, %221, %cst_92 {dimension_numbers = #tpu.dot_dimension_numbers<[1], [0], [0], [1], [0, 0, 1, 1], [], []>} : vector<8x64xbf16>, vector<64x32xbf16>, vector<8x32xf32> -> vector<8x32xf32>
    %c0_93 = arith.constant 0 : index
    %c0_94 = arith.constant 0 : index
    %223 = vector.load %arg17[%c0_93, %c0_94] : memref<1x32xf32, #tpu.memory_space<vmem>>, vector<1x32xf32>
    %224 = vector.broadcast %223 : vector<1x32xf32> to vector<8x32xf32>
    %225 = arith.addf %222, %224 : vector<8x32xf32>
    %226 = arith.addf %188, %225 : vector<8x32xf32>
    %c0_95 = arith.constant 0 : index
    %227 = arith.index_cast %186 : i32 to index
    %c0_96 = arith.constant 0 : index
    %228 = vector.load %arg18[%c0_95, %227, %c0_96] : memref<1x8x32xf32, #tpu.memory_space<vmem>>, vector<1x8x32xf32>
    %229 = vector.shape_cast %228 : vector<1x8x32xf32> to vector<8x32xf32>
    %230 = vector.shape_cast %226 : vector<8x32xf32> to vector<1x8x32xf32>
    tpu.vector_store %arg18[%c0_95, %227, %c0_96], %230 {strides = array<i32>} : memref<1x8x32xf32, #tpu.memory_space<vmem>>, vector<1x8x32xf32>,
    %c1_i32_97 = arith.constant 1 : i32
    return
  }
  func.func @transform_0(%arg0: i32) -> (i32, i32, i32) {
    %c0_i32 = arith.constant 0 : i32
    %c0_i32_0 = arith.constant 0 : i32
    %c0_i32_1 = arith.constant 0 : i32
    return %arg0, %c0_i32, %c0_i32_0 : i32, i32, i32
  }
  func.func @transform_1(%arg0: i32) -> (i32, i32) {
    %c0_i32 = arith.constant 0 : i32
    %c0_i32_0 = arith.constant 0 : i32
    %c0_i32_1 = arith.constant 0 : i32
    return %c0_i32, %c0_i32_0 : i32, i32
  }
  func.func @transform_2(%arg0: i32) -> (i32, i32) {
    %c0_i32 = arith.constant 0 : i32
    %c0_i32_0 = arith.constant 0 : i32
    %c0_i32_1 = arith.constant 0 : i32
    return %c0_i32, %c0_i32_0 : i32, i32
  }
  func.func @transform_3(%arg0: i32) -> (i32, i32) {
    %c0_i32 = arith.constant 0 : i32
    %c0_i32_0 = arith.constant 0 : i32
    %c0_i32_1 = arith.constant 0 : i32
    return %c0_i32, %c0_i32_0 : i32, i32
  }
  func.func @transform_4(%arg0: i32) -> (i32, i32) {
    %c0_i32 = arith.constant 0 : i32
    %c0_i32_0 = arith.constant 0 : i32
    %c0_i32_1 = arith.constant 0 : i32
    return %c0_i32, %c0_i32_0 : i32, i32
  }
  func.func @transform_5(%arg0: i32) -> (i32, i32) {
    %c0_i32 = arith.constant 0 : i32
    %c0_i32_0 = arith.constant 0 : i32
    %c0_i32_1 = arith.constant 0 : i32
    return %c0_i32, %c0_i32_0 : i32, i32
  }
  func.func @transform_6(%arg0: i32) -> (i32, i32) {
    %c0_i32 = arith.constant 0 : i32
    %c0_i32_0 = arith.constant 0 : i32
    %c0_i32_1 = arith.constant 0 : i32
    return %c0_i32, %c0_i32_0 : i32, i32
  }
  func.func @transform_7(%arg0: i32) -> (i32, i32) {
    %c0_i32 = arith.constant 0 : i32
    %c0_i32_0 = arith.constant 0 : i32
    %c0_i32_1 = arith.constant 0 : i32
    return %c0_i32, %c0_i32_0 : i32, i32
  }
  func.func @transform_8(%arg0: i32) -> (i32, i32) {
    %c0_i32 = arith.constant 0 : i32
    %c0_i32_0 = arith.constant 0 : i32
    %c0_i32_1 = arith.constant 0 : i32
    return %c0_i32, %c0_i32_0 : i32, i32
  }
  func.func @transform_9(%arg0: i32) -> (i32, i32) {
    %c0_i32 = arith.constant 0 : i32
    %c0_i32_0 = arith.constant 0 : i32
    %c0_i32_1 = arith.constant 0 : i32
    return %c0_i32, %c0_i32_0 : i32, i32
  }
  func.func @transform_10(%arg0: i32) -> (i32, i32) {
    %c0_i32 = arith.constant 0 : i32
    %c0_i32_0 = arith.constant 0 : i32
    %c0_i32_1 = arith.constant 0 : i32
    return %c0_i32, %c0_i32_0 : i32, i32
  }
  func.func @transform_11(%arg0: i32) -> (i32, i32) {
    %c0_i32 = arith.constant 0 : i32
    %c0_i32_0 = arith.constant 0 : i32
    %c0_i32_1 = arith.constant 0 : i32
    return %c0_i32, %c0_i32_0 : i32, i32
  }
  func.func @transform_12(%arg0: i32) -> (i32, i32) {
    %c0_i32 = arith.constant 0 : i32
    %c0_i32_0 = arith.constant 0 : i32
    %c0_i32_1 = arith.constant 0 : i32
    return %c0_i32, %c0_i32_0 : i32, i32
  }
  func.func @transform_13(%arg0: i32) -> (i32, i32) {
    %c0_i32 = arith.constant 0 : i32
    %c0_i32_0 = arith.constant 0 : i32
    %c0_i32_1 = arith.constant 0 : i32
    return %c0_i32, %c0_i32_0 : i32, i32
  }
  func.func @transform_14(%arg0: i32) -> (i32, i32) {
    %c0_i32 = arith.constant 0 : i32
    %c0_i32_0 = arith.constant 0 : i32
    %c0_i32_1 = arith.constant 0 : i32
    return %c0_i32, %c0_i32_0 : i32, i32
  }
  func.func @transform_15(%arg0: i32) -> (i32, i32) {
    %c0_i32 = arith.constant 0 : i32
    %c0_i32_0 = arith.constant 0 : i32
    %c0_i32_1 = arith.constant 0 : i32
    return %c0_i32, %c0_i32_0 : i32, i32
  }
  func.func @transform_16(%arg0: i32) -> (i32, i32) {
    %c0_i32 = arith.constant 0 : i32
    %c0_i32_0 = arith.constant 0 : i32
    %c0_i32_1 = arith.constant 0 : i32
    return %c0_i32, %c0_i32_0 : i32, i32
  }
  func.func @transform_17(%arg0: i32) -> (i32, i32, i32) {
    %c0_i32 = arith.constant 0 : i32
    %c0_i32_0 = arith.constant 0 : i32
    %c0_i32_1 = arith.constant 0 : i32
    return %arg0, %c0_i32, %c0_i32_0 : i32, i32, i32
  }
  func.func @transform_18(%arg0: i32) -> (i32, i32, i32) {
    %c0_i32 = arith.constant 0 : i32
    %c0_i32_0 = arith.constant 0 : i32
    %c0_i32_1 = arith.constant 0 : i32
    return %arg0, %c0_i32, %c0_i32_0 : i32, i32, i32
  }
}

</mosaic_0001>

<bundles_post_ra>
// kernel: tpu_custom_call.1
= control target key start
LH: loop header
LB: loop body
LE: loop exit
PB: predicated region body
PF: predicated region fallthrough
CT: control target
= control target key end

     0   :  { %s3307_s0 = inlined_call_operand.vmem [shape: f32[2,8,32], index: 0, kind: input, shape index: {}]   ;;  %s3308_s1 = inlined_call_operand.vmem [shape: f32[1,32], index: 1, kind: input, shape index: {}]   ;;  %s3309_s2 = inlined_call_operand.vmem [shape: bf16[32,32], index: 2, kind: input, shape index: {}]   ;;  %s3310_s3 = inlined_call_operand.vmem [shape: bf16[32,32], index: 3, kind: input, shape index: {}]   ;;  %s3311_s4 = inlined_call_operand.hbm [shape: bf16[32,32], index: 4, kind: input, shape index: {}]   ;;  %s3312_s5 = inlined_call_operand.hbm [shape: f32[1,32], index: 5, kind: input, shape index: {}]   ;;  %s3313_s6 = inlined_call_operand.hbm [shape: f32[1,32], index: 6, kind: input, shape index: {}]   ;;  %s3314_s7 = inlined_call_operand.hbm [shape: f32[1,32], index: 7, kind: input, shape index: {}]   ;;  %s3315_s8 = inlined_call_operand.hbm [shape: bf16[32,32], index: 8, kind: input, shape index: {}]   ;;  %s3316_s9 = inlined_call_operand.hbm [shape: f32[1,32], index: 9, kind: input, shape index: {}]   ;;  %s3317_s10 = inlined_call_operand.hbm [shape: f32[1,32], index: 10, kind: input, shape index: {}]   ;;  %s3318_s11 = inlined_call_operand.vmem [shape: bf16[32,64], index: 11, kind: input, shape index: {}]   ;;  %s3319_s12 = inlined_call_operand.hbm [shape: f32[1,64], index: 12, kind: input, shape index: {}]   ;;  %s3320_s13 = inlined_call_operand.vmem [shape: bf16[32,64], index: 13, kind: input, shape index: {}]   ;;  %s3321_s14 = inlined_call_operand.vmem [shape: f32[1,64], index: 14, kind: input, shape index: {}]   ;;  %s3322_s15 = inlined_call_operand.vmem [shape: bf16[64,32], index: 15, kind: input, shape index: {}]   ;;  %s3323_s16 = inlined_call_operand.vmem [shape: f32[1,32], index: 16, kind: input, shape index: {}]   ;;  %s3324_s17 = inlined_call_operand.hbm [shape: f32[2,8,32], index: 17, kind: output, shape index: {0}]   ;;  %s3325_s18 = inlined_call_operand.hbm [shape: f32[2,8,32], index: 18, kind: output, shape index: {1}]  }
   0x1   :  { %3338 = sst [smem:[#allocation34_spill]] %s3307_s0 }
   0x2   :  { %3339 = sst [smem:[#allocation35_spill]] %s3308_s1 }
   0x3   :  { %3340 = sst [smem:[#allocation36_spill]] %s3309_s2 }
   0x4   :  { %3341 = sst [smem:[#allocation37_spill]] %s3312_s5 }
   0x5   :  { %3342 = sst [smem:[#allocation38_spill]] %s3314_s7 }
   0x6   :  { %3343 = sst [smem:[#allocation39_spill]] %s3323_s16 }
   0x7   :  { %3344 = sst [smem:[#allocation40_spill]] %s3324_s17 }
   0x8   :  { %3345 = sst [smem:[#allocation41_spill]] %s3325_s18 }
   0x9   :  { %24 = vsyncpa [#allocation5], 0 }
   0xa   :  { %25 = vsyncpa [#allocation8], 0 }
   0xb   :  { %26 = vsyncpa [#allocation11], 0 }
   0xc   :  { %27 = vsyncpa [#allocation14], 0 }
   0xd   :  { %28 = vsyncpa [#allocation17], 0 }
   0xe   :  { %29 = vsyncpa [#allocation6], 0 }
   0xf   :  { %31 = vsyncpa [#allocation6 + $0x1], 0 }
  0x10   :  { %32 = vsyncpa [#allocation20], 0 }
  0x11   :  { %34 = vsyncpa [#allocation20 + $0x1], 0  ;;  %s2773_s27 = smov 0   ;;  %s2775_s28 = smov 0  }
  0x12   :  { %s2777_s29 = smov 0   ;;  %s2779_s30 = smov 0  }
  0x13 LB: > { %3346 = sst [smem:[#allocation28_spill]] %s2644_s27  ;;  %s2794_s0 = sadd.s32 4294967295, %s2656_s30   ;;  %s2656_s30 = sphi %s2779_s30, %s3381_s30   ;;  %s2652_s29 = sphi %s2777_s29, %s3383_s29   ;;  %s2648_s28 = sphi %s2775_s28, %s3385_s28   ;;  %s2644_s27 = sphi %s2773_s27, %s3384_s27  }
  0x14   : > { %3347 = sst [smem:[#allocation29_spill]] %s2652_s29  ;;  %s1918_s19 = sadd.s32 4294967294, %s2656_s30  }
  0x15   : > { %3348 = sst [smem:[#allocation30_spill]] %s2656_s30  ;;  %s2798_s1 = sadd.s32 1, %s2656_s30  }
  0x16   : > { %3349 = sst [smem:[#allocation31_spill]] %s2798_s1  ;;  %s409_s20 = sadd.s32 1, %s2652_s29 }
  0x17   : > { %s406_s21 = ssub.s32 %s2656_s30, %s2798_s1  ;;  %p419_p0 = scmp.ne.s32.totalorder %s2652_s29, %s2648_s28 }
  0x18   : > { %p407_p1 = scmp.eq.s32.totalorder %s406_s21, 0  ;;  %p420_p2 = scmp.eq.s32.totalorder %s2794_s0, 1 }
  0x19   : > { %p425_p3 = scmp.ne.s32.totalorder %s2648_s28, %s2644_s27  ;;  %p426_p4 = scmp.eq.s32.totalorder %s1918_s19, 1 }
  0x1a   : > { %s2809_s22 = scalar_select %p407_p1, %s2652_s29, %s409_s20  }
  0x1b   : > { %p2811_p5 = por %p420_p2, %p419_p0  ;;  %p2815_p6 = por %p426_p4, %p425_p3 }
  0x1c   : > { %3350 = sst [smem:[#allocation32_spill]] %s2809_s22  ;;  %p1919_p7 = scmp.ge.s32.totalorder %s2656_s30, 1 }
  0x1d   : > { %s3351_s2 = scalar_select %p2811_p5, 1, 0 }
  0x1e   : > { %s3352_s23 = scalar_select %p2815_p6, 1, 0 }
  0x1f   : > { %p459_p8 = scmp.lt.s32.totalorder %s2656_s30, 3  ;;  %p3334_p9 = scmp.eq.s32.totalorder %s2794_s0, 0 }
  0x20   : > { %3353 = sst [smem:[#allocation33_spill]] %s3352_s23  ;;  %s2658_s25 = smov [#allocation7]  }
  0x21   : > { %p2822_p10 = pnand %p1919_p7, %p459_p8  ;;  %s494_s26 = sshll.u32 %s2658_s25, 4  ;;  %s495_s26 = int_to_ptr.vmem [resolvable:$true] %s494_s26 }
  0x22   : > { %s2659_s19 = smov [#allocation10]   ;;  %s2660_s22 = smov [#allocation13]  }
  0x23   : > { %s3354_s24 = scalar_select %p2822_p10, 1, 0 }
  0x24   : > { %p2171_p11 = pneg %p2822_p10  ;;  %s516_s20 = sshll.u32 %s2659_s19, 4  ;;  %s2834_s20 = int_to_ptr.vmem [resolvable:$true] %s516_s20 }
  0x25   : > { %s540_s29 = sshll.u32 %s2660_s22, 4  ;;  %s3356_s5 = sld [smem:[#allocation37_spill]]  ;;  %s2836_s29 = int_to_ptr.vmem [resolvable:$true] %s540_s29 }
  0x26   : > { %p2830_p12 = pnand %p3334_p9, %p2171_p11 }
  0x28   : > { %p2846_p0 = pneg %p2830_p12 }
  0x2b   : > { %s2318_s25 = scalar_lea.hbm %s3356_s5, 16 }
  0x2c   : > { %p2319_p13 = scmp.ne.s32.totalorder %s3356_s5, %s2318_s25  ;;  %p2325_p3 = scmp.lt.u32.totalorder %s2318_s25, %s3356_s5 }
  0x2e   : > { %p2321_p1 = pnand %p2846_p0, %p2319_p13 }
  0x30   : > { %p2322_p2 = pneg %p2321_p1 }
  0x32   : > { %p2327_p4 = pnand %p2325_p3, %p2322_p2 }
  0x34   : > { %2330 = shalt.err (!%p2327_p4)
}
  0x35   : > { %s2331_s1 = scalar_lea.vmem %s495_s26, 16  ;;  %s2338_s27 = scalar_lea.vmem %s495_s26, 32 }
  0x36   : > { %p2332_p7 = scmp.ne.s32.totalorder %s495_s26, %s2331_s1  ;;  %p2339_p9 = scmp.lt.s32.totalorder %s495_s26, %s495_s26 }
  0x37   : > { %p2340_p6 = scmp.lt.s32.totalorder %s2338_s27, %s2331_s1 }
  0x38   : > { %p2334_p8 = pnand %p2332_p7, %p2846_p0 }
  0x39   : > { %p2341_p5 = por %p2340_p6, %p2339_p9 }
  0x3a   : > { %p2335_p11 = pneg %p2334_p8 }
  0x3c   : > { %p2342_p10 = pnand %p2341_p5, %p2335_p11 }
  0x3e   : > { %2345 = shalt.err (!%p2342_p10)
}
  0x3f   : > { %2177 = dma.hbm_to_vmem [thread:$0]  (!%p2830_p12), %s3356_s5, 16, %s495_s26, [#allocation8]  }
  0x40   : > { %s3358_s7 = sld [smem:[#allocation38_spill]] }
  0x46   : > { %s2346_s22 = scalar_lea.hbm %s3358_s7, 16 }
  0x47   : > { %p2347_p13 = scmp.ne.s32.totalorder %s3358_s7, %s2346_s22  ;;  %p2353_p5 = scmp.lt.u32.totalorder %s2346_s22, %s3358_s7 }
  0x49   : > { %p2349_p1 = pnand %p2347_p13, %p2846_p0 }
  0x4b   : > { %p2350_p6 = pneg %p2349_p1 }
  0x4d   : > { %p2355_p9 = pnand %p2353_p5, %p2350_p6 }
  0x4f   : > { %2358 = shalt.err (!%p2355_p9)
}
  0x50   : > { %s2359_s26 = scalar_lea.vmem %s2834_s20, 16  ;;  %s2366_s16 = scalar_lea.vmem %s2834_s20, 32 }
  0x51   : > { %p2360_p10 = scmp.ne.s32.totalorder %s2834_s20, %s2359_s26  ;;  %p2367_p4 = scmp.lt.s32.totalorder %s2834_s20, %s2834_s20 }
  0x52   : > { %p2368_p7 = scmp.lt.s32.totalorder %s2366_s16, %s2359_s26 }
  0x53   : > { %p2362_p2 = pnand %p2360_p10, %p2846_p0 }
  0x54   : > { %p2369_p8 = por %p2368_p7, %p2367_p4 }
  0x55   : > { %p2363_p3 = pneg %p2362_p2 }
  0x57   : > { %p2370_p11 = pnand %p2369_p8, %p2363_p3 }
  0x59   : > { %2373 = shalt.err (!%p2370_p11)
}
  0x5a   : > { %2183 = dma.hbm_to_vmem [thread:$0]  (!%p2830_p12), %s3358_s7, 16, %s2834_s20, [#allocation11]  }
  0x5b   : > { %s2374_s25 = scalar_lea.hbm %s3316_s9, 16 }
  0x5c   : > { %p2375_p13 = scmp.ne.s32.totalorder %s3316_s9, %s2374_s25  ;;  %p2381_p5 = scmp.lt.u32.totalorder %s2374_s25, %s3316_s9 }
  0x5e   : > { %p2377_p1 = pnand %p2375_p13, %p2846_p0 }
  0x60   : > { %p2378_p6 = pneg %p2377_p1 }
  0x62   : > { %p2383_p9 = pnand %p2381_p5, %p2378_p6 }
  0x64   : > { %2386 = shalt.err (!%p2383_p9)
}
  0x65   : > { %s2387_s20 = scalar_lea.vmem %s2836_s29, 16  ;;  %s2394_s16 = scalar_lea.vmem %s2836_s29, 32 }
  0x66   : > { %p2388_p10 = scmp.ne.s32.totalorder %s2836_s29, %s2387_s20  ;;  %p2395_p4 = scmp.lt.s32.totalorder %s2836_s29, %s2836_s29 }
  0x67   : > { %p2396_p7 = scmp.lt.s32.totalorder %s2394_s16, %s2387_s20 }
  0x68   : > { %p2390_p2 = pnand %p2388_p10, %p2846_p0 }
  0x69   : > { %p2397_p8 = por %p2396_p7, %p2395_p4 }
  0x6a   : > { %p2391_p3 = pneg %p2390_p2 }
  0x6c   : > { %p2398_p11 = pnand %p2397_p8, %p2391_p3 }
  0x6e   : > { %2401 = shalt.err (!%p2398_p11)
}
  0x6f   : > { %2189 = dma.hbm_to_vmem [thread:$0]  (!%p2830_p12), %s3316_s9, 16, %s2836_s29, [#allocation14]  }
  0x70   : > { %s2661_s23 = smov [#allocation4]   ;;  %s2402_s1 = scalar_lea.hbm %s3311_s4, 256 }
  0x71   : > { %s480_s17 = sshll.u32 %s2661_s23, 4  ;;  %p2403_p13 = scmp.ne.s32.totalorder %s3311_s4, %s2402_s1  ;;  %s481_s17 = int_to_ptr.vmem [resolvable:$true] %s480_s17 }
  0x72   : > { %p2409_p5 = scmp.lt.u32.totalorder %s2402_s1, %s3311_s4 }
  0x73   : > { %p2405_p1 = pnand %p2403_p13, %p2846_p0 }
  0x75   : > { %p2406_p6 = pneg %p2405_p1 }
  0x77   : > { %p2411_p9 = pnand %p2409_p5, %p2406_p6 }
  0x79   : > { %2414 = shalt.err (!%p2411_p9)
}
  0x7a   : > { %s2415_s29 = scalar_lea.vmem %s481_s17, 256  ;;  %p2423_p4 = scmp.lt.s32.totalorder %s481_s17, %s481_s17 }
  0x7b   : > { %p2416_p10 = scmp.ne.s32.totalorder %s481_s17, %s2415_s29  ;;  %p2424_p7 = scmp.lt.s32.totalorder %s2415_s29, %s2415_s29 }
  0x7d   : > { %p2418_p2 = pnand %p2416_p10, %p2846_p0  ;;  %p2425_p8 = por %p2424_p7, %p2423_p4 }
  0x7f   : > { %p2419_p3 = pneg %p2418_p2 }
  0x81   : > { %p2426_p11 = pnand %p2425_p8, %p2419_p3 }
  0x83   : > { %2429 = shalt.err (!%p2426_p11)
}
  0x84   : > { %s2662_s18 = smov 64   ;;  %s2663_s30 = smov 4  }
  0x85   : > { %2174 = dma.hbm_to_vmem [thread:$0]  (!%p2830_p12), %s3311_s4, 256, %s481_s17, [#allocation5], %s2662_s18, %s2662_s18, %s2663_s30  }
  0x86   : > { %s2664_s22 = smov [#allocation9]   ;;  %s2665_s27 = smov [#allocation12]  }
  0x87   : > { %s505_s1 = sshll.u32 %s2664_s22, 4  ;;  %s526_s26 = sshll.u32 %s2665_s27, 4  ;;  %s506_s1 = int_to_ptr.vmem [resolvable:$true] %s505_s1  ;;  %s2931_s26 = int_to_ptr.vmem [resolvable:$true] %s526_s26 }
  0x88   : > { %s2430_s29 = scalar_lea.hbm %s3313_s6, 16 }
  0x89   : > { %p2431_p13 = scmp.ne.s32.totalorder %s3313_s6, %s2430_s29  ;;  %p2437_p5 = scmp.lt.u32.totalorder %s2430_s29, %s3313_s6 }
  0x8b   : > { %p2433_p1 = pnand %p2431_p13, %p2846_p0 }
  0x8d   : > { %p2434_p6 = pneg %p2433_p1 }
  0x8f   : > { %p2439_p9 = pnand %p2437_p5, %p2434_p6 }
  0x91   : > { %2442 = shalt.err (!%p2439_p9)
}
  0x92   : > { %s2443_s25 = scalar_lea.vmem %s506_s1, 16  ;;  %s2450_s22 = scalar_lea.vmem %s506_s1, 32 }
  0x93   : > { %p2444_p10 = scmp.ne.s32.totalorder %s506_s1, %s2443_s25  ;;  %p2451_p4 = scmp.lt.s32.totalorder %s506_s1, %s506_s1 }
  0x94   : > { %p2452_p7 = scmp.lt.s32.totalorder %s2450_s22, %s2443_s25 }
  0x95   : > { %p2446_p2 = pnand %p2444_p10, %p2846_p0 }
  0x96   : > { %p2453_p8 = por %p2452_p7, %p2451_p4 }
  0x97   : > { %p2447_p3 = pneg %p2446_p2 }
  0x99   : > { %p2454_p11 = pnand %p2453_p8, %p2447_p3 }
  0x9b   : > { %2457 = shalt.err (!%p2454_p11)
}
  0x9c   : > { %2180 = dma.hbm_to_vmem [thread:$0]  (!%p2830_p12), %s3313_s6, 16, %s506_s1, [#allocation8]  }
  0x9d   : > { %s2458_s16 = scalar_lea.hbm %s3315_s8, 256 }
  0x9e   : > { %p2459_p13 = scmp.ne.s32.totalorder %s3315_s8, %s2458_s16  ;;  %p2465_p5 = scmp.lt.u32.totalorder %s2458_s16, %s3315_s8 }
  0xa0   : > { %p2461_p1 = pnand %p2459_p13, %p2846_p0 }
  0xa2   : > { %p2462_p6 = pneg %p2461_p1 }
  0xa4   : > { %p2467_p9 = pnand %p2465_p5, %p2462_p6 }
  0xa6   : > { %2470 = shalt.err (!%p2467_p9)
}
  0xa7   : > { %s2471_s1 = scalar_lea.vmem %s2931_s26, 256  ;;  %p2479_p4 = scmp.lt.s32.totalorder %s2931_s26, %s2931_s26 }
  0xa8   : > { %p2472_p10 = scmp.ne.s32.totalorder %s2931_s26, %s2471_s1  ;;  %p2480_p7 = scmp.lt.s32.totalorder %s2471_s1, %s2471_s1 }
  0xaa   : > { %p2474_p2 = pnand %p2472_p10, %p2846_p0  ;;  %p2481_p8 = por %p2480_p7, %p2479_p4 }
  0xac   : > { %p2475_p3 = pneg %p2474_p2 }
  0xae   : > { %p2482_p11 = pnand %p2481_p8, %p2475_p3 }
  0xb0   : > { %2485 = shalt.err (!%p2482_p11)
}
  0xb1   : > { %2186 = dma.hbm_to_vmem [thread:$0]  (!%p2830_p12), %s3315_s8, 256, %s2931_s26, [#allocation11], %s2662_s18, %s2662_s18, %s2663_s30  }
  0xb2   : > { %s2666_s7 = smov [#allocation15]   ;;  %s2667_s20 = smov [#allocation16]  }
  0xb3   : > { %s551_s27 = sshll.u32 %s2666_s7, 4  ;;  %s565_s16 = sshll.u32 %s2667_s20, 4  ;;  %s552_s27 = int_to_ptr.vmem [resolvable:$true] %s551_s27  ;;  %s2977_s16 = int_to_ptr.vmem [resolvable:$true] %s565_s16 }
  0xb4   : > { %s2486_s17 = scalar_lea.hbm %s3317_s10, 16 }
  0xb5   : > { %p2487_p13 = scmp.ne.s32.totalorder %s3317_s10, %s2486_s17  ;;  %p2493_p5 = scmp.lt.u32.totalorder %s2486_s17, %s3317_s10 }
  0xb7   : > { %p2489_p1 = pnand %p2487_p13, %p2846_p0 }
  0xb9   : > { %p2490_p6 = pneg %p2489_p1 }
  0xbb   : > { %p2495_p9 = pnand %p2493_p5, %p2490_p6 }
  0xbd   : > { %2498 = shalt.err (!%p2495_p9)
}
  0xbe   : > { %s2499_s30 = scalar_lea.vmem %s552_s27, 16  ;;  %s2506_s26 = scalar_lea.vmem %s552_s27, 32 }
  0xbf   : > { %p2500_p10 = scmp.ne.s32.totalorder %s552_s27, %s2499_s30  ;;  %p2507_p4 = scmp.lt.s32.totalorder %s552_s27, %s552_s27 }
  0xc0   : > { %p2508_p7 = scmp.lt.s32.totalorder %s2506_s26, %s2499_s30 }
  0xc1   : > { %p2502_p2 = pnand %p2500_p10, %p2846_p0 }
  0xc2   : > { %p2509_p8 = por %p2508_p7, %p2507_p4 }
  0xc3   : > { %p2503_p3 = pneg %p2502_p2 }
  0xc5   : > { %p2510_p11 = pnand %p2509_p8, %p2503_p3 }
  0xc7   : > { %2513 = shalt.err (!%p2510_p11)
}
  0xc8   : > { %2192 = dma.hbm_to_vmem [thread:$0]  (!%p2830_p12), %s3317_s10, 16, %s552_s27, [#allocation14]  }
  0xc9   : > { %s2514_s23 = scalar_lea.hbm %s3319_s12, 16 }
  0xca   : > { %p2515_p13 = scmp.ne.s32.totalorder %s3319_s12, %s2514_s23  ;;  %p2521_p5 = scmp.lt.u32.totalorder %s2514_s23, %s3319_s12 }
  0xcc   : > { %p2517_p1 = pnand %p2515_p13, %p2846_p0 }
  0xce   : > { %p2518_p6 = pneg %p2517_p1 }
  0xd0   : > { %p2523_p9 = pnand %p2521_p5, %p2518_p6 }
  0xd2   : > { %2526 = shalt.err (!%p2523_p9)
}
  0xd3   : > { %s2527_s27 = scalar_lea.vmem %s2977_s16, 16  ;;  %s2534_s18 = scalar_lea.vmem %s2977_s16, 32 }
  0xd4   : > { %p2528_p10 = scmp.ne.s32.totalorder %s2977_s16, %s2527_s27  ;;  %p2535_p4 = scmp.lt.s32.totalorder %s2977_s16, %s2977_s16 }
  0xd5   : > { %p2536_p7 = scmp.lt.s32.totalorder %s2534_s18, %s2527_s27 }
  0xd6   : > { %p2530_p2 = pnand %p2528_p10, %p2846_p0 }
  0xd7   : > { %p2537_p8 = por %p2536_p7, %p2535_p4 }
  0xd8   : > { %p2531_p3 = pneg %p2530_p2 }
  0xda   : > { %p2538_p11 = pnand %p2537_p8, %p2531_p3 }
  0xdc   : > { %2541 = shalt.err (!%p2538_p11)
}
  0xdd   : > { %2195 = dma.hbm_to_vmem [thread:$0]  (!%p2830_p12), %s3319_s12, 16, %s2977_s16, [#allocation17]  }
  0xde   : > { %p3359_p13 = scmp.ne.s32.totalorder %s3354_s24, 0 }
  0xdf   : > { %p3360_p0 = scmp.eq.s32.totalorder (!%p3359_p13), %s2794_s0, 0 }
  0xe0   : > { %597 = sbr.rel (%p3359_p13) target bundleno = 2364 (0x93c), region = 88 }
  0xe7   : > { %2615 = dma.done.wait (%p3360_p0), [#allocation5], 256   ;;  %p3361_p1 = pmov %p3360_p0 }
  0xe8   : > { %p3362_p6 = pmov %p3360_p0 }
  0xe9   : > { %2617 = vsyncadd (%p3361_p1), [#allocation5], 4294967040 }
  0xea   : > { %2619 = dma.done.wait (%p3362_p6), [#allocation8], 32   ;;  %p3363_p5 = pmov %p3360_p0 }
  0xeb   : > { %p3364_p9 = pmov %p3360_p0 }
  0xec   : > { %2621 = vsyncadd (%p3363_p5), [#allocation8], 4294967264 }
  0xed   : > { %2623 = dma.done.wait (%p3364_p9), [#allocation11], 272   ;;  %p3365_p12 = pmov %p3360_p0 }
  0xee   : > { %p3366_p10 = pmov %p3360_p0 }
  0xef   : > { %2625 = vsyncadd (%p3365_p12), [#allocation11], 4294967024 }
  0xf0   : > { %2627 = dma.done.wait (%p3366_p10), [#allocation14], 32   ;;  %p3367_p2 = pmov %p3360_p0 }
  0xf1   : > { %p3368_p3 = pmov %p3360_p0 }
  0xf2   : > { %2629 = vsyncadd (%p3367_p2), [#allocation14], 4294967264 }
  0xf3   : > { %2631 = dma.done.wait (%p3368_p3), [#allocation17], 16   ;;  %p3369_p4 = pmov %p3360_p0 }
  0xf4   : > { %p683_p7 = scmp.lt.s32.totalorder %s2794_s0, 1  ;;  %s3370_s5 = sld [smem:[#allocation34_spill]]  ;;  %vm691_vm0 = vcmask 261120   ;;  %v2271_v4 = vld [vmem:[#allocation4] sm:$0xff]   ;;  %v2668_v5 = vmov 0.0   ;;  %v2273_v7 = vld [vmem:[#allocation4 + $0x8] sm:$0xff]   ;;  %v904_v51 = vlaneseq }
  0xf5   : > { %2633 = vsyncadd (%p3369_p4), [#allocation17], 4294967280  ;;  %s3371_s23 = sld [smem:[#allocation36_spill]]  ;;  %2027 = vmatprep.subr.bf16.mxu1 %v2668_v5  ;;  %2043 = vmatprep.subr.bf16.mxu0 %v2668_v5  ;;  %vm2669_vm1 = vmmov 0   ;;  %s3372_s27 = sld [smem:[#allocation35_spill]]  ;;  %v2274_v15 = vld [vmem:[%s3310_s3] sm:$0xff]  }
  0xf6   : > { %s684_s24 = scalar_select %p683_p7, %s2794_s0, 1  ;;  %2044 = vmatpush3.bf16.msra.mxu0 %v2271_v4  ;;  %2031 = vmatprep.mubr.msk.bf16.mxu1 %vm2669_vm1, %v2668_v5  ;;  %v2275_v17 = vld [vmem:[%s3310_s3 + $0x8] sm:$0xff]   ;;  %v1942_v18 = vld [vmem:[#allocation7] ss:$0 sm:$0xff]  ;;  %v1950_v19 = vld [vmem:[#allocation10] ss:$0 sm:$0xff] }
  0xf7   : > { %2045 = vmatprep.subr.bf16.mxu0 %v2668_v5  ;;  %2047 = vmatprep.mubr.msk.bf16.mxu0 %vm2669_vm1, %v2668_v5  ;;  %vm976_vm2 = vcmask 1043456   ;;  %v1946_v34 = vld [vmem:[#allocation9] ss:$0 sm:$0xff]  ;;  %vm908_vm3 = vcmask 64512   ;;  %s2671_s19 = smov 112   ;;  %s2672_s16 = smov 104  }
  0xf8   : > { %s1940_s21 = sshll.u32 %s684_s24, 3  ;;  %v905_v52 = vshrl.u32 %v904_v51, 7  ;;  %v907_v53 = vand.u32 127, %v904_v51  ;;  %s2675_s20 = smov 24   ;;  %vm1396_vm5 = vcmask 130048   ;;  %vm1399_vm6 = vcmask 195584  }
  0xf9   : > { %vm1403_vm7 = vcmask 257024   ;;  %s3171_s29 = sand.u32 1, %s2648_s28   ;;  %vm1670_vm8 = vcmask 523264   ;;  %s1984_s26 = sshll.u32 %s2794_s0, 7 }
  0xfa   : > { %s686_s7 = scalar_lea.vmem %s3370_s5, %s1940_s21  ;;  %2046 = vmatpush3.bf16.msra.mxu0 %v2273_v7  ;;  %s2670_s21 = smov 120   ;;  %vm955_vm4 = vcmp.ge.s32.totalorder %v905_v52, %v907_v53 }
  0xfb   : > { %v3048_v0 = vld [vmem:[%s686_s7] sm:$0xff]  ;;  %v2272_v6 = vld [vmem:[%s3371_s23 + $0x8] sm:$0xff]   ;;  %2057 = vmatprep.subr.bf16.mxu0 %v2668_v5  ;;  %s2673_s5 = smov 8   ;;  %s2674_s7 = smov 16  }
  0xfc   : > { %v690_v1 = vmul.f32 %v3048_v0, %v3048_v0  ;;  %v2270_v3 = vld [vmem:[%s3371_s23] sm:$0xff]   ;;  %s1938_s17 = sshll.u32 %s3171_s29, 3  ;;  %p3374_p11 = scmp.ne.s32.totalorder %s3351_s2, 0 }
  0xfd   : > { %2028 = vmatpush3.bf16.msra.mxu1 %v2270_v3  ;;  %v1941_v12 = vld [vmem:[%s3372_s27] ss:$0 sm:$0xff]  ;;  %s3177_s25 = scalar_lea.vmem [#allocation19], %s1938_s17  ;;  %s2676_s1 = smov [#allocation19]  }
  0xfe   : > { %v692_v2 = vsel %vm691_vm0, %v690_v1, 0.0  ;;  %2029 = vmatprep.subr.bf16.mxu1 %v2668_v5  ;;  %s2546_s22 = sshll.u32 %s2676_s1, 4  ;;  %s2547_s22 = int_to_ptr.vmem [resolvable:$false] %s2546_s22 }
  0xff   : > { %693 = vadd.xlane.f32.xlu0 %v692_v2  ;;  %s2548_s27 = scalar_lea.vmem %s2547_s22, 256 }
 0x101   : > { %2030 = vmatpush3.bf16.msra.mxu1 %v2272_v6 }
 0x102   : > { %2035 = vmatprep.subr.bf16.mxu1 %v2668_v5 }
 0x18c   : > { %v694_v8 = vpop.xlane.xlu0 %693 }
 0x18d   : > { %v696_v9 = vmul.f32 0.03125, %v694_v8 }
 0x18f   : > { %v697_v10 = vadd.f32 1e-05, %v696_v9 }
 0x191   : > { %2286 = vrsqrt.f32 %v697_v10 }
 0x19b   : > { %v2287_v11 = vpop.eup %2286 }
 0x19c   : > { %v699_v13 = vmul.f32 %v2287_v11, %v3048_v0 }
 0x19e   : > { %v706_v14 = vmul.f32 %v1941_v12, %v699_v13 }
 0x1a0   : > { %v707_v16 = vpack.c.bf16 %v706_v14, %v706_v14 }
 0x1a2   : > { %2032 = vmatmul.mubr.msk.bf16.vlgmr.msra.gmra.mrb[0].mxu1 %vm691_vm0, %v707_v16  ;;  %2048 = vmatmul.mubr.msk.bf16.vlgmr.msra.gmra.mrb[0].mxu0 %vm691_vm0, %v707_v16 }
 0x1a3   : > { %2036 = vmatpush3.bf16.msra.mxu1 %v2274_v15  ;;  %2039 = vmatprep.mubr.msk.bf16.mxu1 %vm2669_vm1, %v2668_v5 }
 0x1a4   : > { %2037 = vmatprep.subr.bf16.mxu1 %v2668_v5  ;;  %2059 = vmatprep.mubr.msk.bf16.mxu0 %vm2669_vm1, %v2668_v5 }
 0x1a7   : > { %2038 = vmatpush3.bf16.msra.mxu1 %v2275_v17 }
 0x1a8   : > { %2051 = vmatprep.subr.bf16.mxu1 %v2668_v5 }
 0x1aa   : > { %2040 = vmatmul.mubr.msk.bf16.vlgmr.msra.gmra.mrb[4].mxu1 %vm691_vm0, %v707_v16 }
 0x1ab   : > { %2053 = vmatprep.mubr.msk.bf16.mxu1 %vm2669_vm1, %v2668_v5 }
 0x275   : > { %v768_v20 = vpop.f32.mrb[0].mxu1  ;;  %v897_v21 = vpop.f32.mrb[0].mxu0 }
 0x276   : > { %v769_v22 = vadd.f32 %v1942_v18, %v768_v20  ;;  %v898_v23 = vadd.f32 %v1950_v19, %v897_v21  ;;  %v2033_v24 = vpop.f32.mrb[1].mxu1  ;;  %v2049_v25 = vpop.f32.mrb[1].mxu0 }
 0x277   : > { %v771_v26 = vpop.f32.mrb[2].mxu1  ;;  %v900_v27 = vpop.f32.mrb[2].mxu0 }
 0x278   : > { %v774_v28 = vmul.f32 0.35355338, %v769_v22  ;;  %v3090_v29 = vpack.c.bf16 %v898_v23, %v898_v23  ;;  %v2034_v30 = vpop.f32.mrb[3].mxu1  ;;  %v2050_v31 = vpop.f32.mrb[3].mxu0 }
 0x27a   : > { %v775_v32 = vpack.c.bf16 %v774_v28, %v774_v28  ;;  %v978_v33 = vsel %vm976_vm2, %v3090_v29, 0 }
 0x27b   : > { %2058 = vmatpush3.bf16.msra.mxu0 %v978_v33 }
 0x27c   : > { %1025 = vrot.lane.b32.xlu1 %v775_v32, %s2670_s21  ;;  %2069 = vmatprep.subr.bf16.mxu0 %v2668_v5 }
 0x27d   : > { %v833_v35 = vpop.f32.mrb[4].mxu1 }
 0x27e   : > { %v834_v36 = vadd.f32 %v1946_v34, %v833_v35  ;;  %v2041_v37 = vpop.f32.mrb[5].mxu1 }
 0x27f   : > { %v836_v38 = vpop.f32.mrb[6].mxu1 }
 0x280   : > { %v839_v39 = vpack.c.bf16 %v834_v36, %v834_v36  ;;  %v2042_v40 = vpop.f32.mrb[7].mxu1 }
 0x282   : > { %1148 = vrot.lane.b32.xlu1 %v839_v39, %s2671_s19  ;;  %1028 = vrot.lane.b32.xlu0 %v839_v39, %s2670_s21  ;;  %v913_v41 = vsel %vm908_vm3, %v839_v39, 0 }
 0x283   : > { %2052 = vmatpush3.bf16.xpose.msra.mxu1 %v913_v41 }
 0x284   : > { %2063 = vmatprep.subr.bf16.mxu1 %v2668_v5 }
 0x286   : > { %1146 = vrot.lane.b32.xlu1 %v775_v32, %s2671_s19 }
 0x28a   : > { %1267 = vrot.lane.b32.xlu1 %v839_v39, %s2672_s16  ;;  %2054 = vmatmul.mubr.msk.bf16.vlgmr.msra.gmra.mrb[8].mxu1 %vm908_vm3, %v775_v32 }
 0x28b   : > { %2065 = vmatprep.mubr.msk.bf16.mxu1 %vm2669_vm1, %v2668_v5 }
 0x28e   : > { %1265 = vrot.lane.b32.xlu1 %v775_v32, %s2672_s16 }
 0x2ee   : > { %v1026_v42 = vpop.permute.xlu1 %1025 }
 0x2f4   : > { %v1029_v43 = vpop.permute.xlu0 %1028  ;;  %v1149_v45 = vpop.permute.xlu1 %1148 }
 0x2f5   : > { %v1034_v44 = vsel %vm908_vm3, %v1029_v43, 0  ;;  %v1154_v47 = vsel %vm908_vm3, %v1149_v45, 0 }
 0x2f6   : > { %2064 = vmatpush3.bf16.xpose.msra.mxu1 %v1034_v44 }
 0x2f7   : > { %2075 = vmatprep.subr.bf16.mxu1 %v2668_v5 }
 0x2f8   : > { %v1147_v46 = vpop.permute.xlu1 %1146 }
 0x2fc   : > { %v1268_v48 = vpop.permute.xlu1 %1267 }
 0x2fd   : > { %2066 = vmatmul.mubr.msk.bf16.vlgmr.msra.gmra.mrb[12].mxu1 %vm908_vm3, %v1026_v42  ;;  %v1273_v49 = vsel %vm908_vm3, %v1268_v48, 0 }
 0x2fe   : > { %2076 = vmatpush3.bf16.xpose.msra.mxu1 %v1154_v47  ;;  %2077 = vmatprep.mubr.msk.bf16.mxu1 %vm2669_vm1, %v2668_v5 }
 0x2ff   : > { %2087 = vmatprep.subr.bf16.mxu1 %v2668_v5 }
 0x300   : > { %v1266_v50 = vpop.permute.xlu1 %1265 }
 0x305   : > { %2078 = vmatmul.mubr.msk.bf16.vlgmr.msra.gmra.mrb[16].mxu1 %vm908_vm3, %v1147_v46 }
 0x306   : > { %2088 = vmatpush3.bf16.xpose.msra.mxu1 %v1273_v49  ;;  %2089 = vmatprep.mubr.msk.bf16.mxu1 %vm2669_vm1, %v2668_v5 }
 0x307   : > { %2099 = vmatprep.subr.bf16.mxu1 %v2668_v5 }
 0x30d   : > { %2090 = vmatmul.mubr.msk.bf16.vlgmr.msra.gmra.mrb[20].mxu1 %vm908_vm3, %v1266_v50 }
 0x30e   : > { %2103 = vmatprep.mubr.msk.bf16.mxu1 %vm2669_vm1, %v2668_v5 }
 0x35d   : > { %v949_v54 = vpop.f32.mrb[8].mxu1 }
 0x35e   : > { %v956_v55 = vsel %vm955_vm4, %v949_v54, -inf  ;;  %v2055_v56 = vpop.f32.mrb[9].mxu1 }
 0x35f   : > { %v952_v57 = vpop.f32.mrb[10].mxu1  ;;  %v957_v58 = vsel %vm908_vm3, %v956_v55, -inf }
 0x360   : > { %958 = vmax.xlane.f32.xlu1 %v957_v58  ;;  %v2056_v59 = vpop.f32.mrb[11].mxu1 }
 0x3d0   : > { %v1070_v60 = vpop.f32.mrb[12].mxu1 }
 0x3d1   : > { %v1076_v61 = vsel %vm955_vm4, %v1070_v60, -inf  ;;  %v2067_v62 = vpop.f32.mrb[13].mxu1 }
 0x3d2   : > { %v1073_v63 = vpop.f32.mrb[14].mxu1  ;;  %v1077_v1 = vsel %vm908_vm3, %v1076_v61, -inf }
 0x3d3   : > { %1078 = vmax.xlane.f32.xlu0 %v1077_v1  ;;  %v2068_v2 = vpop.f32.mrb[15].mxu1 }
 0x3d8   : > { %v1190_v3 = vpop.f32.mrb[16].mxu1 }
 0x3d9   : > { %v1196_v4 = vsel %vm955_vm4, %v1190_v3, -inf  ;;  %v2079_v6 = vpop.f32.mrb[17].mxu1 }
 0x3da   : > { %v1193_v7 = vpop.f32.mrb[18].mxu1  ;;  %v1197_v8 = vsel %vm908_vm3, %v1196_v4, -inf }
 0x3db   : > { %1198 = vmax.xlane.f32.xlu1 %v1197_v8  ;;  %v2080_v9 = vpop.f32.mrb[19].mxu1 }
 0x3e0   : > { %v1309_v10 = vpop.f32.mrb[20].mxu1 }
 0x3e1   : > { %v1315_v11 = vsel %vm955_vm4, %v1309_v10, -inf  ;;  %v2091_v12 = vpop.f32.mrb[21].mxu1 }
 0x3e2   : > { %v1312_v13 = vpop.f32.mrb[22].mxu1  ;;  %v1316_v14 = vsel %vm908_vm3, %v1315_v11, -inf }
 0x3e3   : > { %1317 = vmax.xlane.f32.xlu0 %v1316_v14  ;;  %v2092_v15 = vpop.f32.mrb[23].mxu1 }
 0x3ec   : > { %1094 = vrot.lane.b32.xlu1 %v3090_v29, %s2670_s21 }
 0x3ed   : > { %v959_v16 = vpop.xlane.xlu1 %958 }
 0x3ee   : > { %v960_v17 = vmax.f32 %v959_v16, -1e+30 }
 0x3f0   : > { %v964_v18 = vsub.f32 %v956_v55, %v960_v17  ;;  %1332 = vrot.lane.b32.xlu1 %v3090_v29, %s2672_s16  ;;  %v961_v50 = vsub.f32 -1e+30, %v960_v17 }
 0x3f2   : > { %v965_v19 = vmul.f32 1.442695, %v964_v18  ;;  %v962_v51 = vmul.f32 1.442695, %v961_v50 }
 0x3f4   : > { %2288 = vpow2.f32 %v965_v19 }
 0x3f9   : > { %1213 = vrot.lane.b32.xlu0 %v3090_v29, %s2671_s19  ;;  %s3373_s19 = sld [smem:[#allocation41_spill]] }
 0x3fe   : > { %v2289_v20 = vpop.eup %2288 }
 0x3ff   : > { %v972_v21 = vpack.c.bf16 %v2289_v20, %v2289_v20  ;;  %v968_v41 = vsel %vm908_vm3, %v2289_v20, 0.0  ;;  %s3231_s16 = scalar_lea.hbm %s3373_s19, %s1984_s26 }
 0x401   : > { %2060 = vmatmul.mubr.msk.bf16.vlgmr.msra.gmra.mrb[4].mxu0 %vm908_vm3, %v972_v21 }
 0x402   : > { %2071 = vmatprep.mubr.msk.bf16.mxu0 %vm2669_vm1, %v2668_v5 }
 0x460   : > { %v3138_v22 = vpop.xlane.xlu0 %1078 }
 0x461   : > { %v1080_v23 = vmax.f32 %v3138_v22, -1e+30 }
 0x463   : > { %v1084_v24 = vsub.f32 %v1076_v61, %v1080_v23  ;;  %v1081_v1 = vsub.f32 -1e+30, %v1080_v23 }
 0x465   : > { %v1085_v25 = vmul.f32 1.442695, %v1084_v24  ;;  %v1082_v2 = vmul.f32 1.442695, %v1081_v1  ;;  %v2280_v1 = vld [vmem:[%s3318_s11 + $0x8] sm:$0xff]  }
 0x467   : > { %2290 = vpow2.f32 %v1085_v25 }
 0x468   : > { %v1199_v26 = vpop.xlane.xlu1 %1198 }
 0x469   : > { %v1200_v27 = vmax.f32 %v1199_v26, -1e+30 }
 0x46b   : > { %v1204_v28 = vsub.f32 %v1196_v4, %v1200_v27  ;;  %v1201_v3 = vsub.f32 -1e+30, %v1200_v27 }
 0x46c   : > { %v1095_v30 = vpop.permute.xlu1 %1094 }
 0x46d   : > { %v1205_v31 = vmul.f32 1.442695, %v1204_v28  ;;  %v1100_v29 = vsel %vm976_vm2, %v1095_v30, 0  ;;  %v1202_v4 = vmul.f32 1.442695, %v1201_v3 }
 0x46e   : > { %2070 = vmatpush3.bf16.msra.mxu0 %v1100_v29 }
 0x46f   : > { %2081 = vmatprep.subr.bf16.mxu0 %v2668_v5  ;;  %2292 = vpow2.f32 %v1205_v31 }
 0x470   : > { %v1318_v32 = vpop.xlane.xlu0 %1317  ;;  %v1333_v43 = vpop.permute.xlu1 %1332 }
 0x471   : > { %v1319_v33 = vmax.f32 %v1318_v32, -1e+30  ;;  %v2291_v34 = vpop.eup %2290  ;;  %v1338_v46 = vsel %vm976_vm2, %v1333_v43, 0 }
 0x472   : > { %v1088_v36 = vsel %vm908_vm3, %v2291_v34, 0.0  ;;  %v1092_v37 = vpack.c.bf16 %v2291_v34, %v2291_v34  ;;  %v2276_v34 = vld [vmem:[#allocation12] sm:$0xff]  }
 0x473   : > { %v1323_v35 = vsub.f32 %v1315_v11, %v1319_v33  ;;  %1089 = vadd.xlane.f32.xlu1 %v1088_v36  ;;  %v1320_v6 = vsub.f32 -1e+30, %v1319_v33  ;;  %2100 = vmatpush3.bf16.msra.mxu1 %v2276_v34  ;;  %v2277_v36 = vld [vmem:[#allocation12 + $0x8] sm:$0xff]  }
 0x474   : > { %v1214_v38 = vpop.permute.xlu0 %1213  ;;  %2072 = vmatmul.mubr.msk.bf16.vlgmr.msra.gmra.mrb[8].mxu0 %vm908_vm3, %v1092_v37  ;;  %2101 = vmatprep.subr.bf16.mxu1 %v2668_v5 }
 0x475   : > { %v1324_v39 = vmul.f32 1.442695, %v1323_v35  ;;  %v1219_v40 = vsel %vm976_vm2, %v1214_v38, 0  ;;  %2083 = vmatprep.mubr.msk.bf16.mxu0 %vm2669_vm1, %v2668_v5  ;;  %v1321_v8 = vmul.f32 1.442695, %v1320_v6 }
 0x476   : > { %2082 = vmatpush3.bf16.msra.mxu0 %v1219_v40 }
 0x477   : > { %2093 = vmatprep.subr.bf16.mxu0 %v2668_v5  ;;  %2294 = vpow2.f32 %v1324_v39  ;;  %969 = vadd.xlane.f32.xlu1 %v968_v41 }
 0x478   : > { %2296 = vpow2.f32 %v962_v51  ;;  %2102 = vmatpush3.bf16.msra.mxu1 %v2277_v36 }
 0x479   : > { %v2293_v42 = vpop.eup %2292  ;;  %2115 = vmatprep.subr.bf16.mxu1 %v2668_v5 }
 0x47a   : > { %v1208_v44 = vsel %vm908_vm3, %v2293_v42, 0.0  ;;  %v1212_v45 = vpack.c.bf16 %v2293_v42, %v2293_v42 }
 0x47b   : > { %1209 = vadd.xlane.f32.xlu0 %v1208_v44 }
 0x47c   : > { %2084 = vmatmul.mubr.msk.bf16.vlgmr.msra.gmra.mrb[12].mxu0 %vm908_vm3, %v1212_v45 }
 0x47d   : > { %2094 = vmatpush3.bf16.msra.mxu0 %v1338_v46  ;;  %2095 = vmatprep.mubr.msk.bf16.mxu0 %vm2669_vm1, %v2668_v5 }
 0x47e   : > { %2107 = vmatprep.subr.bf16.mxu0 %v2668_v5 }
 0x481   : > { %v2295_v47 = vpop.eup %2294 }
 0x482   : > { %v1327_v48 = vsel %vm908_vm3, %v2295_v47, 0.0  ;;  %v1331_v49 = vpack.c.bf16 %v2295_v47, %v2295_v47  ;;  %v2297_v52 = vpop.eup %2296 }
 0x483   : > { %1328 = vadd.xlane.f32.xlu0 %v1327_v48  ;;  %v967_v53 = vmul.f32 0.0, %v2297_v52 }
 0x484   : > { %2096 = vmatmul.mubr.msk.bf16.vlgmr.msra.gmra.mrb[16].mxu0 %vm908_vm3, %v1331_v49 }
 0x485   : > { %2111 = vmatprep.mubr.msk.bf16.mxu0 %vm2669_vm1, %v2668_v5 }
 0x4d4   : > { %v1014_v54 = vpop.f32.mrb[4].mxu0 }
 0x4d5   : > { %v1020_v55 = vadd.f32 %v1014_v54, %v967_v53  ;;  %v2061_v56 = vpop.f32.mrb[5].mxu0 }
 0x4d6   : > { %v1017_v57 = vpop.f32.mrb[6].mxu0 }
 0x4d7   : > { %v2062_v58 = vpop.f32.mrb[7].mxu0 }
 0x500   : > { %v1090_v59 = vpop.xlane.xlu1 %1089 }
 0x504   : > { %v970_v60 = vpop.xlane.xlu1 %969 }
 0x505   : > { %v971_v61 = vadd.f32 %v970_v60, %v967_v53  ;;  %v1962_v53 = vld [vmem:[#allocation13] ss:$0 sm:$0xff] }
 0x507   : > { %2298 = vrcp.f32 %v971_v61 }
 0x508   : > { %2300 = vpow2.f32 %v1082_v2  ;;  %v1210_v12 = vpop.xlane.xlu0 %1209  ;;  %v2281_v2 = vld [vmem:[%s3320_s13 + $0x8] sm:$0xff]  }
 0x509   : > { %2302 = vpow2.f32 %v1202_v4 }
 0x50a   : > { %2304 = vpow2.f32 %v1321_v8  ;;  %v1966_v8 = vld [vmem:[#allocation15] ss:$0 sm:$0xff] }
 0x510   : > { %v1329_v17 = vpop.xlane.xlu0 %1328 }
 0x511   : > { %v2299_v62 = vpop.eup %2298 }
 0x512   : > { %v3160_v63 = vmul.f32 %v2299_v62, %v1020_v55  ;;  %v2301_v7 = vpop.eup %2300 }
 0x513   : > { %v1087_v9 = vmul.f32 0.0, %v2301_v7  ;;  %v2303_v11 = vpop.eup %2302 }
 0x514   : > { %v1207_v13 = vmul.f32 0.0, %v2303_v11  ;;  %v2305_v15 = vpop.eup %2304  ;;  %v1023_v47 = vpack.c.bf16 %v3160_v63, %v3160_v63  ;;  %v2279_v63 = vld [vmem:[%s3320_s13] sm:$0xff]  }
 0x515   : > { %v1091_v10 = vadd.f32 %v1090_v59, %v1087_v9  ;;  %v1326_v21 = vmul.f32 0.0, %v2305_v15  ;;  %v2285_v15 = vld [vmem:[%s3322_s15 + $0x18] sm:$0xff]  }
 0x516   : > { %v1211_v14 = vadd.f32 %v1210_v12, %v1207_v13  ;;  %v2282_v12 = vld [vmem:[%s3322_s15] sm:$0xff]  }
 0x517   : > { %2306 = vrcp.f32 %v1091_v10  ;;  %v1330_v25 = vadd.f32 %v1329_v17, %v1326_v21 }
 0x518   : > { %2308 = vrcp.f32 %v1211_v14  ;;  %v2284_v14 = vld [vmem:[%s3322_s15 + $0x10] sm:$0xff]  }
 0x519   : > { %2310 = vrcp.f32 %v1330_v25 }
 0x521   : > { %v2307_v20 = vpop.eup %2306 }
 0x522   : > { %v2309_v31 = vpop.eup %2308 }
 0x523   : > { %v2311_v40 = vpop.eup %2310 }
 0x547   : > { %v1136_v16 = vpop.f32.mrb[8].mxu0 }
 0x548   : > { %v1142_v18 = vadd.f32 %v1136_v16, %v1087_v9  ;;  %v2073_v19 = vpop.f32.mrb[9].mxu0  ;;  %v1967_v16 = vld [vmem:[#allocation16] ss:$0 sm:$0xff] }
 0x549   : > { %v1139_v22 = vpop.f32.mrb[10].mxu0 }
 0x54a   : > { %v1144_v23 = vmul.f32 %v2307_v20, %v1142_v18  ;;  %v2074_v24 = vpop.f32.mrb[11].mxu0 }
 0x54c   : > { %v1145_v26 = vpack.c.bf16 %v1144_v23, %v1144_v23 }
 0x54e   : > { %1385 = vrot.lane.b32.xlu0 %v1145_v26, %s2673_s5  ;;  %s1748_s5 = sshll.u32 %s3177_s25, 4  ;;  %s1749_s5 = int_to_ptr.vmem [resolvable:$true] %s1748_s5 }
 0x54f   : > { %v1255_v27 = vpop.f32.mrb[12].mxu0  ;;  %p2549_p1 = scmp.lt.s32.totalorder %s1749_s5, %s2547_s22 }
 0x550   : > { %v1261_v28 = vadd.f32 %v1255_v27, %v1207_v13  ;;  %v2085_v30 = vpop.f32.mrb[13].mxu0  ;;  %v2283_v13 = vld [vmem:[%s3322_s15 + $0x8] sm:$0xff]  }
 0x551   : > { %v1258_v29 = vpop.f32.mrb[14].mxu0 }
 0x552   : > { %v1263_v32 = vmul.f32 %v2309_v31, %v1261_v28  ;;  %v2086_v33 = vpop.f32.mrb[15].mxu0  ;;  %v1971_v28 = vld [vmem:[%s3321_s14] ss:$0 sm:$0xff] }
 0x554   : > { %v1264_v35 = vpack.c.bf16 %v1263_v32, %v1263_v32 }
 0x556   : > { %1388 = vrot.lane.b32.xlu1 %v1264_v35, %s2674_s7  ;;  %s1722_s7 = scalar_lea.sflag [#allocation20], %s3171_s29 }
 0x557   : > { %v1374_v37 = vpop.f32.mrb[16].mxu0 }
 0x558   : > { %v1380_v38 = vadd.f32 %v1374_v37, %v1326_v21  ;;  %v2097_v39 = vpop.f32.mrb[17].mxu0 }
 0x559   : > { %v1377_v41 = vpop.f32.mrb[18].mxu0 }
 0x55a   : > { %v1382_v42 = vmul.f32 %v2311_v40, %v1380_v38  ;;  %v2098_v43 = vpop.f32.mrb[19].mxu0 }
 0x55c   : > { %v1383_v44 = vpack.c.bf16 %v1382_v42, %v1382_v42 }
 0x55e   : > { %1391 = vrot.lane.b32.xlu1 %v1383_v44, %s2675_s20  ;;  %s2542_s20 = scalar_lea.vmem %s1749_s5, 128 }
 0x55f   : > { %p2543_p8 = scmp.ne.s32.totalorder %s1749_s5, %s2542_s20  ;;  %p2550_p6 = scmp.lt.s32.totalorder %s2548_s27, %s2542_s20 }
 0x561   : > { %p2544_p13 = pnand %p2543_p8, %p3374_p11  ;;  %p2551_p5 = por %p2550_p6, %p2549_p1 }
 0x563   : > { %p2545_p0 = pneg %p2544_p13 }
 0x565   : > { %p2552_p9 = pnand %p2551_p5, %p2545_p0 }
 0x5c0   : > { %v1386_v45 = vpop.permute.xlu0 %1385 }
 0x5c1   : > { %v1395_v48 = vsel %vm908_vm3, %v1023_v47, %v1386_v45 }
 0x5c8   : > { %v1389_v46 = vpop.permute.xlu1 %1388 }
 0x5c9   : > { %v1398_v49 = vsel %vm1396_vm5, %v1395_v48, %v1389_v46 }
 0x5d0   : > { %v1392_v50 = vpop.permute.xlu1 %1391 }
 0x5d1   : > { %v1401_v51 = vsel %vm1399_vm6, %v1398_v49, %v1392_v50 }
 0x5d2   : > { %1404 = vst.msk [vmem:[#allocation2] sm:$0xf] %vm1403_vm7, %v1401_v51 }
 0x5d9   : > { %v1405_v52 = vld [vmem:[#allocation2] sm:$0xf] }
 0x5da   : > { %2104 = vmatmul.mubr.msk.bf16.vlgmr.msra.gmra.mrb[24].mxu1 %vm691_vm0, %v1405_v52 }
 0x5db   : > { %2119 = vmatprep.mubr.msk.bf16.mxu1 %vm2669_vm1, %v2668_v5  ;;  %2116 = vmatpush3.bf16.msra.mxu1 %v2279_v63 }
 0x5dc   : > { %2117 = vmatprep.subr.bf16.mxu1 %v2668_v5 }
 0x5df   : > { %2118 = vmatpush3.bf16.msra.mxu1 %v2281_v2 }
 0x6ad   : > { %v1466_v54 = vpop.f32.mrb[24].mxu1 }
 0x6ae   : > { %v1467_v55 = vadd.f32 %v1962_v53, %v1466_v54  ;;  %v2105_v56 = vpop.f32.mrb[25].mxu1 }
 0x6af   : > { %v1469_v57 = vpop.f32.mrb[26].mxu1 }
 0x6b0   : > { %v1473_v58 = vadd.f32 %v1467_v55, %v3048_v0  ;;  %v2106_v59 = vpop.f32.mrb[27].mxu1  ;;  %1472 = vst.msk [vmem:[%s3177_s25] sm:$0xff] %vm691_vm0, %v1467_v55  ;;  %v2278_v0 = vld [vmem:[%s3318_s11] sm:$0xff]  }
 0x6b1   : > { %2108 = vmatpush3.bf16.msra.mxu0 %v2278_v0 }
 0x6b2   : > { %1474 = vst.msk [vmem:[#allocation3] sm:$0xff] %vm691_vm0, %v1473_v58  ;;  %2109 = vmatprep.subr.bf16.mxu0 %v2668_v5 }
 0x6b5   : > { %2110 = vmatpush3.bf16.msra.mxu0 %v2280_v1 }
 0x6b6   : > { %2123 = vmatprep.subr.bf16.mxu0 %v2668_v5 }
 0x6b9   : > { %v3182_v60 = vld [vmem:[#allocation3] sm:$0xff] }
 0x6ba   : > { %v1477_v61 = vmul.f32 %v3182_v60, %v3182_v60 }
 0x6bc   : > { %v1478_v62 = vsel %vm691_vm0, %v1477_v61, 0.0 }
 0x6bd   : > { %1479 = vadd.xlane.f32.xlu0 %v1478_v62 }
 0x74a   : > { %v1480_v3 = vpop.xlane.xlu0 %1479 }
 0x74b   : > { %v1481_v4 = vmul.f32 0.03125, %v1480_v3 }
 0x74d   : > { %v1482_v6 = vadd.f32 1e-05, %v1481_v4 }
 0x74f   : > { %2312 = vrsqrt.f32 %v1482_v6 }
 0x759   : > { %v2313_v7 = vpop.eup %2312 }
 0x75a   : > { %v1484_v9 = vmul.f32 %v2313_v7, %v3182_v60 }
 0x75c   : > { %v1491_v10 = vmul.f32 %v1966_v8, %v1484_v9 }
 0x75e   : > { %v1492_v11 = vpack.c.bf16 %v1491_v10, %v1491_v10 }
 0x760   : > { %2112 = vmatmul.mubr.msk.bf16.vlgmr.msra.gmra.mrb[20].mxu0 %vm691_vm0, %v1492_v11  ;;  %2120 = vmatmul.mubr.msk.bf16.vlgmr.msra.gmra.mrb[28].mxu1 %vm691_vm0, %v1492_v11 }
 0x761   : > { %2131 = vmatprep.mubr.msk.bf16.mxu0 %vm2669_vm1, %v2668_v5  ;;  %2124 = vmatpush3.bf16.msra.mxu0 %v2282_v12 }
 0x762   : > { %2125 = vmatprep.subr.bf16.mxu0 %v2668_v5 }
 0x765   : > { %2126 = vmatpush3.bf16.msra.mxu0 %v2283_v13 }
 0x766   : > { %2127 = vmatprep.subr.bf16.mxu0 %v2668_v5 }
 0x769   : > { %2128 = vmatpush3.bf16.msra.mxu0 %v2284_v14 }
 0x76a   : > { %2129 = vmatprep.subr.bf16.mxu0 %v2668_v5 }
 0x76d   : > { %2130 = vmatpush3.bf16.msra.mxu0 %v2285_v15 }
 0x833   : > { %v1553_v17 = vpop.f32.mrb[20].mxu0  ;;  %v1616_v18 = vpop.f32.mrb[28].mxu1 }
 0x834   : > { %v1554_v19 = vadd.f32 %v1967_v16, %v1553_v17  ;;  %v2113_v20 = vpop.f32.mrb[21].mxu0  ;;  %v2121_v21 = vpop.f32.mrb[29].mxu1  ;;  %v1617_v29 = vadd.f32 %v1971_v28, %v1616_v18 }
 0x835   : > { %v1556_v22 = vpop.f32.mrb[22].mxu0  ;;  %v1619_v23 = vpop.f32.mrb[30].mxu1 }
 0x836   : > { %v1975_v24 = vmul.f32 -1.442695, %v1554_v19  ;;  %v2114_v25 = vpop.f32.mrb[23].mxu0  ;;  %v2122_v26 = vpop.f32.mrb[31].mxu1 }
 0x838   : > { %2314 = vpow2.f32 %v1975_v24 }
 0x842   : > { %v2315_v5 = vpop.eup %2314 }
 0x843   : > { %v1625_v27 = vadd.f32 1.0, %v2315_v5 }
 0x845   : > { %2316 = vrcp.f32 %v1625_v27 }
 0x84f   : > { %v2317_v30 = vpop.eup %2316 }
 0x850   : > { %v1628_v31 = vmul.f32 %v2317_v30, %v1554_v19 }
 0x852   : > { %v1629_v32 = vmul.f32 %v1628_v31, %v1617_v29 }
 0x854   : > { %v1630_v33 = vpack.c.bf16 %v1629_v32, %v1629_v32 }
 0x856   : > { %2132 = vmatmul.mubr.msk.bf16.vlgmr.msra.gmra.mrb[24].mxu0 %vm1670_vm8, %v1630_v33 }
 0x857   : > { %2555 = shalt.err (!%p2552_p9)
}
 0x858   : > { %s2556_s25 = scalar_lea.hbm %s3231_s16, 128  ;;  %s2560_s24 = scalar_lea.hbm %s3373_s19, 256 }
 0x859   : > { %p2557_p12 = scmp.ne.s32.totalorder %s3231_s16, %s2556_s25  ;;  %p2561_p3 = scmp.lt.u32.totalorder %s3231_s16, %s3373_s19 }
 0x85a   : > { %p2562_p4 = scmp.lt.u32.totalorder %s2560_s24, %s2556_s25  ;;  %p2564_p8 = scmp.lt.u32.totalorder %s2556_s25, %s3231_s16 }
 0x85b   : > { %p2558_p10 = pnand %p2557_p12, %p3374_p11 }
 0x85c   : > { %p2563_p7 = por %p2562_p4, %p2561_p3 }
 0x85d   : > { %p2559_p2 = pneg %p2558_p10 }
 0x85e   : > { %p2565_p13 = por %p2564_p8, %p2563_p7 }
 0x860   : > { %p2566_p0 = pnand %p2565_p13, %p2559_p2 }
 0x862   : > { %2569 = shalt.err (!%p2566_p0)
}
 0x863   : > { %2168 = dma.vmem_to_hbm [thread:$0]  (%p3374_p11), %s1749_s5, 128, %s3231_s16, %s1722_s7  }
 0x864   : > { %s3375_s27 = sld [smem:[#allocation39_spill]]  ;;  %s675_s18 = scalar_lea.vmem [#allocation18], %s1938_s17 }
 0x865   : > { %s1735_s30 = sshll.u32 %s675_s18, 4  ;;  %s3376_s21 = sld [smem:[#allocation40_spill]]  ;;  %s3265_s30 = int_to_ptr.vmem [resolvable:$true] %s1735_s30 }
 0x866   : > { %s1717_s17 = scalar_lea.sflag [#allocation6], %s3171_s29  ;;  %s2570_s5 = scalar_lea.vmem %s3265_s30, 128 }
 0x867   : > { %p2571_p1 = scmp.ne.s32.totalorder %s3265_s30, %s2570_s5  ;;  %s2677_s7 = smov [#allocation18]  }
 0x868   : > { %s2574_s0 = sshll.u32 %s2677_s7, 4  ;;  %s2575_s0 = int_to_ptr.vmem [resolvable:$false] %s2574_s0 }
 0x869   : > { %p2572_p6 = pnand %p2571_p1, %p3374_p11  ;;  %s2576_s1 = scalar_lea.vmem %s2575_s0, 256 }
 0x86a   : > { %v1976_v34 = vld [vmem:[%s3375_s27] ss:$0 sm:$0xff]  ;;  %p2577_p9 = scmp.lt.s32.totalorder %s3265_s30, %s2575_s0  ;;  %p2578_p12 = scmp.lt.s32.totalorder %s2576_s1, %s2570_s5 }
 0x86b   : > { %s3263_s16 = scalar_lea.hbm %s3376_s21, %s1984_s26  ;;  %p2573_p5 = pneg %p2572_p6 }
 0x86c   : > { %p2579_p10 = por %p2578_p12, %p2577_p9 }
 0x86e   : > { %p2580_p2 = pnand %p2579_p10, %p2573_p5 }
 0x929   : > { %v1708_v35 = vpop.f32.mrb[24].mxu0 }
 0x92a   : > { %v1709_v36 = vadd.f32 %v1976_v34, %v1708_v35  ;;  %v2133_v37 = vpop.f32.mrb[25].mxu0 }
 0x92b   : > { %v1711_v38 = vpop.f32.mrb[26].mxu0 }
 0x92c   : > { %v1714_v39 = vadd.f32 %v1709_v36, %v3182_v60  ;;  %v2134_v40 = vpop.f32.mrb[27].mxu0 }
 0x92e   : > { %1715 = vst.msk [vmem:[%s675_s18] sm:$0xff] %vm691_vm0, %v1714_v39 }
 0x92f   : > { %2583 = shalt.err (!%p2580_p2)
}
 0x930   : > { %s2584_s29 = scalar_lea.hbm %s3263_s16, 128  ;;  %s2588_s22 = scalar_lea.hbm %s3376_s21, 256 }
 0x931   : > { %p2585_p3 = scmp.ne.s32.totalorder %s3263_s16, %s2584_s29  ;;  %p2589_p8 = scmp.lt.u32.totalorder %s3263_s16, %s3376_s21 }
 0x932   : > { %p2590_p13 = scmp.lt.u32.totalorder %s2588_s22, %s2584_s29  ;;  %p2592_p1 = scmp.lt.u32.totalorder %s2584_s29, %s3263_s16 }
 0x933   : > { %p2586_p4 = pnand %p2585_p3, %p3374_p11 }
 0x934   : > { %p2591_p0 = por %p2590_p13, %p2589_p8 }
 0x935   : > { %p2587_p7 = pneg %p2586_p4 }
 0x936   : > { %p2593_p6 = por %p2592_p1, %p2591_p0 }
 0x938   : > { %p2594_p5 = pnand %p2593_p6, %p2587_p7 }
 0x93a   : > { %2597 = shalt.err (!%p2594_p5)
}
 0x93b   : > { %2167 = dma.vmem_to_hbm [thread:$0]  (%p3374_p11), %s3265_s30, 128, %s3263_s16, %s1717_s17  }
 0x93c PF: > { %s3377_s25 = sld [smem:[#allocation30_spill]]  ;;  %s3378_s24 = sld [smem:[#allocation28_spill]] }
 0x93d   : > { %s3379_s5 = sld [smem:[#allocation33_spill]] }
 0x942   : > { %p2219_p9 = scmp.ge.s32.totalorder %s3377_s25, 2  ;;  %s1760_s7 = sand.u32 1, %s3378_s24  }
 0x943   : > { %p3380_p12 = scmp.ne.s32.totalorder %s3379_s5, 0  ;;  %s1761_s0 = scalar_lea.sflag [#allocation6], %s1760_s7 }
 0x945   : > { %p2197_p10 = pnand %p2219_p9, %p3380_p12 }
 0x947   : > { %2635 = dma.done.wait (!%p2197_p10), %s1761_s0, 128  }
 0x948   : > { %2637 = vsyncadd (!%p2197_p10), %s1761_s0, 4294967168  ;;  %s1770_s1 = scalar_lea.sflag [#allocation20], %s1760_s7 }
 0x949   : > { %2639 = dma.done.wait (!%p2197_p10), %s1770_s1, 128  }
 0x94a   : > { %2641 = vsyncadd (!%p2197_p10), %s1770_s1, 4294967168  ;;  %s3381_s30 = sld [smem:[#allocation31_spill]]  ;;  %s3382_s2 = sld [smem:[#allocation29_spill]] }
 0x94b   : > { %s3383_s29 = sld [smem:[#allocation32_spill]]  ;;  %s3384_s27 = smov %s2648_s28 }
 0x950   : > { %p37_p11 = scmp.ge.s32.totalorder %s3381_s30, 4   ;;  %s3385_s28 = smov %s3382_s2 }
 0x952   :  { %39 = sbr.rel (!%p37_p11) target bundleno = 19 (0x13), region = 173 }
 0x959   :  { %1775 = vsyncpa [#allocation5], 1 }
 0x95a   :  { %1777 = vsyncpa [#allocation5 + $0x1], 1 }
 0x95b   :  { %1778 = vsyncpa [#allocation8], 1 }
 0x95c   :  { %1779 = vsyncpa [#allocation11], 1 }
 0x95d   :  { %1780 = vsyncpa [#allocation14], 1 }
 0x95e   :  { %1781 = vsyncpa [#allocation17], 1 }
 0x95f   :  { %1782 = vsyncpa [#allocation6], 1 }
 0x960   :  { %1784 = vsyncpa [#allocation6 + $0x1], 1 }
 0x961   :  { %1785 = vsyncpa [#allocation20], 1 }
 0x962   :  { %1787 = vsyncpa [#allocation20 + $0x1], 1 }

// kernel: tpu_custom_call.1
= control target key start
LH: loop header
LB: loop body
LE: loop exit
PB: predicated region body
PF: predicated region fallthrough
CT: control target
= control target key end

     0   :  { %s3307_s0 = inlined_call_operand.vmem [shape: f32[2,8,32], index: 0, kind: input, shape index: {}]   ;;  %s3308_s1 = inlined_call_operand.vmem [shape: f32[1,32], index: 1, kind: input, shape index: {}]   ;;  %s3309_s2 = inlined_call_operand.vmem [shape: bf16[32,32], index: 2, kind: input, shape index: {}]   ;;  %s3310_s3 = inlined_call_operand.vmem [shape: bf16[32,32], index: 3, kind: input, shape index: {}]   ;;  %s3311_s4 = inlined_call_operand.hbm [shape: bf16[32,32], index: 4, kind: input, shape index: {}]   ;;  %s3312_s5 = inlined_call_operand.hbm [shape: f32[1,32], index: 5, kind: input, shape index: {}]   ;;  %s3313_s6 = inlined_call_operand.hbm [shape: f32[1,32], index: 6, kind: input, shape index: {}]   ;;  %s3314_s7 = inlined_call_operand.hbm [shape: f32[1,32], index: 7, kind: input, shape index: {}]   ;;  %s3315_s8 = inlined_call_operand.hbm [shape: bf16[32,32], index: 8, kind: input, shape index: {}]   ;;  %s3316_s9 = inlined_call_operand.hbm [shape: f32[1,32], index: 9, kind: input, shape index: {}]   ;;  %s3317_s10 = inlined_call_operand.hbm [shape: f32[1,32], index: 10, kind: input, shape index: {}]   ;;  %s3318_s11 = inlined_call_operand.vmem [shape: bf16[32,64], index: 11, kind: input, shape index: {}]   ;;  %s3319_s12 = inlined_call_operand.hbm [shape: f32[1,64], index: 12, kind: input, shape index: {}]   ;;  %s3320_s13 = inlined_call_operand.vmem [shape: bf16[32,64], index: 13, kind: input, shape index: {}]   ;;  %s3321_s14 = inlined_call_operand.vmem [shape: f32[1,64], index: 14, kind: input, shape index: {}]   ;;  %s3322_s15 = inlined_call_operand.vmem [shape: bf16[64,32], index: 15, kind: input, shape index: {}]   ;;  %s3323_s16 = inlined_call_operand.vmem [shape: f32[1,32], index: 16, kind: input, shape index: {}]   ;;  %s3324_s17 = inlined_call_operand.hbm [shape: f32[2,8,32], index: 17, kind: output, shape index: {0}]   ;;  %s3325_s18 = inlined_call_operand.hbm [shape: f32[2,8,32], index: 18, kind: output, shape index: {1}]  }
   0x1   :  { %3338 = sst [smem:[#allocation34_spill]] %s3307_s0 }
   0x2   :  { %3339 = sst [smem:[#allocation35_spill]] %s3308_s1 }
   0x3   :  { %3340 = sst [smem:[#allocation36_spill]] %s3309_s2 }
   0x4   :  { %3341 = sst [smem:[#allocation37_spill]] %s3312_s5 }
   0x5   :  { %3342 = sst [smem:[#allocation38_spill]] %s3314_s7 }
   0x6   :  { %3343 = sst [smem:[#allocation39_spill]] %s3323_s16 }
   0x7   :  { %3344 = sst [smem:[#allocation40_spill]] %s3324_s17 }
   0x8   :  { %3345 = sst [smem:[#allocation41_spill]] %s3325_s18 }
   0x9   :  { %24 = vsyncpa [#allocation5], 0 }
   0xa   :  { %25 = vsyncpa [#allocation8], 0 }
   0xb   :  { %26 = vsyncpa [#allocation11], 0 }
   0xc   :  { %27 = vsyncpa [#allocation14], 0 }
   0xd   :  { %28 = vsyncpa [#allocation17], 0 }
   0xe   :  { %29 = vsyncpa [#allocation6], 0 }
   0xf   :  { %31 = vsyncpa [#allocation6 + $0x1], 0 }
  0x10   :  { %32 = vsyncpa [#allocation20], 0 }
  0x11   :  { %34 = vsyncpa [#allocation20 + $0x1], 0  ;;  %s2773_s27 = smov 0   ;;  %s2775_s28 = smov 0  }
  0x12   :  { %s2777_s29 = smov 0   ;;  %s2779_s30 = smov 0  }
  0x13 LB: > { %3346 = sst [smem:[#allocation28_spill]] %s2644_s27  ;;  %s2794_s0 = sadd.s32 4294967295, %s2656_s30   ;;  %s2656_s30 = sphi %s2779_s30, %s3381_s30   ;;  %s2652_s29 = sphi %s2777_s29, %s3383_s29   ;;  %s2648_s28 = sphi %s2775_s28, %s3385_s28   ;;  %s2644_s27 = sphi %s2773_s27, %s3384_s27  }
  0x14   : > { %3347 = sst [smem:[#allocation29_spill]] %s2652_s29  ;;  %s1918_s19 = sadd.s32 4294967294, %s2656_s30  }
  0x15   : > { %3348 = sst [smem:[#allocation30_spill]] %s2656_s30  ;;  %s2798_s1 = sadd.s32 1, %s2656_s30  }
  0x16   : > { %3349 = sst [smem:[#allocation31_spill]] %s2798_s1  ;;  %s409_s20 = sadd.s32 1, %s2652_s29 }
  0x17   : > { %s406_s21 = ssub.s32 %s2656_s30, %s2798_s1  ;;  %p419_p0 = scmp.ne.s32.totalorder %s2652_s29, %s2648_s28 }
  0x18   : > { %p407_p1 = scmp.eq.s32.totalorder %s406_s21, 0  ;;  %p420_p2 = scmp.eq.s32.totalorder %s2794_s0, 1 }
  0x19   : > { %p425_p3 = scmp.ne.s32.totalorder %s2648_s28, %s2644_s27  ;;  %p426_p4 = scmp.eq.s32.totalorder %s1918_s19, 1 }
  0x1a   : > { %s2809_s22 = scalar_select %p407_p1, %s2652_s29, %s409_s20  }
  0x1b   : > { %p2811_p5 = por %p420_p2, %p419_p0  ;;  %p2815_p6 = por %p426_p4, %p425_p3 }
  0x1c   : > { %3350 = sst [smem:[#allocation32_spill]] %s2809_s22  ;;  %p1919_p7 = scmp.ge.s32.totalorder %s2656_s30, 1 }
  0x1d   : > { %s3351_s2 = scalar_select %p2811_p5, 1, 0 }
  0x1e   : > { %s3352_s23 = scalar_select %p2815_p6, 1, 0 }
  0x1f   : > { %p459_p8 = scmp.lt.s32.totalorder %s2656_s30, 3  ;;  %p3334_p9 = scmp.eq.s32.totalorder %s2794_s0, 0 }
  0x20   : > { %3353 = sst [smem:[#allocation33_spill]] %s3352_s23  ;;  %s2658_s25 = smov [#allocation7]  }
  0x21   : > { %p2822_p10 = pnand %p1919_p7, %p459_p8  ;;  %s494_s26 = sshll.u32 %s2658_s25, 4  ;;  %s495_s26 = int_to_ptr.vmem [resolvable:$true] %s494_s26 }
  0x22   : > { %s2659_s19 = smov [#allocation10]   ;;  %s2660_s22 = smov [#allocation13]  }
  0x23   : > { %s3354_s24 = scalar_select %p2822_p10, 1, 0 }
  0x24   : > { %p2171_p11 = pneg %p2822_p10  ;;  %s516_s20 = sshll.u32 %s2659_s19, 4  ;;  %s2834_s20 = int_to_ptr.vmem [resolvable:$true] %s516_s20 }
  0x25   : > { %s540_s29 = sshll.u32 %s2660_s22, 4  ;;  %s3356_s5 = sld [smem:[#allocation37_spill]]  ;;  %s2836_s29 = int_to_ptr.vmem [resolvable:$true] %s540_s29 }
  0x26   : > { %p2830_p12 = pnand %p3334_p9, %p2171_p11 }
  0x28   : > { %p2846_p0 = pneg %p2830_p12 }
  0x2b   : > { %s2318_s25 = scalar_lea.hbm %s3356_s5, 16 }
  0x2c   : > { %p2319_p13 = scmp.ne.s32.totalorder %s3356_s5, %s2318_s25  ;;  %p2325_p3 = scmp.lt.u32.totalorder %s2318_s25, %s3356_s5 }
  0x2e   : > { %p2321_p1 = pnand %p2846_p0, %p2319_p13 }
  0x30   : > { %p2322_p2 = pneg %p2321_p1 }
  0x32   : > { %p2327_p4 = pnand %p2325_p3, %p2322_p2 }
  0x34   : > { %2330 = shalt.err (!%p2327_p4)
}
  0x35   : > { %s2331_s1 = scalar_lea.vmem %s495_s26, 16  ;;  %s2338_s27 = scalar_lea.vmem %s495_s26, 32 }
  0x36   : > { %p2332_p7 = scmp.ne.s32.totalorder %s495_s26, %s2331_s1  ;;  %p2339_p9 = scmp.lt.s32.totalorder %s495_s26, %s495_s26 }
  0x37   : > { %p2340_p6 = scmp.lt.s32.totalorder %s2338_s27, %s2331_s1 }
  0x38   : > { %p2334_p8 = pnand %p2332_p7, %p2846_p0 }
  0x39   : > { %p2341_p5 = por %p2340_p6, %p2339_p9 }
  0x3a   : > { %p2335_p11 = pneg %p2334_p8 }
  0x3c   : > { %p2342_p10 = pnand %p2341_p5, %p2335_p11 }
  0x3e   : > { %2345 = shalt.err (!%p2342_p10)
}
  0x3f   : > { %2177 = dma.hbm_to_vmem [thread:$0]  (!%p2830_p12), %s3356_s5, 16, %s495_s26, [#allocation8]  }
  0x40   : > { %s3358_s7 = sld [smem:[#allocation38_spill]] }
  0x46   : > { %s2346_s22 = scalar_lea.hbm %s3358_s7, 16 }
  0x47   : > { %p2347_p13 = scmp.ne.s32.totalorder %s3358_s7, %s2346_s22  ;;  %p2353_p5 = scmp.lt.u32.totalorder %s2346_s22, %s3358_s7 }
  0x49   : > { %p2349_p1 = pnand %p2347_p13, %p2846_p0 }
  0x4b   : > { %p2350_p6 = pneg %p2349_p1 }
  0x4d   : > { %p2355_p9 = pnand %p2353_p5, %p2350_p6 }
  0x4f   : > { %2358 = shalt.err (!%p2355_p9)
}
  0x50   : > { %s2359_s26 = scalar_lea.vmem %s2834_s20, 16  ;;  %s2366_s16 = scalar_lea.vmem %s2834_s20, 32 }
  0x51   : > { %p2360_p10 = scmp.ne.s32.totalorder %s2834_s20, %s2359_s26  ;;  %p2367_p4 = scmp.lt.s32.totalorder %s2834_s20, %s2834_s20 }
  0x52   : > { %p2368_p7 = scmp.lt.s32.totalorder %s2366_s16, %s2359_s26 }
  0x53   : > { %p2362_p2 = pnand %p2360_p10, %p2846_p0 }
  0x54   : > { %p2369_p8 = por %p2368_p7, %p2367_p4 }
  0x55   : > { %p2363_p3 = pneg %p2362_p2 }
  0x57   : > { %p2370_p11 = pnand %p2369_p8, %p2363_p3 }
  0x59   : > { %2373 = shalt.err (!%p2370_p11)
}
  0x5a   : > { %2183 = dma.hbm_to_vmem [thread:$0]  (!%p2830_p12), %s3358_s7, 16, %s2834_s20, [#allocation11]  }
  0x5b   : > { %s2374_s25 = scalar_lea.hbm %s3316_s9, 16 }
  0x5c   : > { %p2375_p13 = scmp.ne.s32.totalorder %s3316_s9, %s2374_s25  ;;  %p2381_p5 = scmp.lt.u32.totalorder %s2374_s25, %s3316_s9 }
  0x5e   : > { %p2377_p1 = pnand %p2375_p13, %p2846_p0 }
  0x60   : > { %p2378_p6 = pneg %p2377_p1 }
  0x62   : > { %p2383_p9 = pnand %p2381_p5, %p2378_p6 }
  0x64   : > { %2386 = shalt.err (!%p2383_p9)
}
  0x65   : > { %s2387_s20 = scalar_lea.vmem %s2836_s29, 16  ;;  %s2394_s16 = scalar_lea.vmem %s2836_s29, 32 }
  0x66   : > { %p2388_p10 = scmp.ne.s32.totalorder %s2836_s29, %s2387_s20  ;;  %p2395_p4 = scmp.lt.s32.totalorder %s2836_s29, %s2836_s29 }
  0x67   : > { %p2396_p7 = scmp.lt.s32.totalorder %s2394_s16, %s2387_s20 }
  0x68   : > { %p2390_p2 = pnand %p2388_p10, %p2846_p0 }
  0x69   : > { %p2397_p8 = por %p2396_p7, %p2395_p4 }
  0x6a   : > { %p2391_p3 = pneg %p2390_p2 }
  0x6c   : > { %p2398_p11 = pnand %p2397_p8, %p2391_p3 }
  0x6e   : > { %2401 = shalt.err (!%p2398_p11)
}
  0x6f   : > { %2189 = dma.hbm_to_vmem [thread:$0]  (!%p2830_p12), %s3316_s9, 16, %s2836_s29, [#allocation14]  }
  0x70   : > { %s2661_s23 = smov [#allocation4]   ;;  %s2402_s1 = scalar_lea.hbm %s3311_s4, 256 }
  0x71   : > { %s480_s17 = sshll.u32 %s2661_s23, 4  ;;  %p2403_p13 = scmp.ne.s32.totalorder %s3311_s4, %s2402_s1  ;;  %s481_s17 = int_to_ptr.vmem [resolvable:$true] %s480_s17 }
  0x72   : > { %p2409_p5 = scmp.lt.u32.totalorder %s2402_s1, %s3311_s4 }
  0x73   : > { %p2405_p1 = pnand %p2403_p13, %p2846_p0 }
  0x75   : > { %p2406_p6 = pneg %p2405_p1 }
  0x77   : > { %p2411_p9 = pnand %p2409_p5, %p2406_p6 }
  0x79   : > { %2414 = shalt.err (!%p2411_p9)
}
  0x7a   : > { %s2415_s29 = scalar_lea.vmem %s481_s17, 256  ;;  %p2423_p4 = scmp.lt.s32.totalorder %s481_s17, %s481_s17 }
  0x7b   : > { %p2416_p10 = scmp.ne.s32.totalorder %s481_s17, %s2415_s29  ;;  %p2424_p7 = scmp.lt.s32.totalorder %s2415_s29, %s2415_s29 }
  0x7d   : > { %p2418_p2 = pnand %p2416_p10, %p2846_p0  ;;  %p2425_p8 = por %p2424_p7, %p2423_p4 }
  0x7f   : > { %p2419_p3 = pneg %p2418_p2 }
  0x81   : > { %p2426_p11 = pnand %p2425_p8, %p2419_p3 }
  0x83   : > { %2429 = shalt.err (!%p2426_p11)
}
  0x84   : > { %s2662_s18 = smov 64   ;;  %s2663_s30 = smov 4  }
  0x85   : > { %2174 = dma.hbm_to_vmem [thread:$0]  (!%p2830_p12), %s3311_s4, 256, %s481_s17, [#allocation5], %s2662_s18, %s2662_s18, %s2663_s30  }
  0x86   : > { %s2664_s22 = smov [#allocation9]   ;;  %s2665_s27 = smov [#allocation12]  }
  0x87   : > { %s505_s1 = sshll.u32 %s2664_s22, 4  ;;  %s526_s26 = sshll.u32 %s2665_s27, 4  ;;  %s506_s1 = int_to_ptr.vmem [resolvable:$true] %s505_s1  ;;  %s2931_s26 = int_to_ptr.vmem [resolvable:$true] %s526_s26 }
  0x88   : > { %s2430_s29 = scalar_lea.hbm %s3313_s6, 16 }
  0x89   : > { %p2431_p13 = scmp.ne.s32.totalorder %s3313_s6, %s2430_s29  ;;  %p2437_p5 = scmp.lt.u32.totalorder %s2430_s29, %s3313_s6 }
  0x8b   : > { %p2433_p1 = pnand %p2431_p13, %p2846_p0 }
  0x8d   : > { %p2434_p6 = pneg %p2433_p1 }
  0x8f   : > { %p2439_p9 = pnand %p2437_p5, %p2434_p6 }
  0x91   : > { %2442 = shalt.err (!%p2439_p9)
}
  0x92   : > { %s2443_s25 = scalar_lea.vmem %s506_s1, 16  ;;  %s2450_s22 = scalar_lea.vmem %s506_s1, 32 }
  0x93   : > { %p2444_p10 = scmp.ne.s32.totalorder %s506_s1, %s2443_s25  ;;  %p2451_p4 = scmp.lt.s32.totalorder %s506_s1, %s506_s1 }
  0x94   : > { %p2452_p7 = scmp.lt.s32.totalorder %s2450_s22, %s2443_s25 }
  0x95   : > { %p2446_p2 = pnand %p2444_p10, %p2846_p0 }
  0x96   : > { %p2453_p8 = por %p2452_p7, %p2451_p4 }
  0x97   : > { %p2447_p3 = pneg %p2446_p2 }
  0x99   : > { %p2454_p11 = pnand %p2453_p8, %p2447_p3 }
  0x9b   : > { %2457 = shalt.err (!%p2454_p11)
}
  0x9c   : > { %2180 = dma.hbm_to_vmem [thread:$0]  (!%p2830_p12), %s3313_s6, 16, %s506_s1, [#allocation8]  }
  0x9d   : > { %s2458_s16 = scalar_lea.hbm %s3315_s8, 256 }
  0x9e   : > { %p2459_p13 = scmp.ne.s32.totalorder %s3315_s8, %s2458_s16  ;;  %p2465_p5 = scmp.lt.u32.totalorder %s2458_s16, %s3315_s8 }
  0xa0   : > { %p2461_p1 = pnand %p2459_p13, %p2846_p0 }
  0xa2   : > { %p2462_p6 = pneg %p2461_p1 }
  0xa4   : > { %p2467_p9 = pnand %p2465_p5, %p2462_p6 }
  0xa6   : > { %2470 = shalt.err (!%p2467_p9)
}
  0xa7   : > { %s2471_s1 = scalar_lea.vmem %s2931_s26, 256  ;;  %p2479_p4 = scmp.lt.s32.totalorder %s2931_s26, %s2931_s26 }
  0xa8   : > { %p2472_p10 = scmp.ne.s32.totalorder %s2931_s26, %s2471_s1  ;;  %p2480_p7 = scmp.lt.s32.totalorder %s2471_s1, %s2471_s1 }
  0xaa   : > { %p2474_p2 = pnand %p2472_p10, %p2846_p0  ;;  %p2481_p8 = por %p2480_p7, %p2479_p4 }
  0xac   : > { %p2475_p3 = pneg %p2474_p2 }
  0xae   : > { %p2482_p11 = pnand %p2481_p8, %p2475_p3 }
  0xb0   : > { %2485 = shalt.err (!%p2482_p11)
}
  0xb1   : > { %2186 = dma.hbm_to_vmem [thread:$0]  (!%p2830_p12), %s3315_s8, 256, %s2931_s26, [#allocation11], %s2662_s18, %s2662_s18, %s2663_s30  }
  0xb2   : > { %s2666_s7 = smov [#allocation15]   ;;  %s2667_s20 = smov [#allocation16]  }
  0xb3   : > { %s551_s27 = sshll.u32 %s2666_s7, 4  ;;  %s565_s16 = sshll.u32 %s2667_s20, 4  ;;  %s552_s27 = int_to_ptr.vmem [resolvable:$true] %s551_s27  ;;  %s2977_s16 = int_to_ptr.vmem [resolvable:$true] %s565_s16 }
  0xb4   : > { %s2486_s17 = scalar_lea.hbm %s3317_s10, 16 }
  0xb5   : > { %p2487_p13 = scmp.ne.s32.totalorder %s3317_s10, %s2486_s17  ;;  %p2493_p5 = scmp.lt.u32.totalorder %s2486_s17, %s3317_s10 }
  0xb7   : > { %p2489_p1 = pnand %p2487_p13, %p2846_p0 }
  0xb9   : > { %p2490_p6 = pneg %p2489_p1 }
  0xbb   : > { %p2495_p9 = pnand %p2493_p5, %p2490_p6 }
  0xbd   : > { %2498 = shalt.err (!%p2495_p9)
}
  0xbe   : > { %s2499_s30 = scalar_lea.vmem %s552_s27, 16  ;;  %s2506_s26 = scalar_lea.vmem %s552_s27, 32 }
  0xbf   : > { %p2500_p10 = scmp.ne.s32.totalorder %s552_s27, %s2499_s30  ;;  %p2507_p4 = scmp.lt.s32.totalorder %s552_s27, %s552_s27 }
  0xc0   : > { %p2508_p7 = scmp.lt.s32.totalorder %s2506_s26, %s2499_s30 }
  0xc1   : > { %p2502_p2 = pnand %p2500_p10, %p2846_p0 }
  0xc2   : > { %p2509_p8 = por %p2508_p7, %p2507_p4 }
  0xc3   : > { %p2503_p3 = pneg %p2502_p2 }
  0xc5   : > { %p2510_p11 = pnand %p2509_p8, %p2503_p3 }
  0xc7   : > { %2513 = shalt.err (!%p2510_p11)
}
  0xc8   : > { %2192 = dma.hbm_to_vmem [thread:$0]  (!%p2830_p12), %s3317_s10, 16, %s552_s27, [#allocation14]  }
  0xc9   : > { %s2514_s23 = scalar_lea.hbm %s3319_s12, 16 }
  0xca   : > { %p2515_p13 = scmp.ne.s32.totalorder %s3319_s12, %s2514_s23  ;;  %p2521_p5 = scmp.lt.u32.totalorder %s2514_s23, %s3319_s12 }
  0xcc   : > { %p2517_p1 = pnand %p2515_p13, %p2846_p0 }
  0xce   : > { %p2518_p6 = pneg %p2517_p1 }
  0xd0   : > { %p2523_p9 = pnand %p2521_p5, %p2518_p6 }
  0xd2   : > { %2526 = shalt.err (!%p2523_p9)
}
  0xd3   : > { %s2527_s27 = scalar_lea.vmem %s2977_s16, 16  ;;  %s2534_s18 = scalar_lea.vmem %s2977_s16, 32 }
  0xd4   : > { %p2528_p10 = scmp.ne.s32.totalorder %s2977_s16, %s2527_s27  ;;  %p2535_p4 = scmp.lt.s32.totalorder %s2977_s16, %s2977_s16 }
  0xd5   : > { %p2536_p7 = scmp.lt.s32.totalorder %s2534_s18, %s2527_s27 }
  0xd6   : > { %p2530_p2 = pnand %p2528_p10, %p2846_p0 }
  0xd7   : > { %p2537_p8 = por %p2536_p7, %p2535_p4 }
  0xd8   : > { %p2531_p3 = pneg %p2530_p2 }
  0xda   : > { %p2538_p11 = pnand %p2537_p8, %p2531_p3 }
  0xdc   : > { %2541 = shalt.err (!%p2538_p11)
}
  0xdd   : > { %2195 = dma.hbm_to_vmem [thread:$0]  (!%p2830_p12), %s3319_s12, 16, %s2977_s16, [#allocation17]  }
  0xde   : > { %p3359_p13 = scmp.ne.s32.totalorder %s3354_s24, 0 }
  0xdf   : > { %p3360_p0 = scmp.eq.s32.totalorder (!%p3359_p13), %s2794_s0, 0 }
  0xe0   : > { %597 = sbr.rel (%p3359_p13) target bundleno = 2364 (0x93c), region = 88 }
  0xe7   : > { %2615 = dma.done.wait (%p3360_p0), [#allocation5], 256   ;;  %p3361_p1 = pmov %p3360_p0 }
  0xe8   : > { %p3362_p6 = pmov %p3360_p0 }
  0xe9   : > { %2617 = vsyncadd (%p3361_p1), [#allocation5], 4294967040 }
  0xea   : > { %2619 = dma.done.wait (%p3362_p6), [#allocation8], 32   ;;  %p3363_p5 = pmov %p3360_p0 }
  0xeb   : > { %p3364_p9 = pmov %p3360_p0 }
  0xec   : > { %2621 = vsyncadd (%p3363_p5), [#allocation8], 4294967264 }
  0xed   : > { %2623 = dma.done.wait (%p3364_p9), [#allocation11], 272   ;;  %p3365_p12 = pmov %p3360_p0 }
  0xee   : > { %p3366_p10 = pmov %p3360_p0 }
  0xef   : > { %2625 = vsyncadd (%p3365_p12), [#allocation11], 4294967024 }
  0xf0   : > { %2627 = dma.done.wait (%p3366_p10), [#allocation14], 32   ;;  %p3367_p2 = pmov %p3360_p0 }
  0xf1   : > { %p3368_p3 = pmov %p3360_p0 }
  0xf2   : > { %2629 = vsyncadd (%p3367_p2), [#allocation14], 4294967264 }
  0xf3   : > { %2631 = dma.done.wait (%p3368_p3), [#allocation17], 16   ;;  %p3369_p4 = pmov %p3360_p0 }
  0xf4   : > { %p683_p7 = scmp.lt.s32.totalorder %s2794_s0, 1  ;;  %s3370_s5 = sld [smem:[#allocation34_spill]]  ;;  %vm691_vm0 = vcmask 261120   ;;  %v2271_v4 = vld [vmem:[#allocation4] sm:$0xff]   ;;  %v2668_v5 = vmov 0.0   ;;  %v2273_v7 = vld [vmem:[#allocation4 + $0x8] sm:$0xff]   ;;  %v904_v51 = vlaneseq }
  0xf5   : > { %2633 = vsyncadd (%p3369_p4), [#allocation17], 4294967280  ;;  %s3371_s23 = sld [smem:[#allocation36_spill]]  ;;  %2027 = vmatprep.subr.bf16.mxu1 %v2668_v5  ;;  %2043 = vmatprep.subr.bf16.mxu0 %v2668_v5  ;;  %vm2669_vm1 = vmmov 0   ;;  %s3372_s27 = sld [smem:[#allocation35_spill]]  ;;  %v2274_v15 = vld [vmem:[%s3310_s3] sm:$0xff]  }
  0xf6   : > { %s684_s24 = scalar_select %p683_p7, %s2794_s0, 1  ;;  %2044 = vmatpush3.bf16.msra.mxu0 %v2271_v4  ;;  %2031 = vmatprep.mubr.msk.bf16.mxu1 %vm2669_vm1, %v2668_v5  ;;  %v2275_v17 = vld [vmem:[%s3310_s3 + $0x8] sm:$0xff]   ;;  %v1942_v18 = vld [vmem:[#allocation7] ss:$0 sm:$0xff]  ;;  %v1950_v19 = vld [vmem:[#allocation10] ss:$0 sm:$0xff] }
  0xf7   : > { %2045 = vmatprep.subr.bf16.mxu0 %v2668_v5  ;;  %2047 = vmatprep.mubr.msk.bf16.mxu0 %vm2669_vm1, %v2668_v5  ;;  %vm976_vm2 = vcmask 1043456   ;;  %v1946_v34 = vld [vmem:[#allocation9] ss:$0 sm:$0xff]  ;;  %vm908_vm3 = vcmask 64512   ;;  %s2671_s19 = smov 112   ;;  %s2672_s16 = smov 104  }
  0xf8   : > { %s1940_s21 = sshll.u32 %s684_s24, 3  ;;  %v905_v52 = vshrl.u32 %v904_v51, 7  ;;  %v907_v53 = vand.u32 127, %v904_v51  ;;  %s2675_s20 = smov 24   ;;  %vm1396_vm5 = vcmask 130048   ;;  %vm1399_vm6 = vcmask 195584  }
  0xf9   : > { %vm1403_vm7 = vcmask 257024   ;;  %s3171_s29 = sand.u32 1, %s2648_s28   ;;  %vm1670_vm8 = vcmask 523264   ;;  %s1984_s26 = sshll.u32 %s2794_s0, 7 }
  0xfa   : > { %s686_s7 = scalar_lea.vmem %s3370_s5, %s1940_s21  ;;  %2046 = vmatpush3.bf16.msra.mxu0 %v2273_v7  ;;  %s2670_s21 = smov 120   ;;  %vm955_vm4 = vcmp.ge.s32.totalorder %v905_v52, %v907_v53 }
  0xfb   : > { %v3048_v0 = vld [vmem:[%s686_s7] sm:$0xff]  ;;  %v2272_v6 = vld [vmem:[%s3371_s23 + $0x8] sm:$0xff]   ;;  %2057 = vmatprep.subr.bf16.mxu0 %v2668_v5  ;;  %s2673_s5 = smov 8   ;;  %s2674_s7 = smov 16  }
  0xfc   : > { %v690_v1 = vmul.f32 %v3048_v0, %v3048_v0  ;;  %v2270_v3 = vld [vmem:[%s3371_s23] sm:$0xff]   ;;  %s1938_s17 = sshll.u32 %s3171_s29, 3  ;;  %p3374_p11 = scmp.ne.s32.totalorder %s3351_s2, 0 }
  0xfd   : > { %2028 = vmatpush3.bf16.msra.mxu1 %v2270_v3  ;;  %v1941_v12 = vld [vmem:[%s3372_s27] ss:$0 sm:$0xff]  ;;  %s3177_s25 = scalar_lea.vmem [#allocation19], %s1938_s17  ;;  %s2676_s1 = smov [#allocation19]  }
  0xfe   : > { %v692_v2 = vsel %vm691_vm0, %v690_v1, 0.0  ;;  %2029 = vmatprep.subr.bf16.mxu1 %v2668_v5  ;;  %s2546_s22 = sshll.u32 %s2676_s1, 4  ;;  %s2547_s22 = int_to_ptr.vmem [resolvable:$false] %s2546_s22 }
  0xff   : > { %693 = vadd.xlane.f32.xlu0 %v692_v2  ;;  %s2548_s27 = scalar_lea.vmem %s2547_s22, 256 }
 0x101   : > { %2030 = vmatpush3.bf16.msra.mxu1 %v2272_v6 }
 0x102   : > { %2035 = vmatprep.subr.bf16.mxu1 %v2668_v5 }
 0x18c   : > { %v694_v8 = vpop.xlane.xlu0 %693 }
 0x18d   : > { %v696_v9 = vmul.f32 0.03125, %v694_v8 }
 0x18f   : > { %v697_v10 = vadd.f32 1e-05, %v696_v9 }
 0x191   : > { %2286 = vrsqrt.f32 %v697_v10 }
 0x19b   : > { %v2287_v11 = vpop.eup %2286 }
 0x19c   : > { %v699_v13 = vmul.f32 %v2287_v11, %v3048_v0 }
 0x19e   : > { %v706_v14 = vmul.f32 %v1941_v12, %v699_v13 }
 0x1a0   : > { %v707_v16 = vpack.c.bf16 %v706_v14, %v706_v14 }
 0x1a2   : > { %2032 = vmatmul.mubr.msk.bf16.vlgmr.msra.gmra.mrb[0].mxu1 %vm691_vm0, %v707_v16  ;;  %2048 = vmatmul.mubr.msk.bf16.vlgmr.msra.gmra.mrb[0].mxu0 %vm691_vm0, %v707_v16 }
 0x1a3   : > { %2036 = vmatpush3.bf16.msra.mxu1 %v2274_v15  ;;  %2039 = vmatprep.mubr.msk.bf16.mxu1 %vm2669_vm1, %v2668_v5 }
 0x1a4   : > { %2037 = vmatprep.subr.bf16.mxu1 %v2668_v5  ;;  %2059 = vmatprep.mubr.msk.bf16.mxu0 %vm2669_vm1, %v2668_v5 }
 0x1a7   : > { %2038 = vmatpush3.bf16.msra.mxu1 %v2275_v17 }
 0x1a8   : > { %2051 = vmatprep.subr.bf16.mxu1 %v2668_v5 }
 0x1aa   : > { %2040 = vmatmul.mubr.msk.bf16.vlgmr.msra.gmra.mrb[4].mxu1 %vm691_vm0, %v707_v16 }
 0x1ab   : > { %2053 = vmatprep.mubr.msk.bf16.mxu1 %vm2669_vm1, %v2668_v5 }
 0x275   : > { %v768_v20 = vpop.f32.mrb[0].mxu1  ;;  %v897_v21 = vpop.f32.mrb[0].mxu0 }
 0x276   : > { %v769_v22 = vadd.f32 %v1942_v18, %v768_v20  ;;  %v898_v23 = vadd.f32 %v1950_v19, %v897_v21  ;;  %v2033_v24 = vpop.f32.mrb[1].mxu1  ;;  %v2049_v25 = vpop.f32.mrb[1].mxu0 }
 0x277   : > { %v771_v26 = vpop.f32.mrb[2].mxu1  ;;  %v900_v27 = vpop.f32.mrb[2].mxu0 }
 0x278   : > { %v774_v28 = vmul.f32 0.35355338, %v769_v22  ;;  %v3090_v29 = vpack.c.bf16 %v898_v23, %v898_v23  ;;  %v2034_v30 = vpop.f32.mrb[3].mxu1  ;;  %v2050_v31 = vpop.f32.mrb[3].mxu0 }
 0x27a   : > { %v775_v32 = vpack.c.bf16 %v774_v28, %v774_v28  ;;  %v978_v33 = vsel %vm976_vm2, %v3090_v29, 0 }
 0x27b   : > { %2058 = vmatpush3.bf16.msra.mxu0 %v978_v33 }
 0x27c   : > { %1025 = vrot.lane.b32.xlu1 %v775_v32, %s2670_s21  ;;  %2069 = vmatprep.subr.bf16.mxu0 %v2668_v5 }
 0x27d   : > { %v833_v35 = vpop.f32.mrb[4].mxu1 }
 0x27e   : > { %v834_v36 = vadd.f32 %v1946_v34, %v833_v35  ;;  %v2041_v37 = vpop.f32.mrb[5].mxu1 }
 0x27f   : > { %v836_v38 = vpop.f32.mrb[6].mxu1 }
 0x280   : > { %v839_v39 = vpack.c.bf16 %v834_v36, %v834_v36  ;;  %v2042_v40 = vpop.f32.mrb[7].mxu1 }
 0x282   : > { %1148 = vrot.lane.b32.xlu1 %v839_v39, %s2671_s19  ;;  %1028 = vrot.lane.b32.xlu0 %v839_v39, %s2670_s21  ;;  %v913_v41 = vsel %vm908_vm3, %v839_v39, 0 }
 0x283   : > { %2052 = vmatpush3.bf16.xpose.msra.mxu1 %v913_v41 }
 0x284   : > { %2063 = vmatprep.subr.bf16.mxu1 %v2668_v5 }
 0x286   : > { %1146 = vrot.lane.b32.xlu1 %v775_v32, %s2671_s19 }
 0x28a   : > { %1267 = vrot.lane.b32.xlu1 %v839_v39, %s2672_s16  ;;  %2054 = vmatmul.mubr.msk.bf16.vlgmr.msra.gmra.mrb[8].mxu1 %vm908_vm3, %v775_v32 }
 0x28b   : > { %2065 = vmatprep.mubr.msk.bf16.mxu1 %vm2669_vm1, %v2668_v5 }
 0x28e   : > { %1265 = vrot.lane.b32.xlu1 %v775_v32, %s2672_s16 }
 0x2ee   : > { %v1026_v42 = vpop.permute.xlu1 %1025 }
 0x2f4   : > { %v1029_v43 = vpop.permute.xlu0 %1028  ;;  %v1149_v45 = vpop.permute.xlu1 %1148 }
 0x2f5   : > { %v1034_v44 = vsel %vm908_vm3, %v1029_v43, 0  ;;  %v1154_v47 = vsel %vm908_vm3, %v1149_v45, 0 }
 0x2f6   : > { %2064 = vmatpush3.bf16.xpose.msra.mxu1 %v1034_v44 }
 0x2f7   : > { %2075 = vmatprep.subr.bf16.mxu1 %v2668_v5 }
 0x2f8   : > { %v1147_v46 = vpop.permute.xlu1 %1146 }
 0x2fc   : > { %v1268_v48 = vpop.permute.xlu1 %1267 }
 0x2fd   : > { %2066 = vmatmul.mubr.msk.bf16.vlgmr.msra.gmra.mrb[12].mxu1 %vm908_vm3, %v1026_v42  ;;  %v1273_v49 = vsel %vm908_vm3, %v1268_v48, 0 }
 0x2fe   : > { %2076 = vmatpush3.bf16.xpose.msra.mxu1 %v1154_v47  ;;  %2077 = vmatprep.mubr.msk.bf16.mxu1 %vm2669_vm1, %v2668_v5 }
 0x2ff   : > { %2087 = vmatprep.subr.bf16.mxu1 %v2668_v5 }
 0x300   : > { %v1266_v50 = vpop.permute.xlu1 %1265 }
 0x305   : > { %2078 = vmatmul.mubr.msk.bf16.vlgmr.msra.gmra.mrb[16].mxu1 %vm908_vm3, %v1147_v46 }
 0x306   : > { %2088 = vmatpush3.bf16.xpose.msra.mxu1 %v1273_v49  ;;  %2089 = vmatprep.mubr.msk.bf16.mxu1 %vm2669_vm1, %v2668_v5 }
 0x307   : > { %2099 = vmatprep.subr.bf16.mxu1 %v2668_v5 }
 0x30d   : > { %2090 = vmatmul.mubr.msk.bf16.vlgmr.msra.gmra.mrb[20].mxu1 %vm908_vm3, %v1266_v50 }
 0x30e   : > { %2103 = vmatprep.mubr.msk.bf16.mxu1 %vm2669_vm1, %v2668_v5 }
 0x35d   : > { %v949_v54 = vpop.f32.mrb[8].mxu1 }
 0x35e   : > { %v956_v55 = vsel %vm955_vm4, %v949_v54, -inf  ;;  %v2055_v56 = vpop.f32.mrb[9].mxu1 }
 0x35f   : > { %v952_v57 = vpop.f32.mrb[10].mxu1  ;;  %v957_v58 = vsel %vm908_vm3, %v956_v55, -inf }
 0x360   : > { %958 = vmax.xlane.f32.xlu1 %v957_v58  ;;  %v2056_v59 = vpop.f32.mrb[11].mxu1 }
 0x3d0   : > { %v1070_v60 = vpop.f32.mrb[12].mxu1 }
 0x3d1   : > { %v1076_v61 = vsel %vm955_vm4, %v1070_v60, -inf  ;;  %v2067_v62 = vpop.f32.mrb[13].mxu1 }
 0x3d2   : > { %v1073_v63 = vpop.f32.mrb[14].mxu1  ;;  %v1077_v1 = vsel %vm908_vm3, %v1076_v61, -inf }
 0x3d3   : > { %1078 = vmax.xlane.f32.xlu0 %v1077_v1  ;;  %v2068_v2 = vpop.f32.mrb[15].mxu1 }
 0x3d8   : > { %v1190_v3 = vpop.f32.mrb[16].mxu1 }
 0x3d9   : > { %v1196_v4 = vsel %vm955_vm4, %v1190_v3, -inf  ;;  %v2079_v6 = vpop.f32.mrb[17].mxu1 }
 0x3da   : > { %v1193_v7 = vpop.f32.mrb[18].mxu1  ;;  %v1197_v8 = vsel %vm908_vm3, %v1196_v4, -inf }
 0x3db   : > { %1198 = vmax.xlane.f32.xlu1 %v1197_v8  ;;  %v2080_v9 = vpop.f32.mrb[19].mxu1 }
 0x3e0   : > { %v1309_v10 = vpop.f32.mrb[20].mxu1 }
 0x3e1   : > { %v1315_v11 = vsel %vm955_vm4, %v1309_v10, -inf  ;;  %v2091_v12 = vpop.f32.mrb[21].mxu1 }
 0x3e2   : > { %v1312_v13 = vpop.f32.mrb[22].mxu1  ;;  %v1316_v14 = vsel %vm908_vm3, %v1315_v11, -inf }
 0x3e3   : > { %1317 = vmax.xlane.f32.xlu0 %v1316_v14  ;;  %v2092_v15 = vpop.f32.mrb[23].mxu1 }
 0x3ec   : > { %1094 = vrot.lane.b32.xlu1 %v3090_v29, %s2670_s21 }
 0x3ed   : > { %v959_v16 = vpop.xlane.xlu1 %958 }
 0x3ee   : > { %v960_v17 = vmax.f32 %v959_v16, -1e+30 }
 0x3f0   : > { %v964_v18 = vsub.f32 %v956_v55, %v960_v17  ;;  %1332 = vrot.lane.b32.xlu1 %v3090_v29, %s2672_s16  ;;  %v961_v50 = vsub.f32 -1e+30, %v960_v17 }
 0x3f2   : > { %v965_v19 = vmul.f32 1.442695, %v964_v18  ;;  %v962_v51 = vmul.f32 1.442695, %v961_v50 }
 0x3f4   : > { %2288 = vpow2.f32 %v965_v19 }
 0x3f9   : > { %1213 = vrot.lane.b32.xlu0 %v3090_v29, %s2671_s19  ;;  %s3373_s19 = sld [smem:[#allocation41_spill]] }
 0x3fe   : > { %v2289_v20 = vpop.eup %2288 }
 0x3ff   : > { %v972_v21 = vpack.c.bf16 %v2289_v20, %v2289_v20  ;;  %v968_v41 = vsel %vm908_vm3, %v2289_v20, 0.0  ;;  %s3231_s16 = scalar_lea.hbm %s3373_s19, %s1984_s26 }
 0x401   : > { %2060 = vmatmul.mubr.msk.bf16.vlgmr.msra.gmra.mrb[4].mxu0 %vm908_vm3, %v972_v21 }
 0x402   : > { %2071 = vmatprep.mubr.msk.bf16.mxu0 %vm2669_vm1, %v2668_v5 }
 0x460   : > { %v3138_v22 = vpop.xlane.xlu0 %1078 }
 0x461   : > { %v1080_v23 = vmax.f32 %v3138_v22, -1e+30 }
 0x463   : > { %v1084_v24 = vsub.f32 %v1076_v61, %v1080_v23  ;;  %v1081_v1 = vsub.f32 -1e+30, %v1080_v23 }
 0x465   : > { %v1085_v25 = vmul.f32 1.442695, %v1084_v24  ;;  %v1082_v2 = vmul.f32 1.442695, %v1081_v1  ;;  %v2280_v1 = vld [vmem:[%s3318_s11 + $0x8] sm:$0xff]  }
 0x467   : > { %2290 = vpow2.f32 %v1085_v25 }
 0x468   : > { %v1199_v26 = vpop.xlane.xlu1 %1198 }
 0x469   : > { %v1200_v27 = vmax.f32 %v1199_v26, -1e+30 }
 0x46b   : > { %v1204_v28 = vsub.f32 %v1196_v4, %v1200_v27  ;;  %v1201_v3 = vsub.f32 -1e+30, %v1200_v27 }
 0x46c   : > { %v1095_v30 = vpop.permute.xlu1 %1094 }
 0x46d   : > { %v1205_v31 = vmul.f32 1.442695, %v1204_v28  ;;  %v1100_v29 = vsel %vm976_vm2, %v1095_v30, 0  ;;  %v1202_v4 = vmul.f32 1.442695, %v1201_v3 }
 0x46e   : > { %2070 = vmatpush3.bf16.msra.mxu0 %v1100_v29 }
 0x46f   : > { %2081 = vmatprep.subr.bf16.mxu0 %v2668_v5  ;;  %2292 = vpow2.f32 %v1205_v31 }
 0x470   : > { %v1318_v32 = vpop.xlane.xlu0 %1317  ;;  %v1333_v43 = vpop.permute.xlu1 %1332 }
 0x471   : > { %v1319_v33 = vmax.f32 %v1318_v32, -1e+30  ;;  %v2291_v34 = vpop.eup %2290  ;;  %v1338_v46 = vsel %vm976_vm2, %v1333_v43, 0 }
 0x472   : > { %v1088_v36 = vsel %vm908_vm3, %v2291_v34, 0.0  ;;  %v1092_v37 = vpack.c.bf16 %v2291_v34, %v2291_v34  ;;  %v2276_v34 = vld [vmem:[#allocation12] sm:$0xff]  }
 0x473   : > { %v1323_v35 = vsub.f32 %v1315_v11, %v1319_v33  ;;  %1089 = vadd.xlane.f32.xlu1 %v1088_v36  ;;  %v1320_v6 = vsub.f32 -1e+30, %v1319_v33  ;;  %2100 = vmatpush3.bf16.msra.mxu1 %v2276_v34  ;;  %v2277_v36 = vld [vmem:[#allocation12 + $0x8] sm:$0xff]  }
 0x474   : > { %v1214_v38 = vpop.permute.xlu0 %1213  ;;  %2072 = vmatmul.mubr.msk.bf16.vlgmr.msra.gmra.mrb[8].mxu0 %vm908_vm3, %v1092_v37  ;;  %2101 = vmatprep.subr.bf16.mxu1 %v2668_v5 }
 0x475   : > { %v1324_v39 = vmul.f32 1.442695, %v1323_v35  ;;  %v1219_v40 = vsel %vm976_vm2, %v1214_v38, 0  ;;  %2083 = vmatprep.mubr.msk.bf16.mxu0 %vm2669_vm1, %v2668_v5  ;;  %v1321_v8 = vmul.f32 1.442695, %v1320_v6 }
 0x476   : > { %2082 = vmatpush3.bf16.msra.mxu0 %v1219_v40 }
 0x477   : > { %2093 = vmatprep.subr.bf16.mxu0 %v2668_v5  ;;  %2294 = vpow2.f32 %v1324_v39  ;;  %969 = vadd.xlane.f32.xlu1 %v968_v41 }
 0x478   : > { %2296 = vpow2.f32 %v962_v51  ;;  %2102 = vmatpush3.bf16.msra.mxu1 %v2277_v36 }
 0x479   : > { %v2293_v42 = vpop.eup %2292  ;;  %2115 = vmatprep.subr.bf16.mxu1 %v2668_v5 }
 0x47a   : > { %v1208_v44 = vsel %vm908_vm3, %v2293_v42, 0.0  ;;  %v1212_v45 = vpack.c.bf16 %v2293_v42, %v2293_v42 }
 0x47b   : > { %1209 = vadd.xlane.f32.xlu0 %v1208_v44 }
 0x47c   : > { %2084 = vmatmul.mubr.msk.bf16.vlgmr.msra.gmra.mrb[12].mxu0 %vm908_vm3, %v1212_v45 }
 0x47d   : > { %2094 = vmatpush3.bf16.msra.mxu0 %v1338_v46  ;;  %2095 = vmatprep.mubr.msk.bf16.mxu0 %vm2669_vm1, %v2668_v5 }
 0x47e   : > { %2107 = vmatprep.subr.bf16.mxu0 %v2668_v5 }
 0x481   : > { %v2295_v47 = vpop.eup %2294 }
 0x482   : > { %v1327_v48 = vsel %vm908_vm3, %v2295_v47, 0.0  ;;  %v1331_v49 = vpack.c.bf16 %v2295_v47, %v2295_v47  ;;  %v2297_v52 = vpop.eup %2296 }
 0x483   : > { %1328 = vadd.xlane.f32.xlu0 %v1327_v48  ;;  %v967_v53 = vmul.f32 0.0, %v2297_v52 }
 0x484   : > { %2096 = vmatmul.mubr.msk.bf16.vlgmr.msra.gmra.mrb[16].mxu0 %vm908_vm3, %v1331_v49 }
 0x485   : > { %2111 = vmatprep.mubr.msk.bf16.mxu0 %vm2669_vm1, %v2668_v5 }
 0x4d4   : > { %v1014_v54 = vpop.f32.mrb[4].mxu0 }
 0x4d5   : > { %v1020_v55 = vadd.f32 %v1014_v54, %v967_v53  ;;  %v2061_v56 = vpop.f32.mrb[5].mxu0 }
 0x4d6   : > { %v1017_v57 = vpop.f32.mrb[6].mxu0 }
 0x4d7   : > { %v2062_v58 = vpop.f32.mrb[7].mxu0 }
 0x500   : > { %v1090_v59 = vpop.xlane.xlu1 %1089 }
 0x504   : > { %v970_v60 = vpop.xlane.xlu1 %969 }
 0x505   : > { %v971_v61 = vadd.f32 %v970_v60, %v967_v53  ;;  %v1962_v53 = vld [vmem:[#allocation13] ss:$0 sm:$0xff] }
 0x507   : > { %2298 = vrcp.f32 %v971_v61 }
 0x508   : > { %2300 = vpow2.f32 %v1082_v2  ;;  %v1210_v12 = vpop.xlane.xlu0 %1209  ;;  %v2281_v2 = vld [vmem:[%s3320_s13 + $0x8] sm:$0xff]  }
 0x509   : > { %2302 = vpow2.f32 %v1202_v4 }
 0x50a   : > { %2304 = vpow2.f32 %v1321_v8  ;;  %v1966_v8 = vld [vmem:[#allocation15] ss:$0 sm:$0xff] }
 0x510   : > { %v1329_v17 = vpop.xlane.xlu0 %1328 }
 0x511   : > { %v2299_v62 = vpop.eup %2298 }
 0x512   : > { %v3160_v63 = vmul.f32 %v2299_v62, %v1020_v55  ;;  %v2301_v7 = vpop.eup %2300 }
 0x513   : > { %v1087_v9 = vmul.f32 0.0, %v2301_v7  ;;  %v2303_v11 = vpop.eup %2302 }
 0x514   : > { %v1207_v13 = vmul.f32 0.0, %v2303_v11  ;;  %v2305_v15 = vpop.eup %2304  ;;  %v1023_v47 = vpack.c.bf16 %v3160_v63, %v3160_v63  ;;  %v2279_v63 = vld [vmem:[%s3320_s13] sm:$0xff]  }
 0x515   : > { %v1091_v10 = vadd.f32 %v1090_v59, %v1087_v9  ;;  %v1326_v21 = vmul.f32 0.0, %v2305_v15  ;;  %v2285_v15 = vld [vmem:[%s3322_s15 + $0x18] sm:$0xff]  }
 0x516   : > { %v1211_v14 = vadd.f32 %v1210_v12, %v1207_v13  ;;  %v2282_v12 = vld [vmem:[%s3322_s15] sm:$0xff]  }
 0x517   : > { %2306 = vrcp.f32 %v1091_v10  ;;  %v1330_v25 = vadd.f32 %v1329_v17, %v1326_v21 }
 0x518   : > { %2308 = vrcp.f32 %v1211_v14  ;;  %v2284_v14 = vld [vmem:[%s3322_s15 + $0x10] sm:$0xff]  }
 0x519   : > { %2310 = vrcp.f32 %v1330_v25 }
 0x521   : > { %v2307_v20 = vpop.eup %2306 }
 0x522   : > { %v2309_v31 = vpop.eup %2308 }
 0x523   : > { %v2311_v40 = vpop.eup %2310 }
 0x547   : > { %v1136_v16 = vpop.f32.mrb[8].mxu0 }
 0x548   : > { %v1142_v18 = vadd.f32 %v1136_v16, %v1087_v9  ;;  %v2073_v19 = vpop.f32.mrb[9].mxu0  ;;  %v1967_v16 = vld [vmem:[#allocation16] ss:$0 sm:$0xff] }
 0x549   : > { %v1139_v22 = vpop.f32.mrb[10].mxu0 }
 0x54a   : > { %v1144_v23 = vmul.f32 %v2307_v20, %v1142_v18  ;;  %v2074_v24 = vpop.f32.mrb[11].mxu0 }
 0x54c   : > { %v1145_v26 = vpack.c.bf16 %v1144_v23, %v1144_v23 }
 0x54e   : > { %1385 = vrot.lane.b32.xlu0 %v1145_v26, %s2673_s5  ;;  %s1748_s5 = sshll.u32 %s3177_s25, 4  ;;  %s1749_s5 = int_to_ptr.vmem [resolvable:$true] %s1748_s5 }
 0x54f   : > { %v1255_v27 = vpop.f32.mrb[12].mxu0  ;;  %p2549_p1 = scmp.lt.s32.totalorder %s1749_s5, %s2547_s22 }
 0x550   : > { %v1261_v28 = vadd.f32 %v1255_v27, %v1207_v13  ;;  %v2085_v30 = vpop.f32.mrb[13].mxu0  ;;  %v2283_v13 = vld [vmem:[%s3322_s15 + $0x8] sm:$0xff]  }
 0x551   : > { %v1258_v29 = vpop.f32.mrb[14].mxu0 }
 0x552   : > { %v1263_v32 = vmul.f32 %v2309_v31, %v1261_v28  ;;  %v2086_v33 = vpop.f32.mrb[15].mxu0  ;;  %v1971_v28 = vld [vmem:[%s3321_s14] ss:$0 sm:$0xff] }
 0x554   : > { %v1264_v35 = vpack.c.bf16 %v1263_v32, %v1263_v32 }
 0x556   : > { %1388 = vrot.lane.b32.xlu1 %v1264_v35, %s2674_s7  ;;  %s1722_s7 = scalar_lea.sflag [#allocation20], %s3171_s29 }
 0x557   : > { %v1374_v37 = vpop.f32.mrb[16].mxu0 }
 0x558   : > { %v1380_v38 = vadd.f32 %v1374_v37, %v1326_v21  ;;  %v2097_v39 = vpop.f32.mrb[17].mxu0 }
 0x559   : > { %v1377_v41 = vpop.f32.mrb[18].mxu0 }
 0x55a   : > { %v1382_v42 = vmul.f32 %v2311_v40, %v1380_v38  ;;  %v2098_v43 = vpop.f32.mrb[19].mxu0 }
 0x55c   : > { %v1383_v44 = vpack.c.bf16 %v1382_v42, %v1382_v42 }
 0x55e   : > { %1391 = vrot.lane.b32.xlu1 %v1383_v44, %s2675_s20  ;;  %s2542_s20 = scalar_lea.vmem %s1749_s5, 128 }
 0x55f   : > { %p2543_p8 = scmp.ne.s32.totalorder %s1749_s5, %s2542_s20  ;;  %p2550_p6 = scmp.lt.s32.totalorder %s2548_s27, %s2542_s20 }
 0x561   : > { %p2544_p13 = pnand %p2543_p8, %p3374_p11  ;;  %p2551_p5 = por %p2550_p6, %p2549_p1 }
 0x563   : > { %p2545_p0 = pneg %p2544_p13 }
 0x565   : > { %p2552_p9 = pnand %p2551_p5, %p2545_p0 }
 0x5c0   : > { %v1386_v45 = vpop.permute.xlu0 %1385 }
 0x5c1   : > { %v1395_v48 = vsel %vm908_vm3, %v1023_v47, %v1386_v45 }
 0x5c8   : > { %v1389_v46 = vpop.permute.xlu1 %1388 }
 0x5c9   : > { %v1398_v49 = vsel %vm1396_vm5, %v1395_v48, %v1389_v46 }
 0x5d0   : > { %v1392_v50 = vpop.permute.xlu1 %1391 }
 0x5d1   : > { %v1401_v51 = vsel %vm1399_vm6, %v1398_v49, %v1392_v50 }
 0x5d2   : > { %1404 = vst.msk [vmem:[#allocation2] sm:$0xf] %vm1403_vm7, %v1401_v51 }
 0x5d9   : > { %v1405_v52 = vld [vmem:[#allocation2] sm:$0xf] }
 0x5da   : > { %2104 = vmatmul.mubr.msk.bf16.vlgmr.msra.gmra.mrb[24].mxu1 %vm691_vm0, %v1405_v52 }
 0x5db   : > { %2119 = vmatprep.mubr.msk.bf16.mxu1 %vm2669_vm1, %v2668_v5  ;;  %2116 = vmatpush3.bf16.msra.mxu1 %v2279_v63 }
 0x5dc   : > { %2117 = vmatprep.subr.bf16.mxu1 %v2668_v5 }
 0x5df   : > { %2118 = vmatpush3.bf16.msra.mxu1 %v2281_v2 }
 0x6ad   : > { %v1466_v54 = vpop.f32.mrb[24].mxu1 }
 0x6ae   : > { %v1467_v55 = vadd.f32 %v1962_v53, %v1466_v54  ;;  %v2105_v56 = vpop.f32.mrb[25].mxu1 }
 0x6af   : > { %v1469_v57 = vpop.f32.mrb[26].mxu1 }
 0x6b0   : > { %v1473_v58 = vadd.f32 %v1467_v55, %v3048_v0  ;;  %v2106_v59 = vpop.f32.mrb[27].mxu1  ;;  %1472 = vst.msk [vmem:[%s3177_s25] sm:$0xff] %vm691_vm0, %v1467_v55  ;;  %v2278_v0 = vld [vmem:[%s3318_s11] sm:$0xff]  }
 0x6b1   : > { %2108 = vmatpush3.bf16.msra.mxu0 %v2278_v0 }
 0x6b2   : > { %1474 = vst.msk [vmem:[#allocation3] sm:$0xff] %vm691_vm0, %v1473_v58  ;;  %2109 = vmatprep.subr.bf16.mxu0 %v2668_v5 }
 0x6b5   : > { %2110 = vmatpush3.bf16.msra.mxu0 %v2280_v1 }
 0x6b6   : > { %2123 = vmatprep.subr.bf16.mxu0 %v2668_v5 }
 0x6b9   : > { %v3182_v60 = vld [vmem:[#allocation3] sm:$0xff] }
 0x6ba   : > { %v1477_v61 = vmul.f32 %v3182_v60, %v3182_v60 }
 0x6bc   : > { %v1478_v62 = vsel %vm691_vm0, %v1477_v61, 0.0 }
 0x6bd   : > { %1479 = vadd.xlane.f32.xlu0 %v1478_v62 }
 0x74a   : > { %v1480_v3 = vpop.xlane.xlu0 %1479 }
 0x74b   : > { %v1481_v4 = vmul.f32 0.03125, %v1480_v3 }
 0x74d   : > { %v1482_v6 = vadd.f32 1e-05, %v1481_v4 }
 0x74f   : > { %2312 = vrsqrt.f32 %v1482_v6 }
 0x759   : > { %v2313_v7 = vpop.eup %2312 }
 0x75a   : > { %v1484_v9 = vmul.f32 %v2313_v7, %v3182_v60 }
 0x75c   : > { %v1491_v10 = vmul.f32 %v1966_v8, %v1484_v9 }
 0x75e   : > { %v1492_v11 = vpack.c.bf16 %v1491_v10, %v1491_v10 }
 0x760   : > { %2112 = vmatmul.mubr.msk.bf16.vlgmr.msra.gmra.mrb[20].mxu0 %vm691_vm0, %v1492_v11  ;;  %2120 = vmatmul.mubr.msk.bf16.vlgmr.msra.gmra.mrb[28].mxu1 %vm691_vm0, %v1492_v11 }
 0x761   : > { %2131 = vmatprep.mubr.msk.bf16.mxu0 %vm2669_vm1, %v2668_v5  ;;  %2124 = vmatpush3.bf16.msra.mxu0 %v2282_v12 }
 0x762   : > { %2125 = vmatprep.subr.bf16.mxu0 %v2668_v5 }
 0x765   : > { %2126 = vmatpush3.bf16.msra.mxu0 %v2283_v13 }
 0x766   : > { %2127 = vmatprep.subr.bf16.mxu0 %v2668_v5 }
 0x769   : > { %2128 = vmatpush3.bf16.msra.mxu0 %v2284_v14 }
 0x76a   : > { %2129 = vmatprep.subr.bf16.mxu0 %v2668_v5 }
 0x76d   : > { %2130 = vmatpush3.bf16.msra.mxu0 %v2285_v15 }
 0x833   : > { %v1553_v17 = vpop.f32.mrb[20].mxu0  ;;  %v1616_v18 = vpop.f32.mrb[28].mxu1 }
 0x834   : > { %v1554_v19 = vadd.f32 %v1967_v16, %v1553_v17  ;;  %v2113_v20 = vpop.f32.mrb[21].mxu0  ;;  %v2121_v21 = vpop.f32.mrb[29].mxu1  ;;  %v1617_v29 = vadd.f32 %v1971_v28, %v1616_v18 }
 0x835   : > { %v1556_v22 = vpop.f32.mrb[22].mxu0  ;;  %v1619_v23 = vpop.f32.mrb[30].mxu1 }
 0x836   : > { %v1975_v24 = vmul.f32 -1.442695, %v1554_v19  ;;  %v2114_v25 = vpop.f32.mrb[23].mxu0  ;;  %v2122_v26 = vpop.f32.mrb[31].mxu1 }
 0x838   : > { %2314 = vpow2.f32 %v1975_v24 }
 0x842   : > { %v2315_v5 = vpop.eup %2314 }
 0x843   : > { %v1625_v27 = vadd.f32 1.0, %v2315_v5 }
 0x845   : > { %2316 = vrcp.f32 %v1625_v27 }
 0x84f   : > { %v2317_v30 = vpop.eup %2316 }
 0x850   : > { %v1628_v31 = vmul.f32 %v2317_v30, %v1554_v19 }
 0x852   : > { %v1629_v32 = vmul.f32 %v1628_v31, %v1617_v29 }
 0x854   : > { %v1630_v33 = vpack.c.bf16 %v1629_v32, %v1629_v32 }
 0x856   : > { %2132 = vmatmul.mubr.msk.bf16.vlgmr.msra.gmra.mrb[24].mxu0 %vm1670_vm8, %v1630_v33 }
 0x857   : > { %2555 = shalt.err (!%p2552_p9)
}
 0x858   : > { %s2556_s25 = scalar_lea.hbm %s3231_s16, 128  ;;  %s2560_s24 = scalar_lea.hbm %s3373_s19, 256 }
 0x859   : > { %p2557_p12 = scmp.ne.s32.totalorder %s3231_s16, %s2556_s25  ;;  %p2561_p3 = scmp.lt.u32.totalorder %s3231_s16, %s3373_s19 }
 0x85a   : > { %p2562_p4 = scmp.lt.u32.totalorder %s2560_s24, %s2556_s25  ;;  %p2564_p8 = scmp.lt.u32.totalorder %s2556_s25, %s3231_s16 }
 0x85b   : > { %p2558_p10 = pnand %p2557_p12, %p3374_p11 }
 0x85c   : > { %p2563_p7 = por %p2562_p4, %p2561_p3 }
 0x85d   : > { %p2559_p2 = pneg %p2558_p10 }
 0x85e   : > { %p2565_p13 = por %p2564_p8, %p2563_p7 }
 0x860   : > { %p2566_p0 = pnand %p2565_p13, %p2559_p2 }
 0x862   : > { %2569 = shalt.err (!%p2566_p0)
}
 0x863   : > { %2168 = dma.vmem_to_hbm [thread:$0]  (%p3374_p11), %s1749_s5, 128, %s3231_s16, %s1722_s7  }
 0x864   : > { %s3375_s27 = sld [smem:[#allocation39_spill]]  ;;  %s675_s18 = scalar_lea.vmem [#allocation18], %s1938_s17 }
 0x865   : > { %s1735_s30 = sshll.u32 %s675_s18, 4  ;;  %s3376_s21 = sld [smem:[#allocation40_spill]]  ;;  %s3265_s30 = int_to_ptr.vmem [resolvable:$true] %s1735_s30 }
 0x866   : > { %s1717_s17 = scalar_lea.sflag [#allocation6], %s3171_s29  ;;  %s2570_s5 = scalar_lea.vmem %s3265_s30, 128 }
 0x867   : > { %p2571_p1 = scmp.ne.s32.totalorder %s3265_s30, %s2570_s5  ;;  %s2677_s7 = smov [#allocation18]  }
 0x868   : > { %s2574_s0 = sshll.u32 %s2677_s7, 4  ;;  %s2575_s0 = int_to_ptr.vmem [resolvable:$false] %s2574_s0 }
 0x869   : > { %p2572_p6 = pnand %p2571_p1, %p3374_p11  ;;  %s2576_s1 = scalar_lea.vmem %s2575_s0, 256 }
 0x86a   : > { %v1976_v34 = vld [vmem:[%s3375_s27] ss:$0 sm:$0xff]  ;;  %p2577_p9 = scmp.lt.s32.totalorder %s3265_s30, %s2575_s0  ;;  %p2578_p12 = scmp.lt.s32.totalorder %s2576_s1, %s2570_s5 }
 0x86b   : > { %s3263_s16 = scalar_lea.hbm %s3376_s21, %s1984_s26  ;;  %p2573_p5 = pneg %p2572_p6 }
 0x86c   : > { %p2579_p10 = por %p2578_p12, %p2577_p9 }
 0x86e   : > { %p2580_p2 = pnand %p2579_p10, %p2573_p5 }
 0x929   : > { %v1708_v35 = vpop.f32.mrb[24].mxu0 }
 0x92a   : > { %v1709_v36 = vadd.f32 %v1976_v34, %v1708_v35  ;;  %v2133_v37 = vpop.f32.mrb[25].mxu0 }
 0x92b   : > { %v1711_v38 = vpop.f32.mrb[26].mxu0 }
 0x92c   : > { %v1714_v39 = vadd.f32 %v1709_v36, %v3182_v60  ;;  %v2134_v40 = vpop.f32.mrb[27].mxu0 }
 0x92e   : > { %1715 = vst.msk [vmem:[%s675_s18] sm:$0xff] %vm691_vm0, %v1714_v39 }
 0x92f   : > { %2583 = shalt.err (!%p2580_p2)
}
 0x930   : > { %s2584_s29 = scalar_lea.hbm %s3263_s16, 128  ;;  %s2588_s22 = scalar_lea.hbm %s3376_s21, 256 }
 0x931   : > { %p2585_p3 = scmp.ne.s32.totalorder %s3263_s16, %s2584_s29  ;;  %p2589_p8 = scmp.lt.u32.totalorder %s3263_s16, %s3376_s21 }
 0x932   : > { %p2590_p13 = scmp.lt.u32.totalorder %s2588_s22, %s2584_s29  ;;  %p2592_p1 = scmp.lt.u32.totalorder %s2584_s29, %s3263_s16 }
 0x933   : > { %p2586_p4 = pnand %p2585_p3, %p3374_p11 }
 0x934   : > { %p2591_p0 = por %p2590_p13, %p2589_p8 }
 0x935   : > { %p2587_p7 = pneg %p2586_p4 }
 0x936   : > { %p2593_p6 = por %p2592_p1, %p2591_p0 }
 0x938   : > { %p2594_p5 = pnand %p2593_p6, %p2587_p7 }
 0x93a   : > { %2597 = shalt.err (!%p2594_p5)
}
 0x93b   : > { %2167 = dma.vmem_to_hbm [thread:$0]  (%p3374_p11), %s3265_s30, 128, %s3263_s16, %s1717_s17  }
 0x93c PF: > { %s3377_s25 = sld [smem:[#allocation30_spill]]  ;;  %s3378_s24 = sld [smem:[#allocation28_spill]] }
 0x93d   : > { %s3379_s5 = sld [smem:[#allocation33_spill]] }
 0x942   : > { %p2219_p9 = scmp.ge.s32.totalorder %s3377_s25, 2  ;;  %s1760_s7 = sand.u32 1, %s3378_s24  }
 0x943   : > { %p3380_p12 = scmp.ne.s32.totalorder %s3379_s5, 0  ;;  %s1761_s0 = scalar_lea.sflag [#allocation6], %s1760_s7 }
 0x945   : > { %p2197_p10 = pnand %p2219_p9, %p3380_p12 }
 0x947   : > { %2635 = dma.done.wait (!%p2197_p10), %s1761_s0, 128  }
 0x948   : > { %2637 = vsyncadd (!%p2197_p10), %s1761_s0, 4294967168  ;;  %s1770_s1 = scalar_lea.sflag [#allocation20], %s1760_s7 }
 0x949   : > { %2639 = dma.done.wait (!%p2197_p10), %s1770_s1, 128  }
 0x94a   : > { %2641 = vsyncadd (!%p2197_p10), %s1770_s1, 4294967168  ;;  %s3381_s30 = sld [smem:[#allocation31_spill]]  ;;  %s3382_s2 = sld [smem:[#allocation29_spill]] }
 0x94b   : > { %s3383_s29 = sld [smem:[#allocation32_spill]]  ;;  %s3384_s27 = smov %s2648_s28 }
 0x950   : > { %p37_p11 = scmp.ge.s32.totalorder %s3381_s30, 4   ;;  %s3385_s28 = smov %s3382_s2 }
 0x952   :  { %39 = sbr.rel (!%p37_p11) target bundleno = 19 (0x13), region = 173 }
 0x959   :  { %1775 = vsyncpa [#allocation5], 1 }
 0x95a   :  { %1777 = vsyncpa [#allocation5 + $0x1], 1 }
 0x95b   :  { %1778 = vsyncpa [#allocation8], 1 }
 0x95c   :  { %1779 = vsyncpa [#allocation11], 1 }
 0x95d   :  { %1780 = vsyncpa [#allocation14], 1 }
 0x95e   :  { %1781 = vsyncpa [#allocation17], 1 }
 0x95f   :  { %1782 = vsyncpa [#allocation6], 1 }
 0x960   :  { %1784 = vsyncpa [#allocation6 + $0x1], 1 }
 0x961   :  { %1785 = vsyncpa [#allocation20], 1 }
 0x962   :  { %1787 = vsyncpa [#allocation20 + $0x1], 1 }

</bundles_post_ra>
